<compile_context>
chip_gen: v5e
topology: v5e:2x2
jax: 0.10.0
libtpu: 0.0.40
codegen_flags: <defaults>
</compile_context>

<pallas_src>
import jax
import jax.numpy as jnp
from jax.experimental import pallas as pl
from jax.experimental.pallas import tpu as pltpu


def _round_up(x, m):
    return ((x + m - 1) // m) * m


def decoder_kernel(zi_ref, zj_ref, t_ref, w1_ref, wt_ref, b1_ref, w2_ref, out_ref):
    # Hadamard product in the input dtype (matches torch), then cast to f32
    # (matches h.to(float32)).  Fully lane-dense: p rows per 128-lane group.
    z = (zi_ref[...] * zj_ref[...]).astype(jnp.float32)            # (TR, p*dim_z)

    # First Linear: packed block-diagonal matmul (full-K, lane-dense result),
    # plus the treatment column via a second tiny block-diagonal matmul.
    a = jnp.dot(z, w1_ref[...], preferred_element_type=jnp.float32)        # (TR, p*dim_h)
    a = a + jnp.dot(t_ref[...], wt_ref[...], preferred_element_type=jnp.float32)
    a = a + b1_ref[...]

    # ELU (alpha=1); Dropout in eval mode is identity.
    a = jnp.where(a > 0.0, a, jnp.exp(jnp.minimum(a, 0.0)) - 1.0)

    # Second Linear (no bias) as a block-diagonal matmul so each packed row's
    # scalar lands in its own lane: (TR, p*dim_h) @ (p*dim_h, p) -> (TR, p).
    out_ref[...] = jnp.dot(a, w2_ref[...], preferred_element_type=jnp.float32)


def decoder_forward(z_i, z_j, T, w1, b1, w2, *, target_rows_per_tile=4096):
    """z_i, z_j: (N, dim_z); T: (N,); w1: (dim_z+1, dim_h); b1: (dim_h,); w2: (dim_h, 1).

    Returns (N,) float32, matching Decoder(dec='hadamard') in eval mode.
    """
    N, dim_z = z_i.shape
    dim_h = w1.shape[1]
    assert w1.shape[0] == dim_z + 1, "W1 must have dim_z + 1 input features (hadamard)"

    # Rows packed per 128-lane group (capped so the packed hidden width stays sane).
    p = max(1, min(128 // max(dim_z, 1), max(1, 2048 // max(dim_h, 1))))
    wz = p * dim_z          # packed LHS lane width (<= 128)
    wh = p * dim_h          # packed hidden lane width

    # ----- grid / padding: tile chosen from N, even step count >= 2 ---------
    packed_rows = pl.cdiv(N, p)
    target_tile = max(8, _round_up(max(target_rows_per_tile // p, 8), 8))
    steps = max(1, pl.cdiv(packed_rows, target_tile))
    if steps == 1 and packed_rows > 8:
        steps = 2                       # let v7x's two TensorCores both work
    if steps > 1 and steps % 2 == 1:
        steps += 1                      # even split -> balanced megacore load
    tile = _round_up(pl.cdiv(packed_rows, steps), 8)
    pp = tile * steps                   # padded packed-row count
    n_pad = pp * p

    # ----- weight prep (once, outside the kernel) ---------------------------
    w1 = w1.astype(jnp.float32)
    eye = jnp.eye(p, dtype=jnp.float32)
    w1_bd = jnp.kron(eye, w1[:dim_z, :])                               # (wz, wh)
    wt_bd = jnp.kron(eye, w1[dim_z:, :])                               # (p,  wh)
    b1_t = jnp.tile(b1.astype(jnp.float32).reshape(1, dim_h), (1, p))  # (1,  wh)
    w2_bd = jnp.kron(eye, w2.astype(jnp.float32).reshape(dim_h, 1))    # (wh, p)

    # ----- input packing: p rows per 128-lane group --------------------------
    pad = ((0, n_pad - N), (0, 0))
    zi_p = jnp.pad(z_i, pad).reshape(pp, wz)
    zj_p = jnp.pad(z_j, pad).reshape(pp, wz)
    t_p = jnp.pad(T.astype(jnp.float32).reshape(N, 1), pad).reshape(pp, p)

    out = pl.pallas_call(
        decoder_kernel,
        out_shape=jax.ShapeDtypeStruct((pp, p), jnp.float32),
        grid_spec=pltpu.PrefetchScalarGridSpec(
            num_scalar_prefetch=0,
            grid=(steps,),
            in_specs=[
                pl.BlockSpec((tile, wz), lambda i: (i, 0)),   # z_i, packed
                pl.BlockSpec((tile, wz), lambda i: (i, 0)),   # z_j, packed
                pl.BlockSpec((tile, p), lambda i: (i, 0)),    # T,  packed
                pl.BlockSpec((wz, wh), lambda i: (0, 0)),     # W1 block-diag
                pl.BlockSpec((p, wh), lambda i: (0, 0)),      # w1_t block-diag
                pl.BlockSpec((1, wh), lambda i: (0, 0)),      # b1 tiled
                pl.BlockSpec((wh, p), lambda i: (0, 0)),      # w2 block-diag
            ],
            out_specs=pl.BlockSpec((tile, p), lambda i: (i, 0)),
        ),
        compiler_params=pltpu.CompilerParams(
            dimension_semantics=("parallel",),
        ),
    )(zi_p, zj_p, t_p, w1_bd, wt_bd, b1_t, w2_bd)

    # Row-major unpack: element (r, b) is original row r*p + b.
    return out.reshape(n_pad)[:N]  # .squeeze()


def init_params(key, dim_z, dim_h=64):
    """Deterministic init mimicking nn.Linear defaults (uniform +/- 1/sqrt(fan_in))."""
    dim_in = dim_z + 1  # hadamard decoder
    k1, k2, k3 = jax.random.split(key, 3)
    bound1 = 1.0 / jnp.sqrt(dim_in)
    w1 = jax.random.uniform(k1, (dim_in, dim_h), jnp.float32, -bound1, bound1)
    b1 = jax.random.uniform(k2, (dim_h,), jnp.float32, -bound1, bound1)
    bound2 = 1.0 / jnp.sqrt(dim_h)
    w2 = jax.random.uniform(k3, (dim_h, 1), jnp.float32, -bound2, bound2)
    return w1, b1, w2


def reference_forward(z_i, z_j, T, w1, b1, w2):
    z = z_i * z_j
    h = jnp.concatenate([z, T.reshape(-1, 1).astype(z.dtype)], axis=1).astype(jnp.float32)
    a = jnp.dot(h, w1, precision=jax.lax.Precision.HIGHEST) + b1
    a = jnp.where(a > 0.0, a, jnp.expm1(a))
    return jnp.dot(a, w2, precision=jax.lax.Precision.HIGHEST).reshape(-1)


if __name__ == "__main__":
    key = jax.random.PRNGKey(0)
    k_zi, k_zj, k_t, k_p = jax.random.split(key, 4)

    # Non-multiple N exercises the adaptive tiling/padding; the grid has an
    # even number of steps so it shards across both v7x TensorCores.
    N, dim_z, dim_h = 5000, 8, 64
    z_i = jax.random.normal(k_zi, (N, dim_z), jnp.float32)
    z_j = jax.random.normal(k_zj, (N, dim_z), jnp.float32)
    T = jax.random.bernoulli(k_t, 0.5, (N,)).astype(jnp.float32)

    w1, b1, w2 = init_params(k_p, dim_z, dim_h)

    out = decoder_forward(z_i, z_j, T, w1, b1, w2)
    out = jax.block_until_ready(out)

    ref = reference_forward(z_i, z_j, T, w1, b1, w2)
    assert out.shape == (N,)
    assert jnp.allclose(out, ref, atol=1e-4, rtol=1e-4), float(jnp.max(jnp.abs(out - ref)))

    print("KERNEL_OK")
</pallas_src>

<mosaic_0001>
module attributes {stable_mosaic.version = 11 : i64} {
  func.func @decoder_kernel(%arg0: i32, %arg1: memref<160x128xf32, #tpu.memory_space<vmem>>, %arg2: memref<160x128xf32, #tpu.memory_space<vmem>>, %arg3: memref<160x16xf32, #tpu.memory_space<vmem>>, %arg4: memref<128x1024xf32, #tpu.memory_space<vmem>>, %arg5: memref<16x1024xf32, #tpu.memory_space<vmem>>, %arg6: memref<1x1024xf32, #tpu.memory_space<vmem>>, %arg7: memref<1024x16xf32, #tpu.memory_space<vmem>>, %arg8: memref<160x16xf32, #tpu.memory_space<vmem>>) attributes {dimension_semantics = [#tpu.dimension_semantics<parallel>], iteration_bounds = array<i64: 2>, scalar_prefetch = 0 : i64, scratch_operands = 0 : i64, tpu.core_type = #tpu.core_type<tc>, window_params = [{transform_indices = @transform_0, window_bounds = array<i64: 160, 128>}, {transform_indices = @transform_1, window_bounds = array<i64: 160, 128>}, {transform_indices = @transform_2, window_bounds = array<i64: 160, 16>}, {pipeline_mode = #tpu.pipeline_mode<synchronous>, transform_indices = @transform_3, window_bounds = array<i64: 128, 1024>}, {pipeline_mode = #tpu.pipeline_mode<synchronous>, transform_indices = @transform_4, window_bounds = array<i64: 16, 1024>}, {pipeline_mode = #tpu.pipeline_mode<synchronous>, transform_indices = @transform_5, window_bounds = array<i64: 1, 1024>}, {pipeline_mode = #tpu.pipeline_mode<synchronous>, transform_indices = @transform_6, window_bounds = array<i64: 1024, 16>}, {transform_indices = @transform_7, window_bounds = array<i64: 160, 16>}]} {
    %c0 = arith.constant 0 : index
    %c0_0 = arith.constant 0 : index
    %0 = vector.load %arg1[%c0, %c0_0] : memref<160x128xf32, #tpu.memory_space<vmem>>, vector<160x128xf32>
    %c0_1 = arith.constant 0 : index
    %c0_2 = arith.constant 0 : index
    %1 = vector.load %arg2[%c0_1, %c0_2] : memref<160x128xf32, #tpu.memory_space<vmem>>, vector<160x128xf32>
    %2 = arith.mulf %0, %1 : vector<160x128xf32>
    %c0_3 = arith.constant 0 : index
    %c0_4 = arith.constant 0 : index
    %3 = vector.load %arg4[%c0_3, %c0_4] : memref<128x1024xf32, #tpu.memory_space<vmem>>, vector<128x1024xf32>
    %cst = arith.constant dense<0.000000e+00> : vector<160x1024xf32>
    %4 = tpu.matmul %2, %3, %cst {dimension_numbers = #tpu.dot_dimension_numbers<[1], [0], [0], [1], [0, 0, 1, 1], [], []>} : vector<160x128xf32>, vector<128x1024xf32>, vector<160x1024xf32> -> vector<160x1024xf32>
    %c0_5 = arith.constant 0 : index
    %c0_6 = arith.constant 0 : index
    %5 = vector.load %arg3[%c0_5, %c0_6] : memref<160x16xf32, #tpu.memory_space<vmem>>, vector<160x16xf32>
    %c0_7 = arith.constant 0 : index
    %c0_8 = arith.constant 0 : index
    %6 = vector.load %arg5[%c0_7, %c0_8] : memref<16x1024xf32, #tpu.memory_space<vmem>>, vector<16x1024xf32>
    %cst_9 = arith.constant dense<0.000000e+00> : vector<160x1024xf32>
    %7 = tpu.matmul %5, %6, %cst_9 {dimension_numbers = #tpu.dot_dimension_numbers<[1], [0], [0], [1], [0, 0, 1, 1], [], []>} : vector<160x16xf32>, vector<16x1024xf32>, vector<160x1024xf32> -> vector<160x1024xf32>
    %8 = arith.addf %4, %7 : vector<160x1024xf32>
    %c0_10 = arith.constant 0 : index
    %c0_11 = arith.constant 0 : index
    %9 = vector.load %arg6[%c0_10, %c0_11] : memref<1x1024xf32, #tpu.memory_space<vmem>>, vector<1x1024xf32>
    %10 = vector.broadcast %9 : vector<1x1024xf32> to vector<160x1024xf32>
    %11 = arith.addf %8, %10 : vector<160x1024xf32>
    %cst_12 = arith.constant 0.000000e+00 : f32
    %12 = vector.broadcast %cst_12 : f32 to vector<160x1024xf32>
    %13 = arith.cmpf ogt, %11, %12 : vector<160x1024xf32>
    %cst_13 = arith.constant 0.000000e+00 : f32
    %14 = vector.broadcast %cst_13 : f32 to vector<160x1024xf32>
    %15 = arith.minimumf %11, %14 : vector<160x1024xf32>
    %16 = math.exp %15 : vector<160x1024xf32>
    %cst_14 = arith.constant 1.000000e+00 : f32
    %17 = vector.broadcast %cst_14 : f32 to vector<160x1024xf32>
    %18 = arith.subf %16, %17 : vector<160x1024xf32>
    %19 = arith.select %13, %11, %18 : vector<160x1024xi1>, vector<160x1024xf32>
    %c0_15 = arith.constant 0 : index
    %c0_16 = arith.constant 0 : index
    %20 = vector.load %arg7[%c0_15, %c0_16] : memref<1024x16xf32, #tpu.memory_space<vmem>>, vector<1024x16xf32>
    %cst_17 = arith.constant dense<0.000000e+00> : vector<160x16xf32>
    %21 = tpu.matmul %19, %20, %cst_17 {dimension_numbers = #tpu.dot_dimension_numbers<[1], [0], [0], [1], [0, 0, 1, 1], [], []>} : vector<160x1024xf32>, vector<1024x16xf32>, vector<160x16xf32> -> vector<160x16xf32>
    %c0_18 = arith.constant 0 : index
    %c0_19 = arith.constant 0 : index
    %22 = vector.load %arg8[%c0_18, %c0_19] : memref<160x16xf32, #tpu.memory_space<vmem>>, vector<160x16xf32>
    tpu.vector_store %arg8[%c0_18, %c0_19], %21 {strides = array<i32>} : memref<160x16xf32, #tpu.memory_space<vmem>>, vector<160x16xf32>,
    return
  }
  func.func @transform_0(%arg0: i32) -> (i32, i32) {
    %c0_i32 = arith.constant 0 : i32
    %c0_i32_0 = arith.constant 0 : i32
    return %arg0, %c0_i32 : i32, i32
  }
  func.func @transform_1(%arg0: i32) -> (i32, i32) {
    %c0_i32 = arith.constant 0 : i32
    %c0_i32_0 = arith.constant 0 : i32
    return %arg0, %c0_i32 : i32, i32
  }
  func.func @transform_2(%arg0: i32) -> (i32, i32) {
    %c0_i32 = arith.constant 0 : i32
    %c0_i32_0 = arith.constant 0 : i32
    return %arg0, %c0_i32 : i32, i32
  }
  func.func @transform_3(%arg0: i32) -> (i32, i32) {
    %c0_i32 = arith.constant 0 : i32
    %c0_i32_0 = arith.constant 0 : i32
    %c0_i32_1 = arith.constant 0 : i32
    return %c0_i32, %c0_i32_0 : i32, i32
  }
  func.func @transform_4(%arg0: i32) -> (i32, i32) {
    %c0_i32 = arith.constant 0 : i32
    %c0_i32_0 = arith.constant 0 : i32
    %c0_i32_1 = arith.constant 0 : i32
    return %c0_i32, %c0_i32_0 : i32, i32
  }
  func.func @transform_5(%arg0: i32) -> (i32, i32) {
    %c0_i32 = arith.constant 0 : i32
    %c0_i32_0 = arith.constant 0 : i32
    %c0_i32_1 = arith.constant 0 : i32
    return %c0_i32, %c0_i32_0 : i32, i32
  }
  func.func @transform_6(%arg0: i32) -> (i32, i32) {
    %c0_i32 = arith.constant 0 : i32
    %c0_i32_0 = arith.constant 0 : i32
    %c0_i32_1 = arith.constant 0 : i32
    return %c0_i32, %c0_i32_0 : i32, i32
  }
  func.func @transform_7(%arg0: i32) -> (i32, i32) {
    %c0_i32 = arith.constant 0 : i32
    %c0_i32_0 = arith.constant 0 : i32
    return %arg0, %c0_i32 : i32, i32
  }
}

</mosaic_0001>

<bundles_post_ra>
// kernel: tpu_custom_call.1
= control target key start
LH: loop header
LB: loop body
LE: loop exit
PB: predicated region body
PF: predicated region fallthrough
CT: control target
= control target key end

     0   :  { %12 = vsyncpa [#allocation3], 0  ;;  %s8591_s0 = inlined_call_operand.vmem [shape: f32[320,128], index: 0, kind: input, shape index: {}]   ;;  %s8592_s1 = inlined_call_operand.hbm [shape: f32[320,128], index: 1, kind: input, shape index: {}]   ;;  %s8593_s2 = inlined_call_operand.vmem [shape: f32[320,16], index: 2, kind: input, shape index: {}]   ;;  %s8594_s3 = inlined_call_operand.vmem [shape: f32[128,1024], index: 3, kind: input, shape index: {}]   ;;  %s8595_s4 = inlined_call_operand.hbm [shape: f32[16,1024], index: 4, kind: input, shape index: {}]   ;;  %s8596_s5 = inlined_call_operand.vmem [shape: f32[1,1024], index: 5, kind: input, shape index: {}]   ;;  %s8597_s6 = inlined_call_operand.vmem [shape: f32[1024,16], index: 6, kind: input, shape index: {}]   ;;  %s8598_s7 = inlined_call_operand.vmem [shape: f32[320,16], index: 7, kind: output, shape index: {}]  }
   0x1   :  { %14 = vsyncpa [#allocation3 + $0x1], 0 }
   0x2   :  { %15 = vsyncpa [#allocation5], 0  ;;  %s4740_s24 = smov 0   ;;  %s4742_s25 = smov 0  }
   0x3   :  { %s4744_s26 = smov 0   ;;  %s4746_s27 = smov 0  }
   0x4 LB: > { %s8599_s28 = sadd.s32 4294967295, %s4693_s27   ;;  %p67_p0 = scmp.ne.s32.totalorder %s4685_s25, %s4681_s24  ;;  %s4693_s27 = sphi %s4746_s27, %s9112_s27   ;;  %s4689_s26 = sphi %s4744_s26, %s9111_s26   ;;  %s4685_s25 = sphi %s4742_s25, %s9110_s25   ;;  %s4681_s24 = sphi %s4740_s24, %s9109_s24  }
   0x5   : > { %p4762_p1 = scmp.eq.s32.totalorder %s8599_s28, 0  ;;  %p3886_p2 = scmp.ge.s32.totalorder %s4693_s27, 1 }
   0x6   : > { %p214_p3 = scmp.lt.s32.totalorder %s4693_s27, 3  ;;  %s228_s10 = sshll.u32 %s8595_s4, 4  ;;  %s229_s10 = int_to_ptr.hbm [resolvable:$true] %s228_s10 }
   0x7   : > { %p4770_p4 = por %p4762_p1, %p67_p0  ;;  %s4695_s12 = smov [#allocation4]  }
   0x8   : > { %p4777_p5 = pnand %p3886_p2, %p214_p3  ;;  %s230_s13 = sshll.u32 %s4695_s12, 4  ;;  %s231_s13 = int_to_ptr.vmem [resolvable:$true] %s230_s13 }
   0x9   : > { %s4786_s14 = sadd.s32 1, %s4693_s27   ;;  %s4696_s15 = smov 1024  }
   0xa   : > { %p4226_p6 = pneg %p4777_p5  ;;  %s4697_s16 = smov 64  }
   0xb   : > { %s51_s17 = ssub.s32 %s4693_s27, %s4786_s14  ;;  %s54_s18 = sadd.s32 1, %s4689_s26 }
   0xc   : > { %p4227_p7 = pnand %p4226_p6, %p4762_p1  ;;  %p52_p8 = scmp.eq.s32.totalorder %s51_s17, 0 }
   0xd   : > { %p61_p9 = scmp.ne.s32.totalorder %s4689_s26, %s4685_s25  ;;  %p62_p10 = scmp.eq.s32.totalorder %s4693_s27, 0 }
   0xe   : > { %4229 = dma.hbm_to_vmem [thread:$0]  (!%p4227_p7), %s229_s10, 2048, %s231_s13, [#allocation5], %s4696_s15, %s4696_s15, %s4697_s16  }
   0xf   : > { %p4235_p11 = scmp.lt.s32.totalorder %s4693_s27, 2  ;;  %p63_p12 = por %p62_p10, %p61_p9 }
  0x10   : > { %s4796_s19 = scalar_select %p52_p8, %s4689_s26, %s54_s18  }
  0x11   : > { %s259_s20 = sand.u32 1, %s4689_s26   ;;  %s4217_s22 = smul.u32 160, %s4693_s27 }
  0x12   : > { %s4218_s21 = smul.u32 160, %s259_s20  ;;  %p4800_p13 = pnand %p4235_p11, %p63_p12 }
  0x13   : > { %s268_s9 = scalar_lea.hbm %s8592_s1, %s4217_s22  ;;  %s260_s15 = scalar_lea.sflag [#allocation3], %s259_s20 }
  0x14   : > { %s263_s10 = scalar_lea.vmem [#allocation2], %s4218_s21  ;;  %s269_s13 = sshll.u32 %s268_s9, 4  ;;  %s270_s13 = int_to_ptr.hbm [resolvable:$true] %s269_s13 }
  0x15   : > { %s271_s12 = sshll.u32 %s263_s10, 4  ;;  %s4625_s16 = sshra.s32 %s270_s13, 4  ;;  %s272_s12 = int_to_ptr.vmem [resolvable:$true] %s271_s12  ;;  %s4626_s16 = int_to_ptr.hbm [resolvable:$true] %s4625_s16 }
  0x16   : > { %s4627_s17 = scalar_lea.hbm %s4626_s16, 160  ;;  %p4629_p2 = pneg %p4800_p13 }
  0x17   : > { %p4628_p0 = scmp.ne.s32.totalorder %s4626_s16, %s4627_s17  ;;  %s4632_s24 = scalar_lea.hbm %s8592_s1, 320 }
  0x18   : > { %p4633_p7 = scmp.lt.s32.totalorder %s4626_s16, %s8592_s1  ;;  %p4634_p8 = scmp.lt.s32.totalorder %s4632_s24, %s4627_s17 }
  0x19   : > { %p4630_p3 = pnand %p4629_p2, %p4628_p0 }
  0x1a   : > { %p4635_p9 = por %p4634_p8, %p4633_p7 }
  0x1b   : > { %p4631_p6 = pneg %p4630_p3 }
  0x1d   : > { %p4636_p10 = pnand %p4635_p9, %p4631_p6 }
  0x1f   : > { %4639 = shalt.err (!%p4636_p10)
}
  0x20   : > { %s4698_s20 = smov 128   ;;  %s4699_s21 = smov 8  }
  0x21   : > { %4233 = dma.hbm_to_vmem [thread:$0]  (!%p4800_p13), %s270_s13, 2560, %s272_s12, %s260_s15, %s4698_s20, %s4698_s20, %s4699_s21  }
  0x22   : > { %292 = sbr.rel (%p4777_p5) target bundleno = 1155 (0x483), region = 48 }
  0x27   : > { %s294_s28 = sand.u32 1, %s4685_s25  }
  0x28   : > { %s4219_s9 = smul.u32 160, %s294_s28  ;;  %s295_s10 = scalar_lea.sflag [#allocation3], %s294_s28 }
  0x2a   : > { %s4820_s18 = scalar_lea.vmem [#allocation2], %s4219_s9 }
  0x2b   : > { %4672 = dma.done.wait (%p4770_p4), %s295_s10, 2560  }
  0x2c   : > { %4674 = vsyncadd (%p4770_p4), %s295_s10, 4294964736 }
  0x2d   : > { %4676 = dma.done.wait (%p4762_p1), [#allocation5], 2048  }
  0x2e   : > { %4678 = vsyncadd (%p4762_p1), [#allocation5], 4294965248  ;;  %s8604_s11 = sadd.s32 4294967295, %s4693_s27   ;;  %v580_v0 = vld [vmem:[#allocation4 + $0x40] sm:$0xff]  ;;  %v581_v1 = vld [vmem:[#allocation4 + $0x48] sm:$0xff]  ;;  %vm588_vm0 = vcmask 130048  }
  0x2f   : > { %s345_s23 = smul.u32 20, %s8604_s11  ;;  %v582_v2 = vld [vmem:[#allocation4 + $0x50] sm:$0xff]  ;;  %663 = vmatpush.msra.mxu0 %v580_v0  ;;  %740 = vmatpush.msra.mxu1 %v581_v1  ;;  %v583_v3 = vld [vmem:[#allocation4 + $0x58] sm:$0xff]  ;;  %v572_v4 = vld [vmem:[#allocation4] sm:$0xff] }
  0x30   : > { %v573_v5 = vld [vmem:[#allocation4 + $0x8] sm:$0xff]  ;;  %817 = vmatpush.msra.mxu2 %v582_v2  ;;  %894 = vmatpush.msra.mxu3 %v583_v3  ;;  %v574_v6 = vld [vmem:[#allocation4 + $0x10] sm:$0xff]  ;;  %v575_v7 = vld [vmem:[#allocation4 + $0x18] sm:$0xff] }
  0x31   : > { %p346_p5 = scmp.lt.s32.totalorder %s345_s23, 39  ;;  %664 = vmatpush.msra.mxu0 %v572_v4  ;;  %741 = vmatpush.msra.mxu1 %v573_v5  ;;  %v586_v9 = vld [vmem:[#allocation4 + $0x70] sm:$0xff]  ;;  %v584_v10 = vld [vmem:[#allocation4 + $0x60] sm:$0xff]  ;;  %v587_v11 = vld [vmem:[#allocation4 + $0x78] sm:$0xff] }
  0x32   : > { %818 = vmatpush.msra.mxu2 %v574_v6  ;;  %895 = vmatpush.msra.mxu3 %v575_v7  ;;  %v585_v12 = vld [vmem:[#allocation4 + $0x68] sm:$0xff]  ;;  %v578_v19 = vld [vmem:[#allocation4 + $0x30] sm:$0xff]  ;;  %v576_v20 = vld [vmem:[#allocation4 + $0x20] sm:$0xff] }
  0x33   : > { %s9114_s23 = smov (!%p346_p5, %s345_s23), 39  ;;  %971 = vmatpush.msrb.mxu0 %v584_v10  ;;  %1048 = vmatpush.msrb.mxu1 %v585_v12  ;;  %v579_v21 = vld [vmem:[#allocation4 + $0x38] sm:$0xff]  ;;  %v577_v22 = vld [vmem:[#allocation4 + $0x28] sm:$0xff]  ;;  %v546_v35 = vld [vmem:[%s8594_s3 + $0x3d0] sm:$0xff] }
  0x34   : > { %s4832_s12 = sshll.u32 %s9114_s23, 3  ;;  %1125 = vmatpush.msrb.mxu2 %v586_v9  ;;  %1202 = vmatpush.msrb.mxu3 %v587_v11  ;;  %v544_v36 = vld [vmem:[%s8594_s3 + $0x3c0] sm:$0xff]  ;;  %v547_v37 = vld [vmem:[%s8594_s3 + $0x3d8] sm:$0xff]  ;;  %v545_v40 = vld [vmem:[%s8594_s3 + $0x3c8] sm:$0xff] }
  0x35   : > { %s4838_s15 = scalar_lea.vmem %s8593_s2, %s4832_s12  ;;  %972 = vmatpush.msrb.mxu0 %v576_v20  ;;  %1049 = vmatpush.msrb.mxu1 %v577_v22  ;;  %v538_v44 = vld [vmem:[%s8594_s3 + $0x390] sm:$0xff]  ;;  %v536_v47 = vld [vmem:[%s8594_s3 + $0x380] sm:$0xff]  ;;  %v539_v48 = vld [vmem:[%s8594_s3 + $0x398] sm:$0xff]  ;;  %s5629_s27 = scalar_lea.vmem %s8591_s0, %s4832_s12 }
  0x36   : > { %v4841_v8 = vld [vmem:[%s4838_s15] sm:$0xff]  ;;  %v4852_v13 = vld [vmem:[%s4838_s15 + $0x8] sm:$0xff]  ;;  %v4863_v14 = vld [vmem:[%s4838_s15 + $0x10] sm:$0xff]  ;;  %1126 = vmatpush.msrb.mxu2 %v578_v19  ;;  %1203 = vmatpush.msrb.mxu3 %v579_v21  ;;  %s8495_s8 = scalar_lea.vmem %s8598_s7, %s4832_s12 }
  0x37   : > { %3895 = vmatmul.msk.f32.vlgmr.msra.gmra.mxu0 %vm588_vm0, %v4841_v8  ;;  %3915 = vmatmul.msk.f32.vlgmr.msra.gmra.mxu1 %vm588_vm0, %v4841_v8  ;;  %v4874_v15 = vld [vmem:[%s4838_s15 + $0x18] sm:$0xff]  ;;  %v4885_v16 = vld [vmem:[%s4838_s15 + $0x20] sm:$0xff]  ;;  %v4896_v17 = vld [vmem:[%s4838_s15 + $0x28] sm:$0xff] }
  0x38   : > { %3935 = vmatmul.msk.f32.vlgmr.msra.gmra.mxu2 %vm588_vm0, %v4841_v8  ;;  %3955 = vmatmul.msk.f32.vlgmr.msra.gmra.mxu3 %vm588_vm0, %v4841_v8  ;;  %v4907_v18 = vld [vmem:[%s4838_s15 + $0x30] sm:$0xff]  ;;  %v4918_v23 = vld [vmem:[%s4838_s15 + $0x38] sm:$0xff]  ;;  %v4929_v24 = vld [vmem:[%s4838_s15 + $0x40] sm:$0xff] }
  0x39   : > { %v4940_v25 = vld [vmem:[%s4838_s15 + $0x48] sm:$0xff]  ;;  %v4951_v26 = vld [vmem:[%s4838_s15 + $0x50] sm:$0xff]  ;;  %v4962_v27 = vld [vmem:[%s4838_s15 + $0x58] sm:$0xff]  ;;  %1419 = vmatpush.msra.mxu2 %v546_v35  ;;  %1265 = vmatpush.msra.mxu0 %v544_v36 }
  0x3a   : > { %v4973_v28 = vld [vmem:[%s4838_s15 + $0x60] sm:$0xff]  ;;  %v4984_v29 = vld [vmem:[%s4838_s15 + $0x68] sm:$0xff]  ;;  %v4995_v30 = vld [vmem:[%s4838_s15 + $0x70] sm:$0xff]  ;;  %1496 = vmatpush.msra.mxu3 %v547_v37  ;;  %1342 = vmatpush.msra.mxu1 %v545_v40 }
  0x3b   : > { %v5006_v31 = vld [vmem:[%s4838_s15 + $0x78] sm:$0xff]  ;;  %v5021_v34 = vld [vmem:[%s4838_s15 + $0x80] sm:$0xff]  ;;  %v5052_v43 = vld [vmem:[%s4838_s15 + $0x88] sm:$0xff]  ;;  %1420 = vmatpush.msra.mxu2 %v538_v44  ;;  %1266 = vmatpush.msra.mxu0 %v536_v47 }
  0x3c   : > { %v5080_v51 = vld [vmem:[%s4838_s15 + $0x90] sm:$0xff]  ;;  %1497 = vmatpush.msra.mxu3 %v539_v48  ;;  %v537_v52 = vld [vmem:[%s8594_s3 + $0x388] sm:$0xff]  ;;  %v5105_v58 = vld [vmem:[%s4838_s15 + $0x98] sm:$0xff] }
  0x3d   : > { %1343 = vmatpush.msra.mxu1 %v537_v52  ;;  %v530_v55 = vld [vmem:[%s8594_s3 + $0x350] sm:$0xff]  ;;  %v528_v59 = vld [vmem:[%s8594_s3 + $0x340] sm:$0xff]  ;;  %v531_v60 = vld [vmem:[%s8594_s3 + $0x358] sm:$0xff] }
  0x3e   : > { %1421 = vmatpush.msra.mxu2 %v530_v55  ;;  %1267 = vmatpush.msra.mxu0 %v528_v59  ;;  %v529_v61 = vld [vmem:[%s8594_s3 + $0x348] sm:$0xff]  ;;  %v522_v2 = vld [vmem:[%s8594_s3 + $0x310] sm:$0xff]  ;;  %v520_v3 = vld [vmem:[%s8594_s3 + $0x300] sm:$0xff] }
  0x3f   : > { %3896 = vmatmul.msk.f32.gmra.mxu0 %vm588_vm0, %v4852_v13  ;;  %3916 = vmatmul.msk.f32.gmra.mxu1 %vm588_vm0, %v4852_v13  ;;  %v523_v4 = vld [vmem:[%s8594_s3 + $0x318] sm:$0xff]  ;;  %v521_v5 = vld [vmem:[%s8594_s3 + $0x308] sm:$0xff]  ;;  %v514_v10 = vld [vmem:[%s8594_s3 + $0x2d0] sm:$0xff] }
  0x40   : > { %3936 = vmatmul.msk.f32.gmra.mxu2 %vm588_vm0, %v4852_v13  ;;  %3956 = vmatmul.msk.f32.gmra.mxu3 %vm588_vm0, %v4852_v13  ;;  %v512_v11 = vld [vmem:[%s8594_s3 + $0x2c0] sm:$0xff]  ;;  %v515_v12 = vld [vmem:[%s8594_s3 + $0x2d8] sm:$0xff]  ;;  %v506_v35 = vld [vmem:[%s8594_s3 + $0x290] sm:$0xff] }
  0x41   : > { %1498 = vmatpush.msra.mxu3 %v531_v60  ;;  %1344 = vmatpush.msra.mxu1 %v529_v61  ;;  %v504_v40 = vld [vmem:[%s8594_s3 + $0x280] sm:$0xff]  ;;  %v507_v44 = vld [vmem:[%s8594_s3 + $0x298] sm:$0xff]  ;;  %v505_v48 = vld [vmem:[%s8594_s3 + $0x288] sm:$0xff] }
  0x42   : > { %1422 = vmatpush.msra.mxu2 %v522_v2  ;;  %1268 = vmatpush.msra.mxu0 %v520_v3  ;;  %v498_v59 = vld [vmem:[%s8594_s3 + $0x250] sm:$0xff]  ;;  %v496_v2 = vld [vmem:[%s8594_s3 + $0x240] sm:$0xff]  ;;  %v497_v3 = vld [vmem:[%s8594_s3 + $0x248] sm:$0xff] }
  0x43   : > { %1499 = vmatpush.msra.mxu3 %v523_v4  ;;  %1345 = vmatpush.msra.mxu1 %v521_v5 }
  0x44   : > { %1423 = vmatpush.msra.mxu2 %v514_v10  ;;  %1269 = vmatpush.msra.mxu0 %v512_v11 }
  0x45   : > { %1500 = vmatpush.msra.mxu3 %v515_v12  ;;  %v490_v12 = vld [vmem:[%s8594_s3 + $0x210] sm:$0xff] }
  0x46   : > { %1424 = vmatpush.msra.mxu2 %v506_v35  ;;  %1270 = vmatpush.msra.mxu0 %v504_v40  ;;  %v489_v35 = vld [vmem:[%s8594_s3 + $0x208] sm:$0xff] }
  0x47   : > { %3897 = vmatmul.msk.f32.gmra.mxu0 %vm588_vm0, %v4863_v14  ;;  %3917 = vmatmul.msk.f32.gmra.mxu1 %vm588_vm0, %v4863_v14 }
  0x48   : > { %3937 = vmatmul.msk.f32.gmra.mxu2 %vm588_vm0, %v4863_v14  ;;  %3957 = vmatmul.msk.f32.gmra.mxu3 %vm588_vm0, %v4863_v14 }
  0x49   : > { %1501 = vmatpush.msra.mxu3 %v507_v44  ;;  %1425 = vmatpush.msra.mxu2 %v498_v59  ;;  %v482_v59 = vld [vmem:[%s8594_s3 + $0x1d0] sm:$0xff] }
  0x4a   : > { %1271 = vmatpush.msra.mxu0 %v496_v2  ;;  %v480_v2 = vld [vmem:[%s8594_s3 + $0x1c0] sm:$0xff] }
  0x4b   : > { %1426 = vmatpush.msra.mxu2 %v490_v12 }
  0x4d   : > { %1427 = vmatpush.msra.mxu2 %v482_v59 }
  0x4f   : > { %3898 = vmatmul.msk.f32.gmra.mxu0 %vm588_vm0, %v4874_v15  ;;  %3918 = vmatmul.msk.f32.gmra.mxu1 %vm588_vm0, %v4874_v15 }
  0x50   : > { %3938 = vmatmul.msk.f32.gmra.mxu2 %vm588_vm0, %v4874_v15  ;;  %3958 = vmatmul.msk.f32.gmra.mxu3 %vm588_vm0, %v4874_v15 }
  0x57   : > { %3899 = vmatmul.msk.f32.gmra.mxu0 %vm588_vm0, %v4885_v16  ;;  %3919 = vmatmul.msk.f32.gmra.mxu1 %vm588_vm0, %v4885_v16 }
  0x58   : > { %3939 = vmatmul.msk.f32.gmra.mxu2 %vm588_vm0, %v4885_v16  ;;  %3959 = vmatmul.msk.f32.gmra.mxu3 %vm588_vm0, %v4885_v16 }
  0x5f   : > { %3900 = vmatmul.msk.f32.gmra.mxu0 %vm588_vm0, %v4896_v17  ;;  %3920 = vmatmul.msk.f32.gmra.mxu1 %vm588_vm0, %v4896_v17 }
  0x60   : > { %3940 = vmatmul.msk.f32.gmra.mxu2 %vm588_vm0, %v4896_v17  ;;  %3960 = vmatmul.msk.f32.gmra.mxu3 %vm588_vm0, %v4896_v17 }
  0x67   : > { %3901 = vmatmul.msk.f32.gmra.mxu0 %vm588_vm0, %v4907_v18  ;;  %3921 = vmatmul.msk.f32.gmra.mxu1 %vm588_vm0, %v4907_v18 }
  0x68   : > { %3941 = vmatmul.msk.f32.gmra.mxu2 %vm588_vm0, %v4907_v18  ;;  %3961 = vmatmul.msk.f32.gmra.mxu3 %vm588_vm0, %v4907_v18 }
  0x6f   : > { %3902 = vmatmul.msk.f32.gmra.mxu0 %vm588_vm0, %v4918_v23  ;;  %3922 = vmatmul.msk.f32.gmra.mxu1 %vm588_vm0, %v4918_v23 }
  0x70   : > { %3942 = vmatmul.msk.f32.gmra.mxu2 %vm588_vm0, %v4918_v23  ;;  %3962 = vmatmul.msk.f32.gmra.mxu3 %vm588_vm0, %v4918_v23 }
  0x77   : > { %3903 = vmatmul.msk.f32.gmra.mxu0 %vm588_vm0, %v4929_v24  ;;  %3923 = vmatmul.msk.f32.gmra.mxu1 %vm588_vm0, %v4929_v24 }
  0x78   : > { %3943 = vmatmul.msk.f32.gmra.mxu2 %vm588_vm0, %v4929_v24  ;;  %3963 = vmatmul.msk.f32.gmra.mxu3 %vm588_vm0, %v4929_v24 }
  0x7f   : > { %3904 = vmatmul.msk.f32.gmra.mxu0 %vm588_vm0, %v4940_v25  ;;  %3924 = vmatmul.msk.f32.gmra.mxu1 %vm588_vm0, %v4940_v25 }
  0x80   : > { %3944 = vmatmul.msk.f32.gmra.mxu2 %vm588_vm0, %v4940_v25  ;;  %3964 = vmatmul.msk.f32.gmra.mxu3 %vm588_vm0, %v4940_v25 }
  0x87   : > { %3905 = vmatmul.msk.f32.gmra.mxu0 %vm588_vm0, %v4951_v26  ;;  %3925 = vmatmul.msk.f32.gmra.mxu1 %vm588_vm0, %v4951_v26 }
  0x88   : > { %3945 = vmatmul.msk.f32.gmra.mxu2 %vm588_vm0, %v4951_v26  ;;  %3965 = vmatmul.msk.f32.gmra.mxu3 %vm588_vm0, %v4951_v26 }
  0x8f   : > { %3906 = vmatmul.msk.f32.gmra.mxu0 %vm588_vm0, %v4962_v27  ;;  %3926 = vmatmul.msk.f32.gmra.mxu1 %vm588_vm0, %v4962_v27 }
  0x90   : > { %3946 = vmatmul.msk.f32.gmra.mxu2 %vm588_vm0, %v4962_v27  ;;  %3966 = vmatmul.msk.f32.gmra.mxu3 %vm588_vm0, %v4962_v27 }
  0x97   : > { %3907 = vmatmul.msk.f32.gmra.mxu0 %vm588_vm0, %v4973_v28  ;;  %3927 = vmatmul.msk.f32.gmra.mxu1 %vm588_vm0, %v4973_v28 }
  0x98   : > { %3947 = vmatmul.msk.f32.gmra.mxu2 %vm588_vm0, %v4973_v28  ;;  %3967 = vmatmul.msk.f32.gmra.mxu3 %vm588_vm0, %v4973_v28 }
  0x9f   : > { %3908 = vmatmul.msk.f32.gmra.mxu0 %vm588_vm0, %v4984_v29  ;;  %3928 = vmatmul.msk.f32.gmra.mxu1 %vm588_vm0, %v4984_v29 }
  0xa0   : > { %3948 = vmatmul.msk.f32.gmra.mxu2 %vm588_vm0, %v4984_v29  ;;  %3968 = vmatmul.msk.f32.gmra.mxu3 %vm588_vm0, %v4984_v29 }
  0xa7   : > { %3909 = vmatmul.msk.f32.gmra.mxu0 %vm588_vm0, %v4995_v30  ;;  %3929 = vmatmul.msk.f32.gmra.mxu1 %vm588_vm0, %v4995_v30 }
  0xa8   : > { %3949 = vmatmul.msk.f32.gmra.mxu2 %vm588_vm0, %v4995_v30  ;;  %3969 = vmatmul.msk.f32.gmra.mxu3 %vm588_vm0, %v4995_v30 }
  0xaf   : > { %3910 = vmatmul.msk.f32.gmra.mxu0 %vm588_vm0, %v5006_v31  ;;  %3930 = vmatmul.msk.f32.gmra.mxu1 %vm588_vm0, %v5006_v31 }
  0xb0   : > { %3950 = vmatmul.msk.f32.gmra.mxu2 %vm588_vm0, %v5006_v31  ;;  %3970 = vmatmul.msk.f32.gmra.mxu3 %vm588_vm0, %v5006_v31 }
  0xb4   : > { %v5016_v32 = vpop.f32.mrf.mxu0  ;;  %v5018_v33 = vpop.f32.mrf.mxu1 }
  0xb7   : > { %3911 = vmatmul.msk.f32.gmra.mxu0 %vm588_vm0, %v5021_v34  ;;  %3931 = vmatmul.msk.f32.gmra.mxu1 %vm588_vm0, %v5021_v34 }
  0xb8   : > { %3951 = vmatmul.msk.f32.gmra.mxu2 %vm588_vm0, %v5021_v34  ;;  %3971 = vmatmul.msk.f32.gmra.mxu3 %vm588_vm0, %v5021_v34 }
  0xbb   : > { %v5040_v38 = vpop.f32.mrf.mxu2  ;;  %v5042_v39 = vpop.f32.mrf.mxu3 }
  0xbc   : > { %v5047_v41 = vpop.f32.mrf.mxu0  ;;  %v5049_v42 = vpop.f32.mrf.mxu1 }
  0xbf   : > { %3912 = vmatmul.msk.f32.gmra.mxu0 %vm588_vm0, %v5052_v43  ;;  %3932 = vmatmul.msk.f32.gmra.mxu1 %vm588_vm0, %v5052_v43 }
  0xc0   : > { %3952 = vmatmul.msk.f32.gmra.mxu2 %vm588_vm0, %v5052_v43  ;;  %3972 = vmatmul.msk.f32.gmra.mxu3 %vm588_vm0, %v5052_v43 }
  0xc3   : > { %v5065_v45 = vpop.f32.mrf.mxu2  ;;  %v5067_v46 = vpop.f32.mrf.mxu3 }
  0xc4   : > { %v5075_v49 = vpop.f32.mrf.mxu0  ;;  %v5077_v50 = vpop.f32.mrf.mxu1 }
  0xc7   : > { %3913 = vmatmul.msk.f32.gmra.mxu0 %vm588_vm0, %v5080_v51  ;;  %3933 = vmatmul.msk.f32.gmra.mxu1 %vm588_vm0, %v5080_v51 }
  0xc8   : > { %3953 = vmatmul.msk.f32.gmra.mxu2 %vm588_vm0, %v5080_v51  ;;  %3973 = vmatmul.msk.f32.gmra.mxu3 %vm588_vm0, %v5080_v51 }
  0xcb   : > { %v5093_v53 = vpop.f32.mrf.mxu2  ;;  %v5095_v54 = vpop.f32.mrf.mxu3 }
  0xcc   : > { %v5100_v56 = vpop.f32.mrf.mxu0  ;;  %v5102_v57 = vpop.f32.mrf.mxu1 }
  0xcf   : > { %3914 = vmatmul.msk.f32.gmra.mxu0 %vm588_vm0, %v5105_v58  ;;  %3934 = vmatmul.msk.f32.gmra.mxu1 %vm588_vm0, %v5105_v58 }
  0xd0   : > { %3954 = vmatmul.msk.f32.gmra.mxu2 %vm588_vm0, %v5105_v58  ;;  %3974 = vmatmul.msk.f32.gmra.mxu3 %vm588_vm0, %v5105_v58 }
  0xd3   : > { %v5124_v62 = vpop.f32.mrf.mxu2  ;;  %v5126_v63 = vpop.f32.mrf.mxu3 }
  0xd4   : > { %v5128_v0 = vpop.f32.mrf.mxu0  ;;  %v5130_v1 = vpop.f32.mrf.mxu1 }
  0xd7   : > { %3975 = vmatmul.msk.f32.vlgmr.msrb.gmra.mxu0 %vm588_vm0, %v4841_v8  ;;  %3995 = vmatmul.msk.f32.vlgmr.msrb.gmra.mxu1 %vm588_vm0, %v4841_v8 }
  0xd8   : > { %4015 = vmatmul.msk.f32.vlgmr.msrb.gmra.mxu2 %vm588_vm0, %v4841_v8  ;;  %4035 = vmatmul.msk.f32.vlgmr.msrb.gmra.mxu3 %vm588_vm0, %v4841_v8 }
  0xdb   : > { %v5152_v6 = vpop.f32.mrf.mxu2  ;;  %v5154_v7 = vpop.f32.mrf.mxu3 }
  0xdc   : > { %8605 = vst [vmem:[#allocation8_spill] sm:$0xff] %v5154_v7  ;;  %v5156_v8 = vpop.f32.mrf.mxu0  ;;  %v5158_v9 = vpop.f32.mrf.mxu1 }
  0xdd   : > { %8606 = vst [vmem:[#allocation9_spill] sm:$0xff] %v5156_v8 }
  0xde   : > { %8607 = vst [vmem:[#allocation10_spill] sm:$0xff] %v5158_v9 }
  0xdf   : > { %3976 = vmatmul.msk.f32.gmra.mxu0 %vm588_vm0, %v4852_v13  ;;  %3996 = vmatmul.msk.f32.gmra.mxu1 %vm588_vm0, %v4852_v13 }
  0xe0   : > { %4016 = vmatmul.msk.f32.gmra.mxu2 %vm588_vm0, %v4852_v13  ;;  %4036 = vmatmul.msk.f32.gmra.mxu3 %vm588_vm0, %v4852_v13  ;;  %v513_v13 = vld [vmem:[%s8594_s3 + $0x2c8] sm:$0xff] }
  0xe1   : > { %1346 = vmatpush.msra.mxu1 %v513_v13  ;;  %v491_v13 = vld [vmem:[%s8594_s3 + $0x218] sm:$0xff] }
  0xe3   : > { %v5177_v19 = vpop.f32.mrf.mxu2  ;;  %v5179_v20 = vpop.f32.mrf.mxu3  ;;  %1347 = vmatpush.msra.mxu1 %v505_v48 }
  0xe4   : > { %8608 = vst [vmem:[#allocation11_spill] sm:$0xff] %v5177_v19  ;;  %v5184_v21 = vpop.f32.mrf.mxu0  ;;  %v5186_v22 = vpop.f32.mrf.mxu1  ;;  %v3047_v19 = vld [vmem:[%s8597_s6 + $0xe0] sm:$0xff] }
  0xe5   : > { %8609 = vst [vmem:[#allocation12_spill] sm:$0xff] %v5179_v20  ;;  %1348 = vmatpush.msra.mxu1 %v497_v3 }
  0xe6   : > { %8610 = vst [vmem:[#allocation13_spill] sm:$0xff] %v5184_v21 }
  0xe7   : > { %8611 = vst [vmem:[#allocation14_spill] sm:$0xff] %v5186_v22  ;;  %3977 = vmatmul.msk.f32.gmra.mxu0 %vm588_vm0, %v4863_v14  ;;  %3997 = vmatmul.msk.f32.gmra.mxu1 %vm588_vm0, %v4863_v14 }
  0xe8   : > { %4017 = vmatmul.msk.f32.gmra.mxu2 %vm588_vm0, %v4863_v14  ;;  %4037 = vmatmul.msk.f32.gmra.mxu3 %vm588_vm0, %v4863_v14 }
  0xe9   : > { %1349 = vmatpush.msra.mxu1 %v489_v35  ;;  %v474_v35 = vld [vmem:[%s8594_s3 + $0x190] sm:$0xff] }
  0xea   : > { %1428 = vmatpush.msra.mxu2 %v474_v35  ;;  %v473_v35 = vld [vmem:[%s8594_s3 + $0x188] sm:$0xff] }
  0xeb   : > { %v5199_v36 = vpop.f32.mrf.mxu2  ;;  %v5201_v37 = vpop.f32.mrf.mxu3 }
  0xec   : > { %8612 = vst [vmem:[#allocation15_spill] sm:$0xff] %v5199_v36  ;;  %v5209_v47 = vpop.f32.mrf.mxu0  ;;  %v5211_v14 = vpop.f32.mrf.mxu1 }
  0xed   : > { %8613 = vst [vmem:[#allocation16_spill] sm:$0xff] %v5201_v37 }
  0xee   : > { %8614 = vst [vmem:[#allocation17_spill] sm:$0xff] %v5209_v47 }
  0xef   : > { %8615 = vst [vmem:[#allocation18_spill] sm:$0xff] %v5211_v14  ;;  %3978 = vmatmul.msk.f32.gmra.mxu0 %vm588_vm0, %v4874_v15  ;;  %3998 = vmatmul.msk.f32.gmra.mxu1 %vm588_vm0, %v4874_v15 }
  0xf0   : > { %4018 = vmatmul.msk.f32.gmra.mxu2 %vm588_vm0, %v4874_v15  ;;  %4038 = vmatmul.msk.f32.gmra.mxu3 %vm588_vm0, %v4874_v15  ;;  %v499_v15 = vld [vmem:[%s8594_s3 + $0x258] sm:$0xff] }
  0xf1   : > { %1502 = vmatpush.msra.mxu3 %v499_v15  ;;  %v483_v15 = vld [vmem:[%s8594_s3 + $0x1d8] sm:$0xff] }
  0xf3   : > { %v5224_v52 = vpop.f32.mrf.mxu2  ;;  %v5226_v55 = vpop.f32.mrf.mxu3  ;;  %1503 = vmatpush.msra.mxu3 %v491_v13 }
  0xf4   : > { %8616 = vst [vmem:[#allocation19_spill] sm:$0xff] %v5224_v52  ;;  %v5231_v60 = vpop.f32.mrf.mxu0  ;;  %v5233_v61 = vpop.f32.mrf.mxu1  ;;  %v3033_v52 = vld [vmem:[%s8597_s6 + $0x70] sm:$0xff] }
  0xf5   : > { %8617 = vst [vmem:[#allocation20_spill] sm:$0xff] %v5226_v55  ;;  %1504 = vmatpush.msra.mxu3 %v483_v15  ;;  %v472_v15 = vld [vmem:[%s8594_s3 + $0x180] sm:$0xff] }
  0xf6   : > { %8618 = vst [vmem:[#allocation21_spill] sm:$0xff] %v5231_v60 }
  0xf7   : > { %8619 = vst [vmem:[#allocation22_spill] sm:$0xff] %v5233_v61  ;;  %3979 = vmatmul.msk.f32.gmra.mxu0 %vm588_vm0, %v4885_v16  ;;  %3999 = vmatmul.msk.f32.gmra.mxu1 %vm588_vm0, %v4885_v16 }
  0xf8   : > { %4019 = vmatmul.msk.f32.gmra.mxu2 %vm588_vm0, %v4885_v16  ;;  %4039 = vmatmul.msk.f32.gmra.mxu3 %vm588_vm0, %v4885_v16  ;;  %v488_v16 = vld [vmem:[%s8594_s3 + $0x200] sm:$0xff] }
  0xf9   : > { %1272 = vmatpush.msra.mxu0 %v488_v16 }
  0xfb   : > { %v5252_v4 = vpop.f32.mrf.mxu2  ;;  %v5254_v5 = vpop.f32.mrf.mxu3  ;;  %1273 = vmatpush.msra.mxu0 %v480_v2 }
  0xfc   : > { %8620 = vst [vmem:[#allocation23_spill] sm:$0xff] %v5252_v4  ;;  %v5256_v10 = vpop.f32.mrf.mxu0  ;;  %v5258_v11 = vpop.f32.mrf.mxu1 }
  0xfd   : > { %8621 = vst [vmem:[#allocation24_spill] sm:$0xff] %v5254_v5  ;;  %1274 = vmatpush.msra.mxu0 %v472_v15 }
  0xfe   : > { %8622 = vst [vmem:[#allocation25_spill] sm:$0xff] %v5256_v10 }
  0xff   : > { %8623 = vst [vmem:[#allocation26_spill] sm:$0xff] %v5258_v11  ;;  %3980 = vmatmul.msk.f32.gmra.mxu0 %vm588_vm0, %v4896_v17  ;;  %4000 = vmatmul.msk.f32.gmra.mxu1 %vm588_vm0, %v4896_v17 }
 0x100   : > { %4020 = vmatmul.msk.f32.gmra.mxu2 %vm588_vm0, %v4896_v17  ;;  %4040 = vmatmul.msk.f32.gmra.mxu3 %vm588_vm0, %v4896_v17 }
 0x103   : > { %v5280_v40 = vpop.f32.mrf.mxu2  ;;  %v5282_v44 = vpop.f32.mrf.mxu3 }
 0x104   : > { %8624 = vst [vmem:[#allocation27_spill] sm:$0xff] %v5280_v40  ;;  %v5284_v17 = vpop.f32.mrf.mxu0  ;;  %v5286_v48 = vpop.f32.mrf.mxu1 }
 0x105   : > { %8625 = vst [vmem:[#allocation28_spill] sm:$0xff] %v5282_v44 }
 0x106   : > { %8626 = vst [vmem:[#allocation29_spill] sm:$0xff] %v5284_v17  ;;  %v447_v17 = vld [vmem:[%s8594_s3 + $0xb8] sm:$0xff] }
 0x107   : > { %8627 = vst [vmem:[#allocation30_spill] sm:$0xff] %v5286_v48  ;;  %3981 = vmatmul.msk.f32.gmra.mxu0 %vm588_vm0, %v4907_v18  ;;  %4001 = vmatmul.msk.f32.gmra.mxu1 %vm588_vm0, %v4907_v18  ;;  %v396_v48 = vld [vmem:[%s4820_s18 + $0x60] sm:$0xff] }
 0x108   : > { %4021 = vmatmul.msk.f32.gmra.mxu2 %vm588_vm0, %v4907_v18  ;;  %4041 = vmatmul.msk.f32.gmra.mxu3 %vm588_vm0, %v4907_v18  ;;  %v481_v18 = vld [vmem:[%s8594_s3 + $0x1c8] sm:$0xff] }
 0x109   : > { %1350 = vmatpush.msra.mxu1 %v481_v18  ;;  %v475_v18 = vld [vmem:[%s8594_s3 + $0x198] sm:$0xff] }
 0x10a   : > { %1505 = vmatpush.msra.mxu3 %v475_v18  ;;  %v466_v18 = vld [vmem:[%s8594_s3 + $0x150] sm:$0xff] }
 0x10b   : > { %v5305_v3 = vpop.f32.mrf.mxu2  ;;  %v5307_v12 = vpop.f32.mrf.mxu3  ;;  %1351 = vmatpush.msra.mxu1 %v473_v35  ;;  %1429 = vmatpush.msra.mxu2 %v466_v18  ;;  %v465_v18 = vld [vmem:[%s8594_s3 + $0x148] sm:$0xff] }
 0x10c   : > { %8628 = vst [vmem:[#allocation31_spill] sm:$0xff] %v5305_v3  ;;  %v5312_v16 = vpop.f32.mrf.mxu0  ;;  %v5314_v13 = vpop.f32.mrf.mxu1  ;;  %v376_v3 = vld [vmem:[%s5629_s27 + $0x60] sm:$0xff] }
 0x10d   : > { %8629 = vst [vmem:[#allocation32_spill] sm:$0xff] %v5307_v12  ;;  %1352 = vmatpush.msra.mxu1 %v465_v18  ;;  %v457_v18 = vld [vmem:[%s8594_s3 + $0x108] sm:$0xff] }
 0x10e   : > { %8630 = vst [vmem:[#allocation33_spill] sm:$0xff] %v5312_v16  ;;  %v395_v16 = vld [vmem:[%s4820_s18 + $0x58] sm:$0xff] }
 0x10f   : > { %8631 = vst [vmem:[#allocation34_spill] sm:$0xff] %v5314_v13  ;;  %3982 = vmatmul.msk.f32.gmra.mxu0 %vm588_vm0, %v4918_v23  ;;  %4002 = vmatmul.msk.f32.gmra.mxu1 %vm588_vm0, %v4918_v23 }
 0x110   : > { %4022 = vmatmul.msk.f32.gmra.mxu2 %vm588_vm0, %v4918_v23  ;;  %4042 = vmatmul.msk.f32.gmra.mxu3 %vm588_vm0, %v4918_v23 }
 0x111   : > { %1353 = vmatpush.msra.mxu1 %v457_v18  ;;  %v451_v18 = vld [vmem:[%s8594_s3 + $0xd8] sm:$0xff] }
 0x113   : > { %v5327_v59 = vpop.f32.mrf.mxu2  ;;  %v5329_v2 = vpop.f32.mrf.mxu3 }
 0x114   : > { %8632 = vst [vmem:[#allocation35_spill] sm:$0xff] %v5327_v59  ;;  %v5337_v13 = vpop.f32.mrf.mxu0  ;;  %v5339_v23 = vpop.f32.mrf.mxu1  ;;  %v462_v59 = vld [vmem:[%s8594_s3 + $0x130] sm:$0xff] }
 0x115   : > { %8633 = vst [vmem:[#allocation36_spill] sm:$0xff] %v5329_v2  ;;  %v464_v2 = vld [vmem:[%s8594_s3 + $0x140] sm:$0xff] }
 0x116   : > { %8634 = vst [vmem:[#allocation37_spill] sm:$0xff] %v5337_v13  ;;  %1275 = vmatpush.msra.mxu0 %v464_v2 }
 0x117   : > { %8635 = vst [vmem:[#allocation38_spill] sm:$0xff] %v5339_v23  ;;  %3983 = vmatmul.msk.f32.gmra.mxu0 %vm588_vm0, %v4929_v24  ;;  %4003 = vmatmul.msk.f32.gmra.mxu1 %vm588_vm0, %v4929_v24 }
 0x118   : > { %4023 = vmatmul.msk.f32.gmra.mxu2 %vm588_vm0, %v4929_v24  ;;  %4043 = vmatmul.msk.f32.gmra.mxu3 %vm588_vm0, %v4929_v24  ;;  %v467_v24 = vld [vmem:[%s8594_s3 + $0x158] sm:$0xff] }
 0x119   : > { %1506 = vmatpush.msra.mxu3 %v467_v24 }
 0x11b   : > { %v5352_v23 = vpop.f32.mrf.mxu2  ;;  %v5354_v15 = vpop.f32.mrf.mxu3 }
 0x11c   : > { %8636 = vst [vmem:[#allocation39_spill] sm:$0xff] %v5352_v23  ;;  %v5359_v35 = vpop.f32.mrf.mxu0  ;;  %v5361_v13 = vpop.f32.mrf.mxu1  ;;  %v391_v23 = vld [vmem:[%s4820_s18 + $0x38] sm:$0xff] }
 0x11d   : > { %8637 = vst [vmem:[#allocation40_spill] sm:$0xff] %v5354_v15  ;;  %v458_v15 = vld [vmem:[%s8594_s3 + $0x110] sm:$0xff] }
 0x11e   : > { %8638 = vst [vmem:[#allocation41_spill] sm:$0xff] %v5359_v35  ;;  %1430 = vmatpush.msra.mxu2 %v458_v15  ;;  %v459_v15 = vld [vmem:[%s8594_s3 + $0x118] sm:$0xff] }
 0x11f   : > { %8639 = vst [vmem:[#allocation42_spill] sm:$0xff] %v5361_v13  ;;  %3984 = vmatmul.msk.f32.gmra.mxu0 %vm588_vm0, %v4940_v25  ;;  %4004 = vmatmul.msk.f32.gmra.mxu1 %vm588_vm0, %v4940_v25 }
 0x120   : > { %4024 = vmatmul.msk.f32.gmra.mxu2 %vm588_vm0, %v4940_v25  ;;  %4044 = vmatmul.msk.f32.gmra.mxu3 %vm588_vm0, %v4940_v25  ;;  %v456_v25 = vld [vmem:[%s8594_s3 + $0x100] sm:$0xff] }
 0x121   : > { %1276 = vmatpush.msra.mxu0 %v456_v25  ;;  %1507 = vmatpush.msra.mxu3 %v459_v15  ;;  %v450_v25 = vld [vmem:[%s8594_s3 + $0xd0] sm:$0xff]  ;;  %v448_v15 = vld [vmem:[%s8594_s3 + $0xc0] sm:$0xff] }
 0x122   : > { %1431 = vmatpush.msra.mxu2 %v450_v25  ;;  %v442_v25 = vld [vmem:[%s8594_s3 + $0x90] sm:$0xff] }
 0x123   : > { %v5380_v13 = vpop.f32.mrf.mxu2  ;;  %v5382_v2 = vpop.f32.mrf.mxu3  ;;  %1277 = vmatpush.msra.mxu0 %v448_v15  ;;  %1508 = vmatpush.msra.mxu3 %v451_v18 }
 0x124   : > { %8640 = vst [vmem:[#allocation43_spill] sm:$0xff] %v5380_v13  ;;  %v5384_v24 = vpop.f32.mrf.mxu0  ;;  %v5386_v35 = vpop.f32.mrf.mxu1  ;;  %1432 = vmatpush.msra.mxu2 %v442_v25  ;;  %v441_v25 = vld [vmem:[%s8594_s3 + $0x88] sm:$0xff]  ;;  %v371_v13 = vld [vmem:[%s5629_s27 + $0x38] sm:$0xff] }
 0x125   : > { %8641 = vst [vmem:[#allocation44_spill] sm:$0xff] %v5382_v2 }
 0x126   : > { %8642 = vst [vmem:[#allocation45_spill] sm:$0xff] %v5384_v24 }
 0x127   : > { %8643 = vst [vmem:[#allocation46_spill] sm:$0xff] %v5386_v35  ;;  %3985 = vmatmul.msk.f32.gmra.mxu0 %vm588_vm0, %v4951_v26  ;;  %4005 = vmatmul.msk.f32.gmra.mxu1 %vm588_vm0, %v4951_v26 }
 0x128   : > { %4025 = vmatmul.msk.f32.gmra.mxu2 %vm588_vm0, %v4951_v26  ;;  %4045 = vmatmul.msk.f32.gmra.mxu3 %vm588_vm0, %v4951_v26 }
 0x12b   : > { %v5408_v35 = vpop.f32.mrf.mxu2  ;;  %v5410_v24 = vpop.f32.mrf.mxu3 }
 0x12c   : > { %8644 = vst [vmem:[#allocation47_spill] sm:$0xff] %v5408_v35  ;;  %v5412_v26 = vpop.f32.mrf.mxu0  ;;  %v5414_v2 = vpop.f32.mrf.mxu1 }
 0x12d   : > { %8645 = vst [vmem:[#allocation48_spill] sm:$0xff] %v5410_v24 }
 0x12e   : > { %8646 = vst [vmem:[#allocation49_spill] sm:$0xff] %v5412_v26 }
 0x12f   : > { %8647 = vst [vmem:[#allocation50_spill] sm:$0xff] %v5414_v2  ;;  %3986 = vmatmul.msk.f32.gmra.mxu0 %vm588_vm0, %v4962_v27  ;;  %4006 = vmatmul.msk.f32.gmra.mxu1 %vm588_vm0, %v4962_v27 }
 0x130   : > { %4026 = vmatmul.msk.f32.gmra.mxu2 %vm588_vm0, %v4962_v27  ;;  %4046 = vmatmul.msk.f32.gmra.mxu3 %vm588_vm0, %v4962_v27  ;;  %v449_v27 = vld [vmem:[%s8594_s3 + $0xc8] sm:$0xff] }
 0x131   : > { %1354 = vmatpush.msra.mxu1 %v449_v27  ;;  %v440_v27 = vld [vmem:[%s8594_s3 + $0x80] sm:$0xff] }
 0x132   : > { %1278 = vmatpush.msra.mxu0 %v440_v27  ;;  %v434_v27 = vld [vmem:[%s8594_s3 + $0x50] sm:$0xff] }
 0x133   : > { %v5433_v2 = vpop.f32.mrf.mxu2  ;;  %v5435_v26 = vpop.f32.mrf.mxu3  ;;  %1355 = vmatpush.msra.mxu1 %v441_v25  ;;  %1433 = vmatpush.msra.mxu2 %v434_v27  ;;  %v433_v27 = vld [vmem:[%s8594_s3 + $0x48] sm:$0xff] }
 0x134   : > { %8648 = vst [vmem:[#allocation51_spill] sm:$0xff] %v5433_v2  ;;  %v5440_v24 = vpop.f32.mrf.mxu0  ;;  %v5442_v35 = vpop.f32.mrf.mxu1 }
 0x135   : > { %8649 = vst [vmem:[#allocation52_spill] sm:$0xff] %v5435_v26  ;;  %1356 = vmatpush.msra.mxu1 %v433_v27  ;;  %v425_v27 = vld [vmem:[%s8594_s3 + $0x8] sm:$0xff]  ;;  %v390_v26 = vld [vmem:[%s4820_s18 + $0x30] sm:$0xff] }
 0x136   : > { %8650 = vst [vmem:[#allocation53_spill] sm:$0xff] %v5440_v24 }
 0x137   : > { %8651 = vst [vmem:[#allocation54_spill] sm:$0xff] %v5442_v35  ;;  %3987 = vmatmul.msk.f32.gmra.mxu0 %vm588_vm0, %v4973_v28  ;;  %4007 = vmatmul.msk.f32.gmra.mxu1 %vm588_vm0, %v4973_v28  ;;  %v443_v35 = vld [vmem:[%s8594_s3 + $0x98] sm:$0xff] }
 0x138   : > { %4027 = vmatmul.msk.f32.gmra.mxu2 %vm588_vm0, %v4973_v28  ;;  %4047 = vmatmul.msk.f32.gmra.mxu3 %vm588_vm0, %v4973_v28 }
 0x139   : > { %1509 = vmatpush.msra.mxu3 %v443_v35  ;;  %1357 = vmatpush.msra.mxu1 %v425_v27  ;;  %v551_v27 = vld [vmem:[%s8594_s3 + $0x3f8] sm:$0xff] }
 0x13b   : > { %v5455_v15 = vpop.f32.mrf.mxu2  ;;  %v5457_v18 = vpop.f32.mrf.mxu3 }
 0x13c   : > { %8652 = vst [vmem:[#allocation55_spill] sm:$0xff] %v5455_v15  ;;  %v5465_v24 = vpop.f32.mrf.mxu0  ;;  %v5467_v28 = vpop.f32.mrf.mxu1  ;;  %v494_v15 = vld [vmem:[%s8594_s3 + $0x230] sm:$0xff] }
 0x13d   : > { %8653 = vst [vmem:[#allocation56_spill] sm:$0xff] %v5457_v18  ;;  %v432_v18 = vld [vmem:[%s8594_s3 + $0x40] sm:$0xff] }
 0x13e   : > { %8654 = vst [vmem:[#allocation57_spill] sm:$0xff] %v5465_v24  ;;  %1279 = vmatpush.msra.mxu0 %v432_v18 }
 0x13f   : > { %8655 = vst [vmem:[#allocation58_spill] sm:$0xff] %v5467_v28  ;;  %3988 = vmatmul.msk.f32.gmra.mxu0 %vm588_vm0, %v4984_v29  ;;  %4008 = vmatmul.msk.f32.gmra.mxu1 %vm588_vm0, %v4984_v29 }
 0x140   : > { %4028 = vmatmul.msk.f32.gmra.mxu2 %vm588_vm0, %v4984_v29  ;;  %4048 = vmatmul.msk.f32.gmra.mxu3 %vm588_vm0, %v4984_v29  ;;  %v435_v29 = vld [vmem:[%s8594_s3 + $0x58] sm:$0xff] }
 0x141   : > { %1510 = vmatpush.msra.mxu3 %v435_v29 }
 0x143   : > { %v5480_v28 = vpop.f32.mrf.mxu2  ;;  %v5482_v35 = vpop.f32.mrf.mxu3 }
 0x144   : > { %8656 = vst [vmem:[#allocation59_spill] sm:$0xff] %v5480_v28  ;;  %v5487_v25 = vpop.f32.mrf.mxu0  ;;  %v5489_v24 = vpop.f32.mrf.mxu1  ;;  %v386_v28 = vld [vmem:[%s4820_s18 + $0x10] sm:$0xff] }
 0x145   : > { %8657 = vst [vmem:[#allocation60_spill] sm:$0xff] %v5482_v35  ;;  %v426_v35 = vld [vmem:[%s8594_s3 + $0x10] sm:$0xff] }
 0x146   : > { %8658 = vst [vmem:[#allocation61_spill] sm:$0xff] %v5487_v25  ;;  %1434 = vmatpush.msra.mxu2 %v426_v35  ;;  %v427_v35 = vld [vmem:[%s8594_s3 + $0x18] sm:$0xff] }
 0x147   : > { %8659 = vst [vmem:[#allocation62_spill] sm:$0xff] %v5489_v24  ;;  %3989 = vmatmul.msk.f32.gmra.mxu0 %vm588_vm0, %v4995_v30  ;;  %4009 = vmatmul.msk.f32.gmra.mxu1 %vm588_vm0, %v4995_v30 }
 0x148   : > { %4029 = vmatmul.msk.f32.gmra.mxu2 %vm588_vm0, %v4995_v30  ;;  %4049 = vmatmul.msk.f32.gmra.mxu3 %vm588_vm0, %v4995_v30  ;;  %v424_v30 = vld [vmem:[%s8594_s3] sm:$0xff] }
 0x149   : > { %1280 = vmatpush.msra.mxu0 %v424_v30  ;;  %1511 = vmatpush.msra.mxu3 %v427_v35  ;;  %v550_v30 = vld [vmem:[%s8594_s3 + $0x3f0] sm:$0xff]  ;;  %v548_v35 = vld [vmem:[%s8594_s3 + $0x3e0] sm:$0xff] }
 0x14a   : > { %1727 = vmatpush.msrb.mxu2 %v550_v30  ;;  %v542_v30 = vld [vmem:[%s8594_s3 + $0x3b0] sm:$0xff] }
 0x14b   : > { %v5508_v24 = vpop.f32.mrf.mxu2  ;;  %v5510_v18 = vpop.f32.mrf.mxu3  ;;  %1573 = vmatpush.msrb.mxu0 %v548_v35  ;;  %1804 = vmatpush.msrb.mxu3 %v551_v27 }
 0x14c   : > { %8660 = vst [vmem:[#allocation63_spill] sm:$0xff] %v5508_v24  ;;  %v5512_v29 = vpop.f32.mrf.mxu0  ;;  %v5514_v25 = vpop.f32.mrf.mxu1  ;;  %1728 = vmatpush.msrb.mxu2 %v542_v30  ;;  %v541_v30 = vld [vmem:[%s8594_s3 + $0x3a8] sm:$0xff]  ;;  %v366_v24 = vld [vmem:[%s5629_s27 + $0x10] sm:$0xff] }
 0x14d   : > { %8661 = vst [vmem:[#allocation64_spill] sm:$0xff] %v5510_v18 }
 0x14e   : > { %8662 = vst [vmem:[#allocation65_spill] sm:$0xff] %v5512_v29 }
 0x14f   : > { %8663 = vst [vmem:[#allocation66_spill] sm:$0xff] %v5514_v25  ;;  %3990 = vmatmul.msk.f32.gmra.mxu0 %vm588_vm0, %v5006_v31  ;;  %4010 = vmatmul.msk.f32.gmra.mxu1 %vm588_vm0, %v5006_v31 }
 0x150   : > { %4030 = vmatmul.msk.f32.gmra.mxu2 %vm588_vm0, %v5006_v31  ;;  %4050 = vmatmul.msk.f32.gmra.mxu3 %vm588_vm0, %v5006_v31 }
 0x153   : > { %v5536_v25 = vpop.f32.mrf.mxu2  ;;  %v5538_v29 = vpop.f32.mrf.mxu3 }
 0x154   : > { %8664 = vst [vmem:[#allocation67_spill] sm:$0xff] %v5536_v25  ;;  %v5540_v31 = vpop.f32.mrf.mxu0  ;;  %v5542_v18 = vpop.f32.mrf.mxu1 }
 0x155   : > { %8665 = vst [vmem:[#allocation68_spill] sm:$0xff] %v5538_v29 }
 0x156   : > { %8666 = vst [vmem:[#allocation69_spill] sm:$0xff] %v5540_v31 }
 0x157   : > { %8667 = vst [vmem:[#allocation70_spill] sm:$0xff] %v5542_v18  ;;  %3991 = vmatmul.msk.f32.gmra.mxu0 %vm588_vm0, %v5021_v34  ;;  %4011 = vmatmul.msk.f32.gmra.mxu1 %vm588_vm0, %v5021_v34 }
 0x158   : > { %4031 = vmatmul.msk.f32.gmra.mxu2 %vm588_vm0, %v5021_v34  ;;  %4051 = vmatmul.msk.f32.gmra.mxu3 %vm588_vm0, %v5021_v34  ;;  %v549_v34 = vld [vmem:[%s8594_s3 + $0x3e8] sm:$0xff] }
 0x159   : > { %1650 = vmatpush.msrb.mxu1 %v549_v34  ;;  %v540_v34 = vld [vmem:[%s8594_s3 + $0x3a0] sm:$0xff] }
 0x15a   : > { %1574 = vmatpush.msrb.mxu0 %v540_v34 }
 0x15b   : > { %v5561_v29 = vpop.f32.mrf.mxu2  ;;  %v5563_v25 = vpop.f32.mrf.mxu3  ;;  %1651 = vmatpush.msrb.mxu1 %v541_v30  ;;  %v534_v30 = vld [vmem:[%s8594_s3 + $0x370] sm:$0xff] }
 0x15c   : > { %8668 = vst [vmem:[#allocation71_spill] sm:$0xff] %v5561_v29  ;;  %v5568_v18 = vpop.f32.mrf.mxu0  ;;  %v5570_v31 = vpop.f32.mrf.mxu1  ;;  %1729 = vmatpush.msrb.mxu2 %v534_v30  ;;  %v364_v30 = vld [vmem:[%s5629_s27] sm:$0xff] }
 0x15d   : > { %8669 = vst [vmem:[#allocation72_spill] sm:$0xff] %v5563_v25  ;;  %v385_v25 = vld [vmem:[%s4820_s18 + $0x8] sm:$0xff] }
 0x15e   : > { %8670 = vst [vmem:[#allocation73_spill] sm:$0xff] %v5568_v18 }
 0x15f   : > { %8671 = vst [vmem:[#allocation74_spill] sm:$0xff] %v5570_v31  ;;  %3992 = vmatmul.msk.f32.gmra.mxu0 %vm588_vm0, %v5052_v43  ;;  %4012 = vmatmul.msk.f32.gmra.mxu1 %vm588_vm0, %v5052_v43  ;;  %v543_v31 = vld [vmem:[%s8594_s3 + $0x3b8] sm:$0xff] }
 0x160   : > { %4032 = vmatmul.msk.f32.gmra.mxu2 %vm588_vm0, %v5052_v43  ;;  %4052 = vmatmul.msk.f32.gmra.mxu3 %vm588_vm0, %v5052_v43 }
 0x161   : > { %1805 = vmatpush.msrb.mxu3 %v543_v31 }
 0x163   : > { %v5583_v35 = vpop.f32.mrf.mxu2  ;;  %v5585_v27 = vpop.f32.mrf.mxu3 }
 0x164   : > { %8672 = vst [vmem:[#allocation75_spill] sm:$0xff] %v5583_v35  ;;  %v5593_v18 = vpop.f32.mrf.mxu0  ;;  %v5595_v43 = vpop.f32.mrf.mxu1 }
 0x165   : > { %8673 = vst [vmem:[#allocation76_spill] sm:$0xff] %v5585_v27  ;;  %v532_v27 = vld [vmem:[%s8594_s3 + $0x360] sm:$0xff] }
 0x166   : > { %8674 = vst [vmem:[#allocation77_spill] sm:$0xff] %v5593_v18  ;;  %1575 = vmatpush.msrb.mxu0 %v532_v27  ;;  %v533_v27 = vld [vmem:[%s8594_s3 + $0x368] sm:$0xff] }
 0x167   : > { %8675 = vst [vmem:[#allocation78_spill] sm:$0xff] %v5595_v43  ;;  %3993 = vmatmul.msk.f32.gmra.mxu0 %vm588_vm0, %v5080_v51  ;;  %4013 = vmatmul.msk.f32.gmra.mxu1 %vm588_vm0, %v5080_v51 }
 0x168   : > { %4033 = vmatmul.msk.f32.gmra.mxu2 %vm588_vm0, %v5080_v51  ;;  %4053 = vmatmul.msk.f32.gmra.mxu3 %vm588_vm0, %v5080_v51  ;;  %v535_v51 = vld [vmem:[%s8594_s3 + $0x378] sm:$0xff] }
 0x169   : > { %1806 = vmatpush.msrb.mxu3 %v535_v51  ;;  %1652 = vmatpush.msrb.mxu1 %v533_v27  ;;  %v365_v27 = vld [vmem:[%s5629_s27 + $0x8] sm:$0xff] }
 0x16b   : > { %v5608_v34 = vpop.f32.mrf.mxu2  ;;  %v5610_v31 = vpop.f32.mrf.mxu3 }
 0x16c   : > { %8676 = vst [vmem:[#allocation79_spill] sm:$0xff] %v5608_v34  ;;  %v5615_v43 = vpop.f32.mrf.mxu0  ;;  %v5617_v18 = vpop.f32.mrf.mxu1 }
 0x16d   : > { %8677 = vst [vmem:[#allocation80_spill] sm:$0xff] %v5610_v31 }
 0x16e   : > { %8678 = vst [vmem:[#allocation81_spill] sm:$0xff] %v5615_v43 }
 0x16f   : > { %8679 = vst [vmem:[#allocation82_spill] sm:$0xff] %v5617_v18  ;;  %3994 = vmatmul.msk.f32.gmra.mxu0 %vm588_vm0, %v5105_v58  ;;  %4014 = vmatmul.msk.f32.gmra.mxu1 %vm588_vm0, %v5105_v58  ;;  %v384_v18 = vld [vmem:[%s4820_s18] sm:$0xff] }
 0x170   : > { %4034 = vmatmul.msk.f32.gmra.mxu2 %vm588_vm0, %v5105_v58  ;;  %4054 = vmatmul.msk.f32.gmra.mxu3 %vm588_vm0, %v5105_v58  ;;  %v5648_v31 = vmul.f32 %v384_v18, %v364_v30  ;;  %v526_v58 = vld [vmem:[%s8594_s3 + $0x330] sm:$0xff]  ;;  %v524_v18 = vld [vmem:[%s8594_s3 + $0x320] sm:$0xff]  ;;  %v527_v30 = vld [vmem:[%s8594_s3 + $0x338] sm:$0xff] }
 0x171   : > { %1730 = vmatpush.msrb.mxu2 %v526_v58  ;;  %v525_v58 = vld [vmem:[%s8594_s3 + $0x328] sm:$0xff]  ;;  %1576 = vmatpush.msrb.mxu0 %v524_v18  ;;  %v518_v18 = vld [vmem:[%s8594_s3 + $0x2f0] sm:$0xff] }
 0x172   : > { %1807 = vmatpush.msrb.mxu3 %v527_v30  ;;  %1653 = vmatpush.msrb.mxu1 %v525_v58 }
 0x173   : > { %v5644_v51 = vpop.f32.mrf.mxu2  ;;  %v5646_v43 = vpop.f32.mrf.mxu3  ;;  %1731 = vmatpush.msrb.mxu2 %v518_v18  ;;  %v367_v18 = vld [vmem:[%s5629_s27 + $0x18] sm:$0xff] }
 0x174   : > { %8680 = vst [vmem:[#allocation83_spill] sm:$0xff] %v5644_v51  ;;  %v5650_v34 = vpop.f32.mrf.mxu0  ;;  %v5652_v35 = vpop.f32.mrf.mxu1 }
 0x175   : > { %8681 = vst [vmem:[#allocation84_spill] sm:$0xff] %v5646_v43  ;;  %v5676_v43 = vmul.f32 %v385_v25, %v365_v27  ;;  %v516_v25 = vld [vmem:[%s8594_s3 + $0x2e0] sm:$0xff]  ;;  %v519_v27 = vld [vmem:[%s8594_s3 + $0x2f8] sm:$0xff] }
 0x176   : > { %8682 = vst [vmem:[#allocation85_spill] sm:$0xff] %v5650_v34  ;;  %1577 = vmatpush.msrb.mxu0 %v516_v25  ;;  %1808 = vmatpush.msrb.mxu3 %v519_v27 }
 0x177   : > { %8683 = vst [vmem:[#allocation86_spill] sm:$0xff] %v5652_v35  ;;  %1281 = vmatmul.f32.vlgmr.msra.gmra.mxu0 %v5648_v31  ;;  %1358 = vmatmul.f32.vlgmr.msra.gmra.mxu1 %v5648_v31 }
 0x178   : > { %1435 = vmatmul.f32.vlgmr.msra.gmra.mxu2 %v5648_v31  ;;  %1512 = vmatmul.f32.vlgmr.msra.gmra.mxu3 %v5648_v31 }
 0x17b   : > { %v5672_v35 = vpop.f32.mrf.mxu2  ;;  %v5674_v34 = vpop.f32.mrf.mxu3 }
 0x17c   : > { %8684 = vst [vmem:[#allocation87_spill] sm:$0xff] %v5672_v35  ;;  %v5678_v51 = vpop.f32.mrf.mxu0  ;;  %v5680_v29 = vpop.f32.mrf.mxu1 }
 0x17d   : > { %8685 = vst [vmem:[#allocation88_spill] sm:$0xff] %v5674_v34 }
 0x17e   : > { %8686 = vst [vmem:[#allocation89_spill] sm:$0xff] %v5678_v51  ;;  %v517_v51 = vld [vmem:[%s8594_s3 + $0x2e8] sm:$0xff] }
 0x17f   : > { %8687 = vst [vmem:[#allocation90_spill] sm:$0xff] %v5680_v29  ;;  %1284 = vmatmul.f32.gmra.mxu0 %v5676_v43  ;;  %1361 = vmatmul.f32.gmra.mxu1 %v5676_v43  ;;  %v5701_v29 = vmul.f32 %v386_v28, %v366_v24  ;;  %v387_v24 = vld [vmem:[%s4820_s18 + $0x18] sm:$0xff]  ;;  %v510_v28 = vld [vmem:[%s8594_s3 + $0x2b0] sm:$0xff] }
 0x180   : > { %1438 = vmatmul.f32.gmra.mxu2 %v5676_v43  ;;  %1515 = vmatmul.f32.gmra.mxu3 %v5676_v43  ;;  %v5723_v27 = vmul.f32 %v387_v24, %v367_v18  ;;  %v368_v18 = vld [vmem:[%s5629_s27 + $0x20] sm:$0xff] }
 0x181   : > { %1654 = vmatpush.msrb.mxu1 %v517_v51  ;;  %1732 = vmatpush.msrb.mxu2 %v510_v28  ;;  %v509_v28 = vld [vmem:[%s8594_s3 + $0x2a8] sm:$0xff]  ;;  %v388_v24 = vld [vmem:[%s4820_s18 + $0x20] sm:$0xff] }
 0x183   : > { %v5697_v30 = vpop.f32.mrf.mxu2  ;;  %v5699_v58 = vpop.f32.mrf.mxu3  ;;  %1655 = vmatpush.msrb.mxu1 %v509_v28  ;;  %v502_v28 = vld [vmem:[%s8594_s3 + $0x270] sm:$0xff] }
 0x184   : > { %8688 = vst [vmem:[#allocation91_spill] sm:$0xff] %v5697_v30  ;;  %v5706_v34 = vpop.f32.mrf.mxu0  ;;  %v5708_v35 = vpop.f32.mrf.mxu1  ;;  %1733 = vmatpush.msrb.mxu2 %v502_v28  ;;  %v501_v28 = vld [vmem:[%s8594_s3 + $0x268] sm:$0xff] }
 0x185   : > { %8689 = vst [vmem:[#allocation92_spill] sm:$0xff] %v5699_v58  ;;  %1656 = vmatpush.msrb.mxu1 %v501_v28  ;;  %v370_v28 = vld [vmem:[%s5629_s27 + $0x30] sm:$0xff] }
 0x186   : > { %8690 = vst [vmem:[#allocation93_spill] sm:$0xff] %v5706_v34  ;;  %v511_v34 = vld [vmem:[%s8594_s3 + $0x2b8] sm:$0xff]  ;;  %1734 = vmatpush.msrb.mxu2 %v494_v15 }
 0x187   : > { %8691 = vst [vmem:[#allocation94_spill] sm:$0xff] %v5708_v35  ;;  %1287 = vmatmul.f32.gmra.mxu0 %v5701_v29  ;;  %1364 = vmatmul.f32.gmra.mxu1 %v5701_v29  ;;  %v508_v35 = vld [vmem:[%s8594_s3 + $0x2a0] sm:$0xff]  ;;  %v495_v15 = vld [vmem:[%s8594_s3 + $0x238] sm:$0xff] }
 0x188   : > { %1441 = vmatmul.f32.gmra.mxu2 %v5701_v29  ;;  %1518 = vmatmul.f32.gmra.mxu3 %v5701_v29 }
 0x189   : > { %1578 = vmatpush.msrb.mxu0 %v508_v35  ;;  %1809 = vmatpush.msrb.mxu3 %v511_v34  ;;  %v5748_v34 = vmul.f32 %v388_v24, %v368_v18  ;;  %v369_v18 = vld [vmem:[%s5629_s27 + $0x28] sm:$0xff] }
 0x18a   : > { %v389_v24 = vld [vmem:[%s4820_s18 + $0x28] sm:$0xff] }
 0x18b   : > { %v5719_v25 = vpop.f32.mrf.mxu2  ;;  %v5721_v51 = vpop.f32.mrf.mxu3 }
 0x18c   : > { %8692 = vst [vmem:[#allocation95_spill] sm:$0xff] %v5719_v25  ;;  %v5731_v58 = vpop.f32.mrf.mxu0  ;;  %v5733_v30 = vpop.f32.mrf.mxu1  ;;  %v500_v25 = vld [vmem:[%s8594_s3 + $0x260] sm:$0xff] }
 0x18d   : > { %8693 = vst [vmem:[#allocation96_spill] sm:$0xff] %v5721_v51  ;;  %1579 = vmatpush.msrb.mxu0 %v500_v25  ;;  %v5776_v25 = vmul.f32 %v389_v24, %v369_v18  ;;  %v492_v18 = vld [vmem:[%s8594_s3 + $0x220] sm:$0xff]  ;;  %v493_v24 = vld [vmem:[%s8594_s3 + $0x228] sm:$0xff] }
 0x18e   : > { %8694 = vst [vmem:[#allocation97_spill] sm:$0xff] %v5731_v58  ;;  %1657 = vmatpush.msrb.mxu1 %v493_v24 }
 0x18f   : > { %8695 = vst [vmem:[#allocation98_spill] sm:$0xff] %v5733_v30  ;;  %1290 = vmatmul.f32.gmra.mxu0 %v5723_v27  ;;  %1367 = vmatmul.f32.gmra.mxu1 %v5723_v27 }
 0x190   : > { %1444 = vmatmul.f32.gmra.mxu2 %v5723_v27  ;;  %1521 = vmatmul.f32.gmra.mxu3 %v5723_v27 }
 0x191   : > { %1580 = vmatpush.msrb.mxu0 %v492_v18  ;;  %v486_v18 = vld [vmem:[%s8594_s3 + $0x1f0] sm:$0xff] }
 0x192   : > { %1735 = vmatpush.msrb.mxu2 %v486_v18  ;;  %v372_v18 = vld [vmem:[%s5629_s27 + $0x40] sm:$0xff] }
 0x193   : > { %v5744_v58 = vpop.f32.mrf.mxu2  ;;  %v5746_v35 = vpop.f32.mrf.mxu3 }
 0x194   : > { %8696 = vst [vmem:[#allocation99_spill] sm:$0xff] %v5744_v58  ;;  %v5753_v30 = vpop.f32.mrf.mxu0  ;;  %v5755_v51 = vpop.f32.mrf.mxu1  ;;  %v503_v58 = vld [vmem:[%s8594_s3 + $0x278] sm:$0xff] }
 0x195   : > { %8697 = vst [vmem:[#allocation100_spill] sm:$0xff] %v5746_v35  ;;  %1810 = vmatpush.msrb.mxu3 %v503_v58 }
 0x196   : > { %8698 = vst [vmem:[#allocation101_spill] sm:$0xff] %v5753_v30 }
 0x197   : > { %8699 = vst [vmem:[#allocation102_spill] sm:$0xff] %v5755_v51  ;;  %1293 = vmatmul.f32.gmra.mxu0 %v5748_v34  ;;  %1370 = vmatmul.f32.gmra.mxu1 %v5748_v34 }
 0x198   : > { %1447 = vmatmul.f32.gmra.mxu2 %v5748_v34  ;;  %1524 = vmatmul.f32.gmra.mxu3 %v5748_v34 }
 0x199   : > { %1811 = vmatpush.msrb.mxu3 %v495_v15 }
 0x19b   : > { %v5772_v51 = vpop.f32.mrf.mxu2  ;;  %v5774_v58 = vpop.f32.mrf.mxu3 }
 0x19c   : > { %8700 = vst [vmem:[#allocation103_spill] sm:$0xff] %v5772_v51  ;;  %v5778_v30 = vpop.f32.mrf.mxu0  ;;  %v5780_v35 = vpop.f32.mrf.mxu1 }
 0x19d   : > { %8701 = vst [vmem:[#allocation104_spill] sm:$0xff] %v5774_v58  ;;  %v5804_v58 = vmul.f32 %v390_v26, %v370_v28  ;;  %v484_v26 = vld [vmem:[%s8594_s3 + $0x1e0] sm:$0xff]  ;;  %v487_v28 = vld [vmem:[%s8594_s3 + $0x1f8] sm:$0xff] }
 0x19e   : > { %8702 = vst [vmem:[#allocation105_spill] sm:$0xff] %v5778_v30  ;;  %1581 = vmatpush.msrb.mxu0 %v484_v26  ;;  %1812 = vmatpush.msrb.mxu3 %v487_v28 }
 0x19f   : > { %8703 = vst [vmem:[#allocation106_spill] sm:$0xff] %v5780_v35  ;;  %1296 = vmatmul.f32.gmra.mxu0 %v5776_v25  ;;  %1373 = vmatmul.f32.gmra.mxu1 %v5776_v25 }
 0x1a0   : > { %1450 = vmatmul.f32.gmra.mxu2 %v5776_v25  ;;  %1527 = vmatmul.f32.gmra.mxu3 %v5776_v25 }
 0x1a3   : > { %v5800_v35 = vpop.f32.mrf.mxu2  ;;  %v5802_v30 = vpop.f32.mrf.mxu3 }
 0x1a4   : > { %8704 = vst [vmem:[#allocation107_spill] sm:$0xff] %v5800_v35  ;;  %v5806_v51 = vpop.f32.mrf.mxu0  ;;  %v5808_v2 = vpop.f32.mrf.mxu1 }
 0x1a5   : > { %8705 = vst [vmem:[#allocation108_spill] sm:$0xff] %v5802_v30 }
 0x1a6   : > { %8706 = vst [vmem:[#allocation109_spill] sm:$0xff] %v5806_v51  ;;  %v485_v51 = vld [vmem:[%s8594_s3 + $0x1e8] sm:$0xff] }
 0x1a7   : > { %8707 = vst [vmem:[#allocation110_spill] sm:$0xff] %v5808_v2  ;;  %1299 = vmatmul.f32.gmra.mxu0 %v5804_v58  ;;  %1376 = vmatmul.f32.gmra.mxu1 %v5804_v58  ;;  %v5829_v2 = vmul.f32 %v391_v23, %v371_v13  ;;  %v392_v13 = vld [vmem:[%s4820_s18 + $0x40] sm:$0xff]  ;;  %v478_v23 = vld [vmem:[%s8594_s3 + $0x1b0] sm:$0xff] }
 0x1a8   : > { %1453 = vmatmul.f32.gmra.mxu2 %v5804_v58  ;;  %1530 = vmatmul.f32.gmra.mxu3 %v5804_v58  ;;  %v5851_v28 = vmul.f32 %v392_v13, %v372_v18  ;;  %v373_v18 = vld [vmem:[%s5629_s27 + $0x48] sm:$0xff] }
 0x1a9   : > { %1658 = vmatpush.msrb.mxu1 %v485_v51  ;;  %1736 = vmatpush.msrb.mxu2 %v478_v23  ;;  %v477_v23 = vld [vmem:[%s8594_s3 + $0x1a8] sm:$0xff] }
 0x1aa   : > { %v393_v13 = vld [vmem:[%s4820_s18 + $0x48] sm:$0xff] }
 0x1ab   : > { %v5825_v15 = vpop.f32.mrf.mxu2  ;;  %v5827_v24 = vpop.f32.mrf.mxu3  ;;  %1659 = vmatpush.msrb.mxu1 %v477_v23  ;;  %v470_v23 = vld [vmem:[%s8594_s3 + $0x170] sm:$0xff] }
 0x1ac   : > { %8708 = vst [vmem:[#allocation111_spill] sm:$0xff] %v5825_v15  ;;  %v5834_v30 = vpop.f32.mrf.mxu0  ;;  %v5836_v35 = vpop.f32.mrf.mxu1  ;;  %1737 = vmatpush.msrb.mxu2 %v470_v23  ;;  %v469_v23 = vld [vmem:[%s8594_s3 + $0x168] sm:$0xff] }
 0x1ad   : > { %8709 = vst [vmem:[#allocation112_spill] sm:$0xff] %v5827_v24  ;;  %1660 = vmatpush.msrb.mxu1 %v469_v23  ;;  %v375_v23 = vld [vmem:[%s5629_s27 + $0x58] sm:$0xff] }
 0x1ae   : > { %8710 = vst [vmem:[#allocation113_spill] sm:$0xff] %v5834_v30  ;;  %v479_v30 = vld [vmem:[%s8594_s3 + $0x1b8] sm:$0xff]  ;;  %1738 = vmatpush.msrb.mxu2 %v462_v59 }
 0x1af   : > { %8711 = vst [vmem:[#allocation114_spill] sm:$0xff] %v5836_v35  ;;  %1302 = vmatmul.f32.gmra.mxu0 %v5829_v2  ;;  %1379 = vmatmul.f32.gmra.mxu1 %v5829_v2  ;;  %v476_v35 = vld [vmem:[%s8594_s3 + $0x1a0] sm:$0xff]  ;;  %v463_v59 = vld [vmem:[%s8594_s3 + $0x138] sm:$0xff] }
 0x1b0   : > { %1456 = vmatmul.f32.gmra.mxu2 %v5829_v2  ;;  %1533 = vmatmul.f32.gmra.mxu3 %v5829_v2 }
 0x1b1   : > { %1582 = vmatpush.msrb.mxu0 %v476_v35  ;;  %1813 = vmatpush.msrb.mxu3 %v479_v30  ;;  %v5876_v35 = vmul.f32 %v393_v13, %v373_v18  ;;  %v374_v18 = vld [vmem:[%s5629_s27 + $0x50] sm:$0xff] }
 0x1b2   : > { %v394_v13 = vld [vmem:[%s4820_s18 + $0x50] sm:$0xff] }
 0x1b3   : > { %v5847_v26 = vpop.f32.mrf.mxu2  ;;  %v5849_v51 = vpop.f32.mrf.mxu3 }
 0x1b4   : > { %8712 = vst [vmem:[#allocation115_spill] sm:$0xff] %v5847_v26  ;;  %v5859_v24 = vpop.f32.mrf.mxu0  ;;  %v5861_v15 = vpop.f32.mrf.mxu1  ;;  %v468_v26 = vld [vmem:[%s8594_s3 + $0x160] sm:$0xff] }
 0x1b5   : > { %8713 = vst [vmem:[#allocation116_spill] sm:$0xff] %v5849_v51  ;;  %1583 = vmatpush.msrb.mxu0 %v468_v26  ;;  %v5904_v26 = vmul.f32 %v394_v13, %v374_v18  ;;  %v460_v18 = vld [vmem:[%s8594_s3 + $0x120] sm:$0xff]  ;;  %v461_v13 = vld [vmem:[%s8594_s3 + $0x128] sm:$0xff] }
 0x1b6   : > { %8714 = vst [vmem:[#allocation117_spill] sm:$0xff] %v5859_v24  ;;  %1661 = vmatpush.msrb.mxu1 %v461_v13 }
 0x1b7   : > { %8715 = vst [vmem:[#allocation118_spill] sm:$0xff] %v5861_v15  ;;  %1305 = vmatmul.f32.gmra.mxu0 %v5851_v28  ;;  %1382 = vmatmul.f32.gmra.mxu1 %v5851_v28 }
 0x1b8   : > { %1459 = vmatmul.f32.gmra.mxu2 %v5851_v28  ;;  %1536 = vmatmul.f32.gmra.mxu3 %v5851_v28 }
 0x1b9   : > { %1584 = vmatpush.msrb.mxu0 %v460_v18  ;;  %v454_v18 = vld [vmem:[%s8594_s3 + $0xf0] sm:$0xff] }
 0x1ba   : > { %1739 = vmatpush.msrb.mxu2 %v454_v18 }
 0x1bb   : > { %v5872_v24 = vpop.f32.mrf.mxu2  ;;  %v5874_v30 = vpop.f32.mrf.mxu3 }
 0x1bc   : > { %8716 = vst [vmem:[#allocation119_spill] sm:$0xff] %v5872_v24  ;;  %v5881_v15 = vpop.f32.mrf.mxu0  ;;  %v5883_v51 = vpop.f32.mrf.mxu1  ;;  %v471_v24 = vld [vmem:[%s8594_s3 + $0x178] sm:$0xff] }
 0x1bd   : > { %8717 = vst [vmem:[#allocation120_spill] sm:$0xff] %v5874_v30  ;;  %1814 = vmatpush.msrb.mxu3 %v471_v24 }
 0x1be   : > { %8718 = vst [vmem:[#allocation121_spill] sm:$0xff] %v5881_v15 }
 0x1bf   : > { %8719 = vst [vmem:[#allocation122_spill] sm:$0xff] %v5883_v51  ;;  %1308 = vmatmul.f32.gmra.mxu0 %v5876_v35  ;;  %1385 = vmatmul.f32.gmra.mxu1 %v5876_v35 }
 0x1c0   : > { %1462 = vmatmul.f32.gmra.mxu2 %v5876_v35  ;;  %1539 = vmatmul.f32.gmra.mxu3 %v5876_v35 }
 0x1c1   : > { %1815 = vmatpush.msrb.mxu3 %v463_v59 }
 0x1c3   : > { %v5900_v51 = vpop.f32.mrf.mxu2  ;;  %v5902_v24 = vpop.f32.mrf.mxu3 }
 0x1c4   : > { %8720 = vst [vmem:[#allocation123_spill] sm:$0xff] %v5900_v51  ;;  %v5906_v15 = vpop.f32.mrf.mxu0  ;;  %v5908_v30 = vpop.f32.mrf.mxu1 }
 0x1c5   : > { %8721 = vst [vmem:[#allocation124_spill] sm:$0xff] %v5902_v24  ;;  %v5932_v24 = vmul.f32 %v395_v16, %v375_v23  ;;  %v452_v16 = vld [vmem:[%s8594_s3 + $0xe0] sm:$0xff]  ;;  %v455_v23 = vld [vmem:[%s8594_s3 + $0xf8] sm:$0xff] }
 0x1c6   : > { %8722 = vst [vmem:[#allocation125_spill] sm:$0xff] %v5906_v15  ;;  %1585 = vmatpush.msrb.mxu0 %v452_v16  ;;  %1816 = vmatpush.msrb.mxu3 %v455_v23 }
 0x1c7   : > { %8723 = vst [vmem:[#allocation126_spill] sm:$0xff] %v5908_v30  ;;  %1311 = vmatmul.f32.gmra.mxu0 %v5904_v26  ;;  %1388 = vmatmul.f32.gmra.mxu1 %v5904_v26 }
 0x1c8   : > { %1465 = vmatmul.f32.gmra.mxu2 %v5904_v26  ;;  %1542 = vmatmul.f32.gmra.mxu3 %v5904_v26 }
 0x1c9   : > { %1817 = vmatpush.msrb.mxu3 %v447_v17  ;;  %v436_v17 = vld [vmem:[%s8594_s3 + $0x60] sm:$0xff] }
 0x1cb   : > { %v5928_v30 = vpop.f32.mrf.mxu2  ;;  %v5930_v15 = vpop.f32.mrf.mxu3 }
 0x1cc   : > { %8724 = vst [vmem:[#allocation127_spill] sm:$0xff] %v5928_v30  ;;  %v5934_v51 = vpop.f32.mrf.mxu0  ;;  %v5936_v12 = vpop.f32.mrf.mxu1 }
 0x1cd   : > { %8725 = vst [vmem:[#allocation128_spill] sm:$0xff] %v5930_v15 }
 0x1ce   : > { %8726 = vst [vmem:[#allocation129_spill] sm:$0xff] %v5934_v51  ;;  %v453_v51 = vld [vmem:[%s8594_s3 + $0xe8] sm:$0xff] }
 0x1cf   : > { %8727 = vst [vmem:[#allocation130_spill] sm:$0xff] %v5936_v12  ;;  %1314 = vmatmul.f32.gmra.mxu0 %v5932_v24  ;;  %1391 = vmatmul.f32.gmra.mxu1 %v5932_v24  ;;  %v5957_v12 = vmul.f32 %v396_v48, %v376_v3  ;;  %v377_v48 = vld [vmem:[%s5629_s27 + $0x68] sm:$0xff] }
 0x1d0   : > { %1468 = vmatmul.f32.gmra.mxu2 %v5932_v24  ;;  %1545 = vmatmul.f32.gmra.mxu3 %v5932_v24  ;;  %v397_v3 = vld [vmem:[%s4820_s18 + $0x68] sm:$0xff] }
 0x1d1   : > { %1662 = vmatpush.msrb.mxu1 %v453_v51  ;;  %v5976_v23 = vmul.f32 %v397_v3, %v377_v48 }
 0x1d3   : > { %v5953_v59 = vpop.f32.mrf.mxu2  ;;  %v5955_v13 = vpop.f32.mrf.mxu3 }
 0x1d4   : > { %8728 = vst [vmem:[#allocation131_spill] sm:$0xff] %v5953_v59  ;;  %v5962_v15 = vpop.f32.mrf.mxu0  ;;  %v5964_v30 = vpop.f32.mrf.mxu1  ;;  %v444_v59 = vld [vmem:[%s8594_s3 + $0xa0] sm:$0xff] }
 0x1d5   : > { %8729 = vst [vmem:[#allocation132_spill] sm:$0xff] %v5955_v13  ;;  %1586 = vmatpush.msrb.mxu0 %v444_v59  ;;  %v439_v59 = vld [vmem:[%s8594_s3 + $0x78] sm:$0xff] }
 0x1d6   : > { %8730 = vst [vmem:[#allocation133_spill] sm:$0xff] %v5962_v15  ;;  %v446_v15 = vld [vmem:[%s8594_s3 + $0xb0] sm:$0xff]  ;;  %1818 = vmatpush.msrb.mxu3 %v439_v59  ;;  %v400_v59 = vld [vmem:[%s4820_s18 + $0x80] sm:$0xff] }
 0x1d7   : > { %8731 = vst [vmem:[#allocation134_spill] sm:$0xff] %v5964_v30  ;;  %1317 = vmatmul.f32.gmra.mxu0 %v5957_v12  ;;  %1394 = vmatmul.f32.gmra.mxu1 %v5957_v12 }
 0x1d8   : > { %1471 = vmatmul.f32.gmra.mxu2 %v5957_v12  ;;  %1548 = vmatmul.f32.gmra.mxu3 %v5957_v12 }
 0x1d9   : > { %1740 = vmatpush.msrb.mxu2 %v446_v15  ;;  %v445_v15 = vld [vmem:[%s8594_s3 + $0xa8] sm:$0xff]  ;;  %1587 = vmatpush.msrb.mxu0 %v436_v17  ;;  %v380_v17 = vld [vmem:[%s5629_s27 + $0x80] sm:$0xff] }
 0x1da   : > { %1663 = vmatpush.msrb.mxu1 %v445_v15 }
 0x1db   : > { %v5972_v18 = vpop.f32.mrf.mxu2  ;;  %v5974_v16 = vpop.f32.mrf.mxu3 }
 0x1dc   : > { %8732 = vst [vmem:[#allocation135_spill] sm:$0xff] %v5972_v18  ;;  %v5978_v30 = vpop.f32.mrf.mxu0  ;;  %v5980_v51 = vpop.f32.mrf.mxu1  ;;  %v378_v18 = vld [vmem:[%s5629_s27 + $0x70] sm:$0xff] }
 0x1dd   : > { %8733 = vst [vmem:[#allocation136_spill] sm:$0xff] %v5974_v16  ;;  %v398_v16 = vld [vmem:[%s4820_s18 + $0x70] sm:$0xff] }
 0x1de   : > { %8734 = vst [vmem:[#allocation137_spill] sm:$0xff] %v5978_v30 }
 0x1df   : > { %8735 = vst [vmem:[#allocation138_spill] sm:$0xff] %v5980_v51  ;;  %1320 = vmatmul.f32.gmra.mxu0 %v5976_v23  ;;  %1397 = vmatmul.f32.gmra.mxu1 %v5976_v23  ;;  %v5995_v51 = vmul.f32 %v398_v16, %v378_v18  ;;  %v379_v18 = vld [vmem:[%s5629_s27 + $0x78] sm:$0xff] }
 0x1e0   : > { %1474 = vmatmul.f32.gmra.mxu2 %v5976_v23  ;;  %1551 = vmatmul.f32.gmra.mxu3 %v5976_v23  ;;  %v399_v16 = vld [vmem:[%s4820_s18 + $0x78] sm:$0xff] }
 0x1e3   : > { %v5991_v48 = vpop.f32.mrf.mxu2  ;;  %v5993_v3 = vpop.f32.mrf.mxu3 }
 0x1e4   : > { %8736 = vst [vmem:[#allocation139_spill] sm:$0xff] %v5991_v48  ;;  %v5997_v30 = vpop.f32.mrf.mxu0  ;;  %v5999_v13 = vpop.f32.mrf.mxu1 }
 0x1e5   : > { %8737 = vst [vmem:[#allocation140_spill] sm:$0xff] %v5993_v3 }
 0x1e6   : > { %8738 = vst [vmem:[#allocation141_spill] sm:$0xff] %v5997_v30  ;;  %v437_v30 = vld [vmem:[%s8594_s3 + $0x68] sm:$0xff] }
 0x1e7   : > { %8739 = vst [vmem:[#allocation142_spill] sm:$0xff] %v5999_v13  ;;  %1323 = vmatmul.f32.gmra.mxu0 %v5995_v51  ;;  %1400 = vmatmul.f32.gmra.mxu1 %v5995_v51  ;;  %v438_v13 = vld [vmem:[%s8594_s3 + $0x70] sm:$0xff] }
 0x1e8   : > { %1477 = vmatmul.f32.gmra.mxu2 %v5995_v51  ;;  %1554 = vmatmul.f32.gmra.mxu3 %v5995_v51 }
 0x1e9   : > { %1741 = vmatpush.msrb.mxu2 %v438_v13  ;;  %v6032_v13 = vmul.f32 %v399_v16, %v379_v18  ;;  %1664 = vmatpush.msrb.mxu1 %v437_v30  ;;  %v430_v18 = vld [vmem:[%s8594_s3 + $0x30] sm:$0xff]  ;;  %v428_v30 = vld [vmem:[%s8594_s3 + $0x20] sm:$0xff]  ;;  %v431_v16 = vld [vmem:[%s8594_s3 + $0x38] sm:$0xff] }
 0x1ea   : > { %1588 = vmatpush.msrb.mxu0 %v428_v30  ;;  %1819 = vmatpush.msrb.mxu3 %v431_v16  ;;  %v401_v30 = vld [vmem:[%s4820_s18 + $0x88] sm:$0xff] }
 0x1eb   : > { %v6028_v3 = vpop.f32.mrf.mxu2  ;;  %v6030_v15 = vpop.f32.mrf.mxu3  ;;  %1742 = vmatpush.msrb.mxu2 %v430_v18  ;;  %v381_v18 = vld [vmem:[%s5629_s27 + $0x88] sm:$0xff] }
 0x1ec   : > { %8740 = vst [vmem:[#allocation143_spill] sm:$0xff] %v6028_v3  ;;  %v6034_v48 = vpop.f32.mrf.mxu0  ;;  %v6036_v44 = vpop.f32.mrf.mxu1  ;;  %v6060_v3 = vmul.f32 %v400_v59, %v380_v17  ;;  %v3066_v17 = vld [vmem:[%s8597_s6 + $0x178] sm:$0xff] }
 0x1ed   : > { %8741 = vst [vmem:[#allocation144_spill] sm:$0xff] %v6030_v15  ;;  %v3082_v59 = vld [vmem:[%s8597_s6 + $0x1f8] sm:$0xff]  ;;  %3301 = vmatpush.msra.mxu2 %v3066_v17  ;;  %v382_v17 = vld [vmem:[%s5629_s27 + $0x90] sm:$0xff] }
 0x1ee   : > { %8742 = vst [vmem:[#allocation145_spill] sm:$0xff] %v6034_v48  ;;  %3378 = vmatpush.msra.mxu3 %v3082_v59 }
 0x1ef   : > { %8743 = vst [vmem:[#allocation146_spill] sm:$0xff] %v6036_v44  ;;  %1326 = vmatmul.f32.gmra.mxu0 %v6032_v13  ;;  %1403 = vmatmul.f32.gmra.mxu1 %v6032_v13  ;;  %v429_v44 = vld [vmem:[%s8594_s3 + $0x28] sm:$0xff] }
 0x1f0   : > { %1480 = vmatmul.f32.gmra.mxu2 %v6032_v13  ;;  %1557 = vmatmul.f32.gmra.mxu3 %v6032_v13 }
 0x1f1   : > { %1665 = vmatpush.msrb.mxu1 %v429_v44  ;;  %v3034_v44 = vld [vmem:[%s8597_s6 + $0x78] sm:$0xff] }
 0x1f2   : > { %3147 = vmatpush.msra.mxu0 %v3034_v44  ;;  %v402_v44 = vld [vmem:[%s4820_s18 + $0x90] sm:$0xff] }
 0x1f3   : > { %v6056_v48 = vpop.f32.mrf.mxu2  ;;  %v6058_v15 = vpop.f32.mrf.mxu3  ;;  %v6107_v61 = vmul.f32 %v402_v44, %v382_v17  ;;  %v3081_v17 = vld [vmem:[%s8597_s6 + $0x1f0] sm:$0xff] }
 0x1f4   : > { %8744 = vst [vmem:[#allocation147_spill] sm:$0xff] %v6056_v48  ;;  %v6062_v40 = vpop.f32.mrf.mxu0  ;;  %v6064_v11 = vpop.f32.mrf.mxu1  ;;  %v6085_v48 = vmul.f32 %v401_v30, %v381_v18  ;;  %v3050_v18 = vld [vmem:[%s8597_s6 + $0xf8] sm:$0xff]  ;;  %v3065_v30 = vld [vmem:[%s8597_s6 + $0x170] sm:$0xff]  ;;  %3148 = vmatpush.msra.mxu0 %v3033_v52  ;;  %3379 = vmatpush.msra.mxu3 %v3081_v17  ;;  %v3064_v52 = vld [vmem:[%s8597_s6 + $0x168] sm:$0xff] }
 0x1f5   : > { %8745 = vst [vmem:[#allocation148_spill] sm:$0xff] %v6058_v15  ;;  %3224 = vmatpush.msra.mxu1 %v3050_v18  ;;  %3302 = vmatpush.msra.mxu2 %v3065_v30  ;;  %v383_v18 = vld [vmem:[%s5629_s27 + $0x98] sm:$0xff]  ;;  %v3049_v44 = vld [vmem:[%s8597_s6 + $0xf0] sm:$0xff]  ;;  %v3048_v17 = vld [vmem:[%s8597_s6 + $0xe8] sm:$0xff] }
 0x1f6   : > { %v403_v30 = vld [vmem:[%s4820_s18 + $0x98] sm:$0xff] }
 0x1f7   : > { %1329 = vmatmul.f32.gmra.mxu0 %v6060_v3  ;;  %1406 = vmatmul.f32.gmra.mxu1 %v6060_v3  ;;  %v6132_v37 = vmul.f32 %v403_v30, %v383_v18  ;;  %v3032_v18 = vld [vmem:[%s8597_s6 + $0x68] sm:$0xff] }
 0x1f8   : > { %1483 = vmatmul.f32.gmra.mxu2 %v6060_v3  ;;  %1560 = vmatmul.f32.gmra.mxu3 %v6060_v3  ;;  %v3080_v30 = vld [vmem:[%s8597_s6 + $0x1e8] sm:$0xff] }
 0x1f9   : > { %3225 = vmatpush.msra.mxu1 %v3049_v44  ;;  %3303 = vmatpush.msra.mxu2 %v3064_v52 }
 0x1fa   : > { %3149 = vmatpush.msra.mxu0 %v3032_v18  ;;  %3380 = vmatpush.msra.mxu3 %v3080_v30  ;;  %v3063_v18 = vld [vmem:[%s8597_s6 + $0x160] sm:$0xff] }
 0x1fb   : > { %v6081_v16 = vpop.f32.mrf.mxu2  ;;  %v6083_v15 = vpop.f32.mrf.mxu3  ;;  %3226 = vmatpush.msra.mxu1 %v3048_v17  ;;  %v3031_v30 = vld [vmem:[%s8597_s6 + $0x60] sm:$0xff]  ;;  %3304 = vmatpush.msra.mxu2 %v3063_v18  ;;  %v3062_v18 = vld [vmem:[%s8597_s6 + $0x158] sm:$0xff] }
 0x1fc   : > { %v6087_v10 = vpop.f32.mrf.mxu0  ;;  %v6089_v5 = vpop.f32.mrf.mxu1  ;;  %v3079_v17 = vld [vmem:[%s8597_s6 + $0x1e0] sm:$0xff]  ;;  %3150 = vmatpush.msra.mxu0 %v3031_v30  ;;  %v3078_v30 = vld [vmem:[%s8597_s6 + $0x1d8] sm:$0xff] }
 0x1fd   : > { %3381 = vmatpush.msra.mxu3 %v3079_v17  ;;  %3227 = vmatpush.msra.mxu1 %v3047_v19  ;;  %v3030_v19 = vld [vmem:[%s8597_s6 + $0x58] sm:$0xff] }
 0x1fe   : > { %3305 = vmatpush.msra.mxu2 %v3062_v18  ;;  %3151 = vmatpush.msra.mxu0 %v3030_v19  ;;  %v3046_v18 = vld [vmem:[%s8597_s6 + $0xd8] sm:$0xff]  ;;  %v3061_v19 = vld [vmem:[%s8597_s6 + $0x150] sm:$0xff] }
 0x1ff   : > { %1332 = vmatmul.f32.gmra.mxu0 %v6085_v48  ;;  %1409 = vmatmul.f32.gmra.mxu1 %v6085_v48 }
 0x200   : > { %1486 = vmatmul.f32.gmra.mxu2 %v6085_v48  ;;  %1563 = vmatmul.f32.gmra.mxu3 %v6085_v48 }
 0x201   : > { %3382 = vmatpush.msra.mxu3 %v3078_v30  ;;  %3228 = vmatpush.msra.mxu1 %v3046_v18  ;;  %v3077_v18 = vld [vmem:[%s8597_s6 + $0x1d0] sm:$0xff] }
 0x202   : > { %3306 = vmatpush.msra.mxu2 %v3061_v19  ;;  %v3045_v19 = vld [vmem:[%s8597_s6 + $0xd0] sm:$0xff] }
 0x203   : > { %v6103_v59 = vpop.f32.mrf.mxu2  ;;  %v6105_v4 = vpop.f32.mrf.mxu3  ;;  %3383 = vmatpush.msra.mxu3 %v3077_v18  ;;  %3229 = vmatpush.msra.mxu1 %v3045_v19  ;;  %v3028_v18 = vld [vmem:[%s8597_s6 + $0x48] sm:$0xff] }
 0x204   : > { %v6109_v60 = vpop.f32.mrf.mxu0  ;;  %v6111_v55 = vpop.f32.mrf.mxu1  ;;  %v3076_v19 = vld [vmem:[%s8597_s6 + $0x1c8] sm:$0xff] }
 0x205   : > { %3384 = vmatpush.msra.mxu3 %v3076_v19  ;;  %v3075_v19 = vld [vmem:[%s8597_s6 + $0x1c0] sm:$0xff] }
 0x207   : > { %1335 = vmatmul.f32.gmra.mxu0 %v6107_v61  ;;  %1412 = vmatmul.f32.gmra.mxu1 %v6107_v61 }
 0x208   : > { %1489 = vmatmul.f32.gmra.mxu2 %v6107_v61  ;;  %1566 = vmatmul.f32.gmra.mxu3 %v6107_v61 }
 0x209   : > { %3385 = vmatpush.msra.mxu3 %v3075_v19 }
 0x20b   : > { %v6128_v14 = vpop.f32.mrf.mxu2  ;;  %v6130_v47 = vpop.f32.mrf.mxu3 }
 0x20c   : > { %v6134_v36 = vpop.f32.mrf.mxu0  ;;  %v6136_v22 = vpop.f32.mrf.mxu1 }
 0x20f   : > { %1338 = vmatmul.f32.gmra.mxu0 %v6132_v37  ;;  %1415 = vmatmul.f32.gmra.mxu1 %v6132_v37 }
 0x210   : > { %1492 = vmatmul.f32.gmra.mxu2 %v6132_v37  ;;  %1569 = vmatmul.f32.gmra.mxu3 %v6132_v37 }
 0x213   : > { %v6154_v44 = vpop.f32.mrf.mxu2  ;;  %v6156_v21 = vpop.f32.mrf.mxu3 }
 0x214   : > { %v6158_v52 = vpop.f32.mrf.mxu0  ;;  %v6160_v20 = vpop.f32.mrf.mxu1 }
 0x217   : > { %1589 = vmatmul.f32.vlgmr.msrb.gmra.mxu0 %v5648_v31  ;;  %1666 = vmatmul.f32.vlgmr.msrb.gmra.mxu1 %v5648_v31 }
 0x218   : > { %1743 = vmatmul.f32.vlgmr.msrb.gmra.mxu2 %v5648_v31  ;;  %1820 = vmatmul.f32.vlgmr.msrb.gmra.mxu3 %v5648_v31 }
 0x21b   : > { %v6178_v9 = vpop.f32.mrf.mxu2  ;;  %v6180_v31 = vpop.f32.mrf.mxu3 }
 0x21c   : > { %v6182_v8 = vpop.f32.mrf.mxu0  ;;  %v6184_v7 = vpop.f32.mrf.mxu1 }
 0x21d   : > { %8746 = vst [vmem:[#allocation149_spill] sm:$0xff] %v6182_v8 }
 0x21e   : > { %8747 = vst [vmem:[#allocation150_spill] sm:$0xff] %v6184_v7 }
 0x21f   : > { %1592 = vmatmul.f32.gmra.mxu0 %v5676_v43  ;;  %1669 = vmatmul.f32.gmra.mxu1 %v5676_v43 }
 0x220   : > { %1746 = vmatmul.f32.gmra.mxu2 %v5676_v43  ;;  %1823 = vmatmul.f32.gmra.mxu3 %v5676_v43 }
 0x223   : > { %v6199_v17 = vpop.f32.mrf.mxu2  ;;  %v6201_v7 = vpop.f32.mrf.mxu3 }
 0x224   : > { %8748 = vst [vmem:[#allocation151_spill] sm:$0xff] %v6201_v7  ;;  %v6203_v43 = vpop.f32.mrf.mxu0  ;;  %v6205_v8 = vpop.f32.mrf.mxu1 }
 0x225   : > { %8749 = vst [vmem:[#allocation152_spill] sm:$0xff] %v6203_v43 }
 0x226   : > { %8750 = vst [vmem:[#allocation153_spill] sm:$0xff] %v6205_v8 }
 0x227   : > { %1595 = vmatmul.f32.gmra.mxu0 %v5701_v29  ;;  %1672 = vmatmul.f32.gmra.mxu1 %v5701_v29 }
 0x228   : > { %1749 = vmatmul.f32.gmra.mxu2 %v5701_v29  ;;  %1826 = vmatmul.f32.gmra.mxu3 %v5701_v29  ;;  %v3029_v29 = vld [vmem:[%s8597_s6 + $0x50] sm:$0xff] }
 0x229   : > { %3152 = vmatpush.msra.mxu0 %v3029_v29  ;;  %v3060_v29 = vld [vmem:[%s8597_s6 + $0x148] sm:$0xff] }
 0x22a   : > { %3307 = vmatpush.msra.mxu2 %v3060_v29 }
 0x22b   : > { %v6217_v30 = vpop.f32.mrf.mxu2  ;;  %v6219_v8 = vpop.f32.mrf.mxu3  ;;  %3153 = vmatpush.msra.mxu0 %v3028_v18  ;;  %v3059_v18 = vld [vmem:[%s8597_s6 + $0x140] sm:$0xff] }
 0x22c   : > { %8751 = vst [vmem:[#allocation154_spill] sm:$0xff] %v6219_v8  ;;  %v6221_v43 = vpop.f32.mrf.mxu0  ;;  %v6223_v7 = vpop.f32.mrf.mxu1  ;;  %3308 = vmatpush.msra.mxu2 %v3059_v18  ;;  %v3058_v18 = vld [vmem:[%s8597_s6 + $0x138] sm:$0xff] }
 0x22d   : > { %8752 = vst [vmem:[#allocation155_spill] sm:$0xff] %v6221_v43 }
 0x22e   : > { %8753 = vst [vmem:[#allocation156_spill] sm:$0xff] %v6223_v7  ;;  %3309 = vmatpush.msra.mxu2 %v3058_v18  ;;  %v3042_v18 = vld [vmem:[%s8597_s6 + $0xb8] sm:$0xff] }
 0x22f   : > { %1598 = vmatmul.f32.gmra.mxu0 %v5723_v27  ;;  %1675 = vmatmul.f32.gmra.mxu1 %v5723_v27 }
 0x230   : > { %1752 = vmatmul.f32.gmra.mxu2 %v5723_v27  ;;  %1829 = vmatmul.f32.gmra.mxu3 %v5723_v27 }
 0x233   : > { %v6238_v7 = vpop.f32.mrf.mxu2  ;;  %v6240_v43 = vpop.f32.mrf.mxu3 }
 0x234   : > { %8754 = vst [vmem:[#allocation157_spill] sm:$0xff] %v6240_v43  ;;  %v6242_v27 = vpop.f32.mrf.mxu0  ;;  %v6244_v8 = vpop.f32.mrf.mxu1 }
 0x235   : > { %8755 = vst [vmem:[#allocation158_spill] sm:$0xff] %v6242_v27 }
 0x236   : > { %8756 = vst [vmem:[#allocation159_spill] sm:$0xff] %v6244_v8  ;;  %v3044_v8 = vld [vmem:[%s8597_s6 + $0xc8] sm:$0xff] }
 0x237   : > { %1601 = vmatmul.f32.gmra.mxu0 %v5748_v34  ;;  %1678 = vmatmul.f32.gmra.mxu1 %v5748_v34 }
 0x238   : > { %1755 = vmatmul.f32.gmra.mxu2 %v5748_v34  ;;  %1832 = vmatmul.f32.gmra.mxu3 %v5748_v34 }
 0x239   : > { %3230 = vmatpush.msra.mxu1 %v3044_v8  ;;  %v3027_v8 = vld [vmem:[%s8597_s6 + $0x40] sm:$0xff] }
 0x23a   : > { %3154 = vmatpush.msra.mxu0 %v3027_v8  ;;  %v3074_v8 = vld [vmem:[%s8597_s6 + $0x1b8] sm:$0xff] }
 0x23b   : > { %v6262_v34 = vpop.f32.mrf.mxu2  ;;  %v6264_v27 = vpop.f32.mrf.mxu3  ;;  %3386 = vmatpush.msra.mxu3 %v3074_v8 }
 0x23c   : > { %8757 = vst [vmem:[#allocation160_spill] sm:$0xff] %v6262_v34  ;;  %v6266_v29 = vpop.f32.mrf.mxu0  ;;  %v6268_v43 = vpop.f32.mrf.mxu1 }
 0x23d   : > { %8758 = vst [vmem:[#allocation161_spill] sm:$0xff] %v6264_v27 }
 0x23e   : > { %8759 = vst [vmem:[#allocation162_spill] sm:$0xff] %v6266_v29 }
 0x23f   : > { %8760 = vst [vmem:[#allocation163_spill] sm:$0xff] %v6268_v43  ;;  %1604 = vmatmul.f32.gmra.mxu0 %v5776_v25  ;;  %1681 = vmatmul.f32.gmra.mxu1 %v5776_v25  ;;  %v3043_v43 = vld [vmem:[%s8597_s6 + $0xc0] sm:$0xff] }
 0x240   : > { %1758 = vmatmul.f32.gmra.mxu2 %v5776_v25  ;;  %1835 = vmatmul.f32.gmra.mxu3 %v5776_v25 }
 0x241   : > { %3231 = vmatpush.msra.mxu1 %v3043_v43  ;;  %v3026_v43 = vld [vmem:[%s8597_s6 + $0x38] sm:$0xff] }
 0x242   : > { %3155 = vmatpush.msra.mxu0 %v3026_v43  ;;  %v3057_v43 = vld [vmem:[%s8597_s6 + $0x130] sm:$0xff] }
 0x243   : > { %v6286_v29 = vpop.f32.mrf.mxu2  ;;  %v6288_v25 = vpop.f32.mrf.mxu3  ;;  %3232 = vmatpush.msra.mxu1 %v3042_v18  ;;  %3310 = vmatpush.msra.mxu2 %v3057_v43  ;;  %v3073_v18 = vld [vmem:[%s8597_s6 + $0x1b0] sm:$0xff] }
 0x244   : > { %v6290_v27 = vpop.f32.mrf.mxu0  ;;  %v6292_v34 = vpop.f32.mrf.mxu1  ;;  %3387 = vmatpush.msra.mxu3 %v3073_v18  ;;  %v3041_v43 = vld [vmem:[%s8597_s6 + $0xb0] sm:$0xff]  ;;  %v3024_v18 = vld [vmem:[%s8597_s6 + $0x28] sm:$0xff] }
 0x245   : > { %8761 = vst [vmem:[#allocation164_spill] sm:$0xff] %v6290_v27  ;;  %3233 = vmatpush.msra.mxu1 %v3041_v43  ;;  %v3072_v43 = vld [vmem:[%s8597_s6 + $0x1a8] sm:$0xff] }
 0x246   : > { %8762 = vst [vmem:[#allocation165_spill] sm:$0xff] %v6292_v34  ;;  %3388 = vmatpush.msra.mxu3 %v3072_v43  ;;  %v3071_v43 = vld [vmem:[%s8597_s6 + $0x1a0] sm:$0xff] }
 0x247   : > { %1607 = vmatmul.f32.gmra.mxu0 %v5804_v58  ;;  %1684 = vmatmul.f32.gmra.mxu1 %v5804_v58 }
 0x248   : > { %1761 = vmatmul.f32.gmra.mxu2 %v5804_v58  ;;  %1838 = vmatmul.f32.gmra.mxu3 %v5804_v58 }
 0x249   : > { %3389 = vmatpush.msra.mxu3 %v3071_v43 }
 0x24b   : > { %v6307_v19 = vpop.f32.mrf.mxu2  ;;  %v6309_v34 = vpop.f32.mrf.mxu3 }
 0x24c   : > { %8763 = vst [vmem:[#allocation166_spill] sm:$0xff] %v6309_v34  ;;  %v6311_v58 = vpop.f32.mrf.mxu0  ;;  %v6313_v27 = vpop.f32.mrf.mxu1 }
 0x24d   : > { %8764 = vst [vmem:[#allocation167_spill] sm:$0xff] %v6311_v58 }
 0x24e   : > { %8765 = vst [vmem:[#allocation168_spill] sm:$0xff] %v6313_v27 }
 0x24f   : > { %1610 = vmatmul.f32.gmra.mxu0 %v5829_v2  ;;  %1687 = vmatmul.f32.gmra.mxu1 %v5829_v2 }
 0x250   : > { %1764 = vmatmul.f32.gmra.mxu2 %v5829_v2  ;;  %1841 = vmatmul.f32.gmra.mxu3 %v5829_v2  ;;  %v3025_v2 = vld [vmem:[%s8597_s6 + $0x30] sm:$0xff] }
 0x251   : > { %3156 = vmatpush.msra.mxu0 %v3025_v2  ;;  %v3056_v2 = vld [vmem:[%s8597_s6 + $0x128] sm:$0xff] }
 0x252   : > { %3311 = vmatpush.msra.mxu2 %v3056_v2 }
 0x253   : > { %v6325_v8 = vpop.f32.mrf.mxu2  ;;  %v6327_v27 = vpop.f32.mrf.mxu3  ;;  %3157 = vmatpush.msra.mxu0 %v3024_v18  ;;  %v3055_v18 = vld [vmem:[%s8597_s6 + $0x120] sm:$0xff] }
 0x254   : > { %8766 = vst [vmem:[#allocation169_spill] sm:$0xff] %v6327_v27  ;;  %v6329_v58 = vpop.f32.mrf.mxu0  ;;  %v6331_v34 = vpop.f32.mrf.mxu1  ;;  %3312 = vmatpush.msra.mxu2 %v3055_v18  ;;  %v3054_v18 = vld [vmem:[%s8597_s6 + $0x118] sm:$0xff] }
 0x255   : > { %8767 = vst [vmem:[#allocation170_spill] sm:$0xff] %v6329_v58 }
 0x256   : > { %8768 = vst [vmem:[#allocation171_spill] sm:$0xff] %v6331_v34  ;;  %3313 = vmatpush.msra.mxu2 %v3054_v18  ;;  %v3038_v18 = vld [vmem:[%s8597_s6 + $0x98] sm:$0xff] }
 0x257   : > { %1613 = vmatmul.f32.gmra.mxu0 %v5851_v28  ;;  %1690 = vmatmul.f32.gmra.mxu1 %v5851_v28 }
 0x258   : > { %1767 = vmatmul.f32.gmra.mxu2 %v5851_v28  ;;  %1844 = vmatmul.f32.gmra.mxu3 %v5851_v28 }
 0x25b   : > { %v6346_v34 = vpop.f32.mrf.mxu2  ;;  %v6348_v58 = vpop.f32.mrf.mxu3 }
 0x25c   : > { %8769 = vst [vmem:[#allocation172_spill] sm:$0xff] %v6348_v58  ;;  %v6350_v28 = vpop.f32.mrf.mxu0  ;;  %v6352_v27 = vpop.f32.mrf.mxu1 }
 0x25d   : > { %8770 = vst [vmem:[#allocation173_spill] sm:$0xff] %v6350_v28 }
 0x25e   : > { %8771 = vst [vmem:[#allocation174_spill] sm:$0xff] %v6352_v27  ;;  %v3040_v27 = vld [vmem:[%s8597_s6 + $0xa8] sm:$0xff] }
 0x25f   : > { %1616 = vmatmul.f32.gmra.mxu0 %v5876_v35  ;;  %1693 = vmatmul.f32.gmra.mxu1 %v5876_v35 }
 0x260   : > { %1770 = vmatmul.f32.gmra.mxu2 %v5876_v35  ;;  %1847 = vmatmul.f32.gmra.mxu3 %v5876_v35 }
 0x261   : > { %3234 = vmatpush.msra.mxu1 %v3040_v27  ;;  %v3023_v27 = vld [vmem:[%s8597_s6 + $0x20] sm:$0xff] }
 0x262   : > { %3158 = vmatpush.msra.mxu0 %v3023_v27  ;;  %v3070_v27 = vld [vmem:[%s8597_s6 + $0x198] sm:$0xff] }
 0x263   : > { %v6370_v35 = vpop.f32.mrf.mxu2  ;;  %v6372_v28 = vpop.f32.mrf.mxu3  ;;  %3390 = vmatpush.msra.mxu3 %v3070_v27 }
 0x264   : > { %8772 = vst [vmem:[#allocation175_spill] sm:$0xff] %v6370_v35  ;;  %v6374_v2 = vpop.f32.mrf.mxu0  ;;  %v6376_v58 = vpop.f32.mrf.mxu1 }
 0x265   : > { %8773 = vst [vmem:[#allocation176_spill] sm:$0xff] %v6372_v28 }
 0x266   : > { %8774 = vst [vmem:[#allocation177_spill] sm:$0xff] %v6374_v2 }
 0x267   : > { %8775 = vst [vmem:[#allocation178_spill] sm:$0xff] %v6376_v58  ;;  %1619 = vmatmul.f32.gmra.mxu0 %v5904_v26  ;;  %1696 = vmatmul.f32.gmra.mxu1 %v5904_v26  ;;  %v3039_v58 = vld [vmem:[%s8597_s6 + $0xa0] sm:$0xff] }
 0x268   : > { %1773 = vmatmul.f32.gmra.mxu2 %v5904_v26  ;;  %1850 = vmatmul.f32.gmra.mxu3 %v5904_v26 }
 0x269   : > { %3235 = vmatpush.msra.mxu1 %v3039_v58  ;;  %v3022_v58 = vld [vmem:[%s8597_s6 + $0x18] sm:$0xff] }
 0x26a   : > { %3159 = vmatpush.msra.mxu0 %v3022_v58 }
 0x26b   : > { %v6394_v2 = vpop.f32.mrf.mxu2  ;;  %v6396_v26 = vpop.f32.mrf.mxu3  ;;  %3236 = vmatpush.msra.mxu1 %v3038_v18 }
 0x26c   : > { %v6398_v28 = vpop.f32.mrf.mxu0  ;;  %v6400_v35 = vpop.f32.mrf.mxu1 }
 0x26d   : > { %8776 = vst [vmem:[#allocation179_spill] sm:$0xff] %v6398_v28 }
 0x26e   : > { %8777 = vst [vmem:[#allocation180_spill] sm:$0xff] %v6400_v35 }
 0x26f   : > { %1622 = vmatmul.f32.gmra.mxu0 %v5932_v24  ;;  %1699 = vmatmul.f32.gmra.mxu1 %v5932_v24 }
 0x270   : > { %1776 = vmatmul.f32.gmra.mxu2 %v5932_v24  ;;  %1853 = vmatmul.f32.gmra.mxu3 %v5932_v24 }
 0x273   : > { %v6415_v43 = vpop.f32.mrf.mxu2  ;;  %v6417_v35 = vpop.f32.mrf.mxu3 }
 0x274   : > { %8778 = vst [vmem:[#allocation181_spill] sm:$0xff] %v6415_v43  ;;  %v6419_v24 = vpop.f32.mrf.mxu0  ;;  %v6421_v28 = vpop.f32.mrf.mxu1 }
 0x275   : > { %8779 = vst [vmem:[#allocation182_spill] sm:$0xff] %v6417_v35  ;;  %v3053_v35 = vld [vmem:[%s8597_s6 + $0x110] sm:$0xff] }
 0x276   : > { %8780 = vst [vmem:[#allocation183_spill] sm:$0xff] %v6419_v24  ;;  %3314 = vmatpush.msra.mxu2 %v3053_v35  ;;  %v3052_v35 = vld [vmem:[%s8597_s6 + $0x108] sm:$0xff] }
 0x277   : > { %8781 = vst [vmem:[#allocation184_spill] sm:$0xff] %v6421_v28  ;;  %1625 = vmatmul.f32.gmra.mxu0 %v5957_v12  ;;  %1702 = vmatmul.f32.gmra.mxu1 %v5957_v12 }
 0x278   : > { %1779 = vmatmul.f32.gmra.mxu2 %v5957_v12  ;;  %1856 = vmatmul.f32.gmra.mxu3 %v5957_v12 }
 0x279   : > { %3315 = vmatpush.msra.mxu2 %v3052_v35 }
 0x27b   : > { %v6430_v58 = vpop.f32.mrf.mxu2  ;;  %v6432_v27 = vpop.f32.mrf.mxu3 }
 0x27c   : > { %8782 = vst [vmem:[#allocation185_spill] sm:$0xff] %v6430_v58  ;;  %v6434_v24 = vpop.f32.mrf.mxu0  ;;  %v6436_v28 = vpop.f32.mrf.mxu1  ;;  %v3069_v58 = vld [vmem:[%s8597_s6 + $0x190] sm:$0xff] }
 0x27d   : > { %8783 = vst [vmem:[#allocation186_spill] sm:$0xff] %v6432_v27  ;;  %v3021_v27 = vld [vmem:[%s8597_s6 + $0x10] sm:$0xff]  ;;  %3391 = vmatpush.msra.mxu3 %v3069_v58  ;;  %v3020_v58 = vld [vmem:[%s8597_s6 + $0x8] sm:$0xff] }
 0x27e   : > { %8784 = vst [vmem:[#allocation187_spill] sm:$0xff] %v6434_v24  ;;  %3160 = vmatpush.msra.mxu0 %v3021_v27  ;;  %v3068_v27 = vld [vmem:[%s8597_s6 + $0x188] sm:$0xff] }
 0x27f   : > { %8785 = vst [vmem:[#allocation188_spill] sm:$0xff] %v6436_v28  ;;  %1628 = vmatmul.f32.gmra.mxu0 %v5976_v23  ;;  %1705 = vmatmul.f32.gmra.mxu1 %v5976_v23 }
 0x280   : > { %1782 = vmatmul.f32.gmra.mxu2 %v5976_v23  ;;  %1859 = vmatmul.f32.gmra.mxu3 %v5976_v23  ;;  %v3037_v23 = vld [vmem:[%s8597_s6 + $0x90] sm:$0xff] }
 0x281   : > { %3237 = vmatpush.msra.mxu1 %v3037_v23  ;;  %3161 = vmatpush.msra.mxu0 %v3020_v58  ;;  %v3051_v58 = vld [vmem:[%s8597_s6 + $0x100] sm:$0xff] }
 0x282   : > { %3392 = vmatpush.msra.mxu3 %v3068_v27  ;;  %v3067_v27 = vld [vmem:[%s8597_s6 + $0x180] sm:$0xff]  ;;  %3316 = vmatpush.msra.mxu2 %v3051_v58  ;;  %v1283_v58 = vadd.f32 %v6062_v40, %v5016_v32  ;;  %v3130_v32 = vld [vmem:[%s8597_s6 + $0x378] sm:$0xff] }
 0x283   : > { %v6445_v12 = vpop.f32.mrf.mxu2  ;;  %v6447_v18 = vpop.f32.mrf.mxu3  ;;  %v3098_v40 = vld [vmem:[%s8597_s6 + $0x278] sm:$0xff] }
 0x284   : > { %8786 = vst [vmem:[#allocation189_spill] sm:$0xff] %v6445_v12  ;;  %v6449_v24 = vpop.f32.mrf.mxu0  ;;  %v6451_v28 = vpop.f32.mrf.mxu1  ;;  %3393 = vmatpush.msra.mxu3 %v3067_v27  ;;  %3609 = vmatpush.msrb.mxu2 %v3130_v32  ;;  %v1363_v32 = vadd.f32 %v6089_v5, %v5049_v42  ;;  %v1517_v5 = vadd.f32 %v6105_v4, %v5067_v46 }
 0x285   : > { %8787 = vst [vmem:[#allocation190_spill] sm:$0xff] %v6447_v18 }
 0x286   : > { %8788 = vst [vmem:[#allocation191_spill] sm:$0xff] %v6449_v24 }
 0x287   : > { %8789 = vst [vmem:[#allocation192_spill] sm:$0xff] %v6451_v28  ;;  %1631 = vmatmul.f32.gmra.mxu0 %v5995_v51  ;;  %1708 = vmatmul.f32.gmra.mxu1 %v5995_v51  ;;  %v3036_v28 = vld [vmem:[%s8597_s6 + $0x88] sm:$0xff] }
 0x288   : > { %1785 = vmatmul.f32.gmra.mxu2 %v5995_v51  ;;  %1862 = vmatmul.f32.gmra.mxu3 %v5995_v51 }
 0x289   : > { %3238 = vmatpush.msra.mxu1 %v3036_v28  ;;  %v3019_v28 = vld [vmem:[%s8597_s6] sm:$0xff] }
 0x28a   : > { %3162 = vmatpush.msra.mxu0 %v3019_v28 }
 0x28b   : > { %v6478_v51 = vpop.f32.mrf.mxu2  ;;  %v6480_v24 = vpop.f32.mrf.mxu3 }
 0x28c   : > { %8790 = vst [vmem:[#allocation193_spill] sm:$0xff] %v6478_v51  ;;  %v6482_v23 = vpop.f32.mrf.mxu0  ;;  %v6484_v35 = vpop.f32.mrf.mxu1  ;;  %3455 = vmatpush.msrb.mxu0 %v3098_v40 }
 0x28d   : > { %8791 = vst [vmem:[#allocation194_spill] sm:$0xff] %v6480_v24  ;;  %v1881_v24 = vld [vmem:[%s8596_s5] sm:$0xff] }
 0x28e   : > { %8792 = vst [vmem:[#allocation195_spill] sm:$0xff] %v6482_v23  ;;  %v6515_v28 = vperm.slane %v1881_v24, 0  ;;  %v6521_v27 = vperm.slane %v1881_v24, 1 }
 0x28f   : > { %8793 = vst [vmem:[#allocation196_spill] sm:$0xff] %v6484_v35  ;;  %1634 = vmatmul.f32.gmra.mxu0 %v6032_v13  ;;  %1711 = vmatmul.f32.gmra.mxu1 %v6032_v13  ;;  %v3035_v35 = vld [vmem:[%s8597_s6 + $0x80] sm:$0xff] }
 0x290   : > { %1788 = vmatmul.f32.gmra.mxu2 %v6032_v13  ;;  %1865 = vmatmul.f32.gmra.mxu3 %v6032_v13 }
 0x291   : > { %3239 = vmatpush.msra.mxu1 %v3035_v35  ;;  %v1360_v35 = vadd.f32 %v6064_v11, %v5018_v33  ;;  %v3146_v33 = vld [vmem:[%s8597_s6 + $0x3f8] sm:$0xff]  ;;  %v1514_v11 = vadd.f32 %v6083_v15, %v5042_v39 }
 0x292   : > { %3686 = vmatpush.msrb.mxu3 %v3146_v33 }
 0x293   : > { %v6502_v23 = vpop.f32.mrf.mxu2  ;;  %v6504_v13 = vpop.f32.mrf.mxu3 }
 0x294   : > { %8794 = vst [vmem:[#allocation197_spill] sm:$0xff] %v6502_v23  ;;  %v6509_v51 = vpop.f32.mrf.mxu0  ;;  %v6511_v18 = vpop.f32.mrf.mxu1  ;;  %v6527_v23 = vperm.slane %v1881_v24, 2 }
 0x295   : > { %8795 = vst [vmem:[#allocation198_spill] sm:$0xff] %v6504_v13  ;;  %v1437_v13 = vadd.f32 %v6081_v16, %v5040_v38  ;;  %v6543_v38 = vadd.f32 %v6515_v28, %v1283_v58  ;;  %v1286_v58 = vadd.f32 %v6087_v10, %v5047_v41  ;;  %v1440_v41 = vadd.f32 %v6103_v59, %v5065_v45  ;;  %v3129_v10 = vld [vmem:[%s8597_s6 + $0x370] sm:$0xff] }
 0x296   : > { %8796 = vst [vmem:[#allocation199_spill] sm:$0xff] %v6509_v51  ;;  %v6550_v51 = vadd.f32 %v6521_v27, %v1360_v35  ;;  %3610 = vmatpush.msrb.mxu2 %v3129_v10  ;;  %v6592_v59 = vadd.f32 %v6521_v27, %v1363_v32  ;;  %v1443_v10 = vadd.f32 %v6128_v14, %v5093_v53 }
 0x297   : > { %8797 = vst [vmem:[#allocation200_spill] sm:$0xff] %v6511_v18  ;;  %1637 = vmatmul.f32.gmra.mxu0 %v6060_v3  ;;  %1714 = vmatmul.f32.gmra.mxu1 %v6060_v3  ;;  %v6557_v39 = vadd.f32 %v6527_v23, %v1437_v13  ;;  %v3114_v13 = vld [vmem:[%s8597_s6 + $0x2f8] sm:$0xff]  ;;  %v6585_v33 = vadd.f32 %v6515_v28, %v1286_v58  ;;  %vm2059_vm1 = vcmp.gt.f32.partialorder %v6543_v38, 0.0 }
 0x298   : > { %1791 = vmatmul.f32.gmra.mxu2 %v6060_v3  ;;  %1868 = vmatmul.f32.gmra.mxu3 %v6060_v3  ;;  %v6540_v3 = vperm.slane %v1881_v24, 3  ;;  %v2219_v24 = vmin.f32 %v6543_v38, 0.0  ;;  %v2220_v35 = vmin.f32 %v6550_v51, 0.0  ;;  %v6599_v46 = vadd.f32 %v6527_v23, %v1440_v41  ;;  %v3097_v41 = vld [vmem:[%s8597_s6 + $0x270] sm:$0xff] }
 0x299   : > { %v2221_v40 = vmin.f32 %v6557_v39, 0.0  ;;  %3532 = vmatpush.msrb.mxu1 %v3114_v13  ;;  %v2227_v58 = vmin.f32 %v6585_v33, 0.0  ;;  %v2228_v32 = vmin.f32 %v6592_v59, 0.0  ;;  %3456 = vmatpush.msrb.mxu0 %v3097_v41  ;;  %vm2060_vm2 = vcmp.gt.f32.partialorder %v6550_v51, 0.0 }
 0x29a   : > { %v6560_v15 = vadd.f32 %v6540_v3, %v1514_v11  ;;  %v2381_v45 = vmul.f32 1.442695, %v2220_v35  ;;  %v1289_v35 = vadd.f32 %v6109_v60, %v5075_v49  ;;  %v3145_v49 = vld [vmem:[%s8597_s6 + $0x3f0] sm:$0xff]  ;;  %v2229_v60 = vmin.f32 %v6599_v46, 0.0 }
 0x29b   : > { %v6545_v16 = vpop.f32.mrf.mxu2  ;;  %v6547_v18 = vpop.f32.mrf.mxu3  ;;  %3687 = vmatpush.msrb.mxu3 %v3145_v49  ;;  %v2395_v53 = vmul.f32 1.442695, %v2227_v58  ;;  %vm2061_vm3 = vcmp.gt.f32.partialorder %v6557_v39, 0.0  ;;  %vm2067_vm5 = vcmp.gt.f32.partialorder %v6585_v33, 0.0  ;;  %vm2068_vm6 = vcmp.gt.f32.partialorder %v6592_v59, 0.0 }
 0x29c   : > { %8798 = vst [vmem:[#allocation201_spill] sm:$0xff] %v6547_v18  ;;  %v6552_v12 = vpop.f32.mrf.mxu0  ;;  %v6554_v43 = vpop.f32.mrf.mxu1  ;;  %v2222_v42 = vmin.f32 %v6560_v15, 0.0  ;;  %v2383_v18 = vmul.f32 1.442695, %v2221_v40  ;;  %v1366_v40 = vadd.f32 %v6111_v55, %v5077_v50  ;;  %v3113_v50 = vld [vmem:[%s8597_s6 + $0x2f0] sm:$0xff]  ;;  %vm2062_vm4 = vcmp.gt.f32.partialorder %v6560_v15, 0.0 }
 0x29d   : > { %8799 = vst [vmem:[#allocation202_spill] sm:$0xff] %v6552_v12  ;;  %3533 = vmatpush.msrb.mxu1 %v3113_v50  ;;  %vm2069_vm7 = vcmp.gt.f32.partialorder %v6599_v46, 0.0 }
 0x29e   : > { %8800 = vst [vmem:[#allocation203_spill] sm:$0xff] %v6554_v43  ;;  %v2385_v4 = vmul.f32 1.442695, %v2222_v42  ;;  %v6637_v14 = vadd.f32 %v6521_v27, %v1366_v40 }
 0x29f   : > { %1640 = vmatmul.f32.gmra.mxu0 %v6085_v48  ;;  %1717 = vmatmul.f32.gmra.mxu1 %v6085_v48 }
 0x2a0   : > { %1794 = vmatmul.f32.gmra.mxu2 %v6085_v48  ;;  %1871 = vmatmul.f32.gmra.mxu3 %v6085_v48  ;;  %v2379_v48 = vmul.f32 1.442695, %v2219_v24  ;;  %v6602_v24 = vadd.f32 %v6540_v3, %v1517_v5  ;;  %vm2076_vm10 = vcmp.gt.f32.partialorder %v6637_v14, 0.0 }
 0x2a2   : > { %4274 = vpow2.f32 %v2379_v48  ;;  %v2230_v55 = vmin.f32 %v6602_v24, 0.0  ;;  %vm2070_vm8 = vcmp.gt.f32.partialorder %v6602_v24, 0.0 }
 0x2a3   : > { %v6587_v11 = vpop.f32.mrf.mxu2  ;;  %v6589_v43 = vpop.f32.mrf.mxu3  ;;  %4276 = vpow2.f32 %v2381_v45 }
 0x2a4   : > { %v6594_v13 = vpop.f32.mrf.mxu0  ;;  %v6596_v12 = vpop.f32.mrf.mxu1  ;;  %4278 = vpow2.f32 %v2383_v18  ;;  %v6630_v18 = vadd.f32 %v6515_v28, %v1289_v35  ;;  %v2401_v58 = vmul.f32 1.442695, %v2230_v55 }
 0x2a5   : > { %4280 = vpow2.f32 %v2385_v4  ;;  %v2397_v4 = vmul.f32 1.442695, %v2228_v32 }
 0x2a6   : > { %v2235_v40 = vmin.f32 %v6630_v18, 0.0  ;;  %4282 = vpow2.f32 %v2395_v53  ;;  %vm2075_vm9 = vcmp.gt.f32.partialorder %v6630_v18, 0.0 }
 0x2a7   : > { %1643 = vmatmul.f32.gmra.mxu0 %v6107_v61  ;;  %1720 = vmatmul.f32.gmra.mxu1 %v6107_v61  ;;  %4284 = vpow2.f32 %v2397_v4 }
 0x2a8   : > { %1797 = vmatmul.f32.gmra.mxu2 %v6107_v61  ;;  %1874 = vmatmul.f32.gmra.mxu3 %v6107_v61  ;;  %v1520_v61 = vadd.f32 %v6130_v47, %v5095_v54  ;;  %v4275_v41 = vpop.eup %4274  ;;  %v6644_v54 = vadd.f32 %v6527_v23, %v1443_v10  ;;  %v2399_v47 = vmul.f32 1.442695, %v2229_v60  ;;  %v2236_v60 = vmin.f32 %v6637_v14, 0.0 }
 0x2a9   : > { %v4277_v35 = vpop.eup %4276  ;;  %v1369_v10 = vadd.f32 %v6136_v22, %v5102_v57  ;;  %v4055_v55 = vadd.f32 -1.0, %v4275_v41  ;;  %v3096_v57 = vld [vmem:[%s8597_s6 + $0x268] sm:$0xff] }
 0x2aa   : > { %v6647_v49 = vadd.f32 %v6540_v3, %v1520_v61  ;;  %v4279_v50 = vpop.eup %4278  ;;  %v1446_v61 = vadd.f32 %v6154_v44, %v5124_v62  ;;  %v4056_v53 = vadd.f32 -1.0, %v4277_v35  ;;  %4286 = vpow2.f32 %v2399_v47  ;;  %v3144_v22 = vld [vmem:[%s8597_s6 + $0x3e8] sm:$0xff]  ;;  %3457 = vmatpush.msrb.mxu0 %v3096_v57 }
 0x2ab   : > { %v6632_v42 = vpop.f32.mrf.mxu2  ;;  %v6634_v5 = vpop.f32.mrf.mxu3  ;;  %v1523_v62 = vadd.f32 %v6156_v21, %v5126_v63  ;;  %v4057_v44 = vadd.f32 -1.0, %v4279_v50  ;;  %4288 = vpow2.f32 %v2401_v58  ;;  %3688 = vmatpush.msrb.mxu3 %v3144_v22  ;;  %vm2077_vm11 = vcmp.gt.f32.partialorder %v6644_v54, 0.0 }
 0x2ac   : > { %8801 = vst [vmem:[#allocation204_spill] sm:$0xff] %v6634_v5  ;;  %v6639_v48 = vpop.f32.mrf.mxu0  ;;  %v6641_v45 = vpop.f32.mrf.mxu1  ;;  %v2238_v4 = vmin.f32 %v6647_v49, 0.0  ;;  %v6688_v5 = vadd.f32 %v6521_v27, %v1369_v10  ;;  %v6697_v50 = vadd.f32 %v6527_v23, %v1446_v61  ;;  %v2860_v22 = vsel %vm2060_vm2, %v6550_v51, %v4056_v53 }
 0x2ad   : > { %8802 = vst [vmem:[#allocation205_spill] sm:$0xff] %v6639_v48  ;;  %v1292_v48 = vadd.f32 %v6134_v36, %v5100_v56  ;;  %v4281_v32 = vpop.eup %4280  ;;  %v3128_v56 = vld [vmem:[%s8597_s6 + $0x368] sm:$0xff]  ;;  %v2237_v36 = vmin.f32 %v6644_v54, 0.0  ;;  %v6704_v57 = vadd.f32 %v6540_v3, %v1523_v62  ;;  %v8805_v62 = vld [vmem:[#allocation8_spill] sm:$0xff]  ;;  %vm2078_vm12 = vcmp.gt.f32.partialorder %v6647_v49, 0.0 }
 0x2ae   : > { %8803 = vst [vmem:[#allocation206_spill] sm:$0xff] %v6641_v45  ;;  %3611 = vmatpush.msrb.mxu2 %v3128_v56  ;;  %v4058_v56 = vadd.f32 -1.0, %v4281_v32  ;;  %v2411_v45 = vmul.f32 1.442695, %v2235_v40  ;;  %v4283_v58 = vpop.eup %4282  ;;  %v2859_v40 = vsel %vm2059_vm1, %v6543_v38, %v4055_v55  ;;  %v2417_v61 = vmul.f32 1.442695, %v2238_v4 }
 0x2af   : > { %1646 = vmatmul.f32.gmra.mxu0 %v6132_v37  ;;  %1723 = vmatmul.f32.gmra.mxu1 %v6132_v37  ;;  %v6680_v41 = vadd.f32 %v6515_v28, %v1292_v48  ;;  %v2413_v48 = vmul.f32 1.442695, %v2236_v60  ;;  %v2415_v32 = vmul.f32 1.442695, %v2237_v36  ;;  %v4285_v10 = vpop.eup %4284  ;;  %v2861_v60 = vsel %vm2061_vm3, %v6557_v39, %v4057_v44 }
 0x2b0   : > { %1800 = vmatmul.f32.gmra.mxu2 %v6132_v37  ;;  %1877 = vmatmul.f32.gmra.mxu3 %v6132_v37  ;;  %v3112_v37 = vld [vmem:[%s8597_s6 + $0x2e8] sm:$0xff]  ;;  %v1295_v38 = vadd.f32 %v6158_v52, %v5128_v0  ;;  %v2862_v55 = vsel %vm2062_vm4, %v6560_v15, %v4058_v56  ;;  %4290 = vpow2.f32 %v2411_v45  ;;  %v2244_v51 = vmin.f32 %v6688_v5, 0.0  ;;  %v3127_v15 = vld [vmem:[%s8597_s6 + $0x360] sm:$0xff] }
 0x2b1   : > { %3534 = vmatpush.msrb.mxu1 %v3112_v37  ;;  %v4287_v37 = vpop.eup %4286  ;;  %v1372_v39 = vadd.f32 %v6160_v20, %v5130_v1  ;;  %v4063_v53 = vadd.f32 -1.0, %v4283_v58  ;;  %4292 = vpow2.f32 %v2413_v48  ;;  %v2245_v4 = vmin.f32 %v6697_v50, 0.0  ;;  %v3095_v45 = vld [vmem:[%s8597_s6 + $0x260] sm:$0xff]  ;;  %3612 = vmatpush.msrb.mxu2 %v3127_v15 }
 0x2b2   : > { %v4289_v36 = vpop.eup %4288  ;;  %v1449_v0 = vadd.f32 %v6178_v9, %v5152_v6  ;;  %v4064_v52 = vadd.f32 -1.0, %v4285_v10  ;;  %4294 = vpow2.f32 %v2415_v32  ;;  %v3143_v1 = vld [vmem:[%s8597_s6 + $0x3e0] sm:$0xff]  ;;  %v2246_v20 = vmin.f32 %v6704_v57, 0.0  ;;  %3458 = vmatpush.msrb.mxu0 %v3095_v45 }
 0x2b3   : > { %v6682_v47 = vpop.f32.mrf.mxu2  ;;  %v6684_v35 = vpop.f32.mrf.mxu3  ;;  %v1526_v44 = vadd.f32 %v6180_v31, %v8805_v62  ;;  %v4065_v6 = vadd.f32 -1.0, %v4287_v37  ;;  %4296 = vpow2.f32 %v2417_v61  ;;  %v3111_v9 = vld [vmem:[%s8597_s6 + $0x2e0] sm:$0xff]  ;;  %v6740_v56 = vadd.f32 %v6515_v28, %v1295_v38  ;;  %3689 = vmatpush.msrb.mxu3 %v3143_v1 }
 0x2b4   : > { %v6690_v63 = vpop.f32.mrf.mxu0  ;;  %v6692_v21 = vpop.f32.mrf.mxu1  ;;  %3535 = vmatpush.msrb.mxu1 %v3111_v9  ;;  %v6748_v31 = vadd.f32 %v6521_v27, %v1372_v39  ;;  %v6757_v37 = vadd.f32 %v6527_v23, %v1449_v0  ;;  %v2431_v38 = vmul.f32 1.442695, %v2245_v4  ;;  %v2868_v39 = vsel %vm2068_vm6, %v6592_v59, %v4064_v52  ;;  %v8808_v52 = vld [vmem:[#allocation10_spill] sm:$0xff]  ;;  %v8810_v9 = vld [vmem:[#allocation11_spill] sm:$0xff] }
 0x2b5   : > { %8804 = vst [vmem:[#allocation207_spill] sm:$0xff] %v6692_v21  ;;  %v2243_v21 = vmin.f32 %v6680_v41, 0.0  ;;  %v2433_v0 = vmul.f32 1.442695, %v2246_v20  ;;  %v2251_v45 = vmin.f32 %v6740_v56, 0.0  ;;  %vm2083_vm13 = vcmp.gt.f32.partialorder %v6680_v41, 0.0 }
 0x2b6   : > { %v4291_v61 = vpop.eup %4290  ;;  %v2252_v59 = vmin.f32 %v6748_v31, 0.0  ;;  %vm2084_vm14 = vcmp.gt.f32.partialorder %v6688_v5, 0.0  ;;  %vm2085_vm15 = vcmp.gt.f32.partialorder %v6697_v50, 0.0  ;;  %vm2086_vm1 = vcmp.gt.f32.partialorder %v6704_v57, 0.0 }
 0x2b7   : > { %3163 = vmatmul.f32.vlgmr.msra.gmra.mxu0 %v2859_v40  ;;  %3240 = vmatmul.f32.vlgmr.msra.gmra.mxu1 %v2860_v22  ;;  %v4066_v40 = vadd.f32 -1.0, %v4289_v36  ;;  %v2427_v32 = vmul.f32 1.442695, %v2243_v21  ;;  %v2867_v21 = vsel %vm2067_vm5, %v6585_v33, %v4063_v53  ;;  %v6764_v36 = vadd.f32 %v6540_v3, %v1526_v44  ;;  %v8806_v33 = vld [vmem:[#allocation9_spill] sm:$0xff]  ;;  %v8809_v44 = vld [vmem:[#allocation150_spill] sm:$0xff] }
 0x2b8   : > { %3317 = vmatmul.f32.vlgmr.msra.gmra.mxu2 %v2861_v60  ;;  %3394 = vmatmul.f32.vlgmr.msra.gmra.mxu3 %v2862_v55  ;;  %v2429_v60 = vmul.f32 1.442695, %v2244_v51  ;;  %v4293_v55 = vpop.eup %4292  ;;  %v2869_v51 = vsel %vm2069_vm7, %v6599_v46, %v4065_v6  ;;  %v8807_v53 = vld [vmem:[#allocation149_spill] sm:$0xff]  ;;  %v1375_v46 = vadd.f32 %v8809_v44, %v8808_v52  ;;  %v4071_v20 = vadd.f32 -1.0, %v4291_v61  ;;  %v8811_v61 = vld [vmem:[#allocation12_spill] sm:$0xff] }
 0x2b9   : > { %v4295_v15 = vpop.eup %4294  ;;  %v1298_v1 = vadd.f32 %v8807_v53, %v8806_v33  ;;  %v2870_v4 = vsel %vm2070_vm8, %v6602_v24, %v4066_v40  ;;  %4298 = vpow2.f32 %v2427_v32  ;;  %v2253_v6 = vmin.f32 %v6757_v37, 0.0  ;;  %v3126_v24 = vld [vmem:[%s8597_s6 + $0x358] sm:$0xff] }
 0x2ba   : > { %v4297_v62 = vpop.eup %4296  ;;  %4300 = vpow2.f32 %v2429_v60  ;;  %v3094_v40 = vld [vmem:[%s8597_s6 + $0x258] sm:$0xff]  ;;  %v2254_v60 = vmin.f32 %v6764_v36, 0.0  ;;  %3613 = vmatpush.msrb.mxu2 %v3126_v24  ;;  %v2443_v52 = vmul.f32 1.442695, %v2251_v45  ;;  %v6805_v44 = vadd.f32 %v6521_v27, %v1375_v46 }
 0x2bb   : > { %v6742_v48 = vpop.f32.mrf.mxu2  ;;  %v6744_v58 = vpop.f32.mrf.mxu3  ;;  %4302 = vpow2.f32 %v2431_v38  ;;  %v3142_v32 = vld [vmem:[%s8597_s6 + $0x3d8] sm:$0xff]  ;;  %3459 = vmatpush.msrb.mxu0 %v3094_v40  ;;  %v6797_v38 = vadd.f32 %v6515_v28, %v1298_v1  ;;  %v2875_v45 = vsel %vm2075_vm9, %v6630_v18, %v4071_v20  ;;  %v8815_v18 = vld [vmem:[#allocation13_spill] sm:$0xff]  ;;  %v8816_v20 = vld [vmem:[#allocation152_spill] sm:$0xff]  ;;  %vm2091_vm2 = vcmp.gt.f32.partialorder %v6740_v56, 0.0 }
 0x2bc   : > { %v6750_v10 = vpop.f32.mrf.mxu0  ;;  %v6752_v22 = vpop.f32.mrf.mxu1  ;;  %4304 = vpow2.f32 %v2433_v0  ;;  %3690 = vmatpush.msrb.mxu3 %v3142_v32  ;;  %vm2092_vm3 = vcmp.gt.f32.partialorder %v6748_v31, 0.0  ;;  %vm2093_vm4 = vcmp.gt.f32.partialorder %v6757_v37, 0.0  ;;  %vm2094_vm5 = vcmp.gt.f32.partialorder %v6764_v36, 0.0 }
 0x2bd   : > { %4306 = vpow2.f32 %v2443_v52  ;;  %v3125_v52 = vld [vmem:[%s8597_s6 + $0x350] sm:$0xff]  ;;  %vm2099_vm6 = vcmp.gt.f32.partialorder %v6797_v38, 0.0  ;;  %vm2100_vm7 = vcmp.gt.f32.partialorder %v6805_v44, 0.0 }
 0x2be   : > { %3614 = vmatpush.msrb.mxu2 %v3125_v52 }
 0x2bf   : > { %3166 = vmatmul.f32.gmra.mxu0 %v2867_v21  ;;  %3243 = vmatmul.f32.gmra.mxu1 %v2868_v39  ;;  %v1452_v21 = vadd.f32 %v6199_v17, %v8810_v9  ;;  %v4072_v39 = vadd.f32 -1.0, %v4293_v55  ;;  %v4073_v17 = vadd.f32 -1.0, %v4295_v15  ;;  %v2445_v15 = vmul.f32 1.442695, %v2252_v59  ;;  %v4299_v1 = vpop.eup %4298 }
 0x2c0   : > { %3320 = vmatmul.f32.gmra.mxu2 %v2869_v51  ;;  %3397 = vmatmul.f32.gmra.mxu3 %v2870_v4  ;;  %v8812_v51 = vld [vmem:[#allocation151_spill] sm:$0xff]  ;;  %v4074_v4 = vadd.f32 -1.0, %v4297_v62  ;;  %v2447_v62 = vmul.f32 1.442695, %v2253_v6  ;;  %v4301_v46 = vpop.eup %4300 }
 0x2c1   : > { %v1529_v33 = vadd.f32 %v8812_v51, %v8811_v61  ;;  %v6814_v24 = vadd.f32 %v6527_v23, %v1452_v21  ;;  %v2876_v32 = vsel %vm2076_vm10, %v6637_v14, %v4072_v39  ;;  %v2877_v59 = vsel %vm2077_vm11, %v6644_v54, %v4073_v17  ;;  %v4303_v61 = vpop.eup %4302  ;;  %v8817_v39 = vld [vmem:[#allocation14_spill] sm:$0xff]  ;;  %v3110_v17 = vld [vmem:[%s8597_s6 + $0x2d8] sm:$0xff] }
 0x2c2   : > { %v2449_v21 = vmul.f32 1.442695, %v2254_v60  ;;  %v2259_v51 = vmin.f32 %v6797_v38, 0.0  ;;  %v2878_v6 = vsel %vm2078_vm12, %v6647_v49, %v4074_v4  ;;  %v2260_v14 = vmin.f32 %v6805_v44, 0.0  ;;  %3536 = vmatpush.msrb.mxu1 %v3110_v17 }
 0x2c3   : > { %v6799_v55 = vpop.f32.mrf.mxu2  ;;  %v6801_v53 = vpop.f32.mrf.mxu3  ;;  %v6821_v40 = vadd.f32 %v6540_v3, %v1529_v33  ;;  %v4079_v60 = vadd.f32 -1.0, %v4299_v1  ;;  %4308 = vpow2.f32 %v2445_v15  ;;  %v4080_v4 = vadd.f32 -1.0, %v4301_v46  ;;  %v8820_v1 = vld [vmem:[#allocation16_spill] sm:$0xff]  ;;  %v8821_v15 = vld [vmem:[#allocation154_spill] sm:$0xff] }
 0x2c4   : > { %v6807_v9 = vpop.f32.mrf.mxu0  ;;  %v6809_v0 = vpop.f32.mrf.mxu1  ;;  %4310 = vpow2.f32 %v2447_v62  ;;  %v2459_v46 = vmul.f32 1.442695, %v2259_v51  ;;  %vm2101_vm8 = vcmp.gt.f32.partialorder %v6814_v24, 0.0 }
 0x2c5   : > { %8813 = vst [vmem:[#allocation8_spill] sm:$0xff] %v6807_v9  ;;  %v4305_v33 = vpop.eup %4304  ;;  %v8818_v9 = vld [vmem:[#allocation153_spill] sm:$0xff]  ;;  %4312 = vpow2.f32 %v2449_v21  ;;  %v2883_v51 = vsel %vm2083_vm13, %v6680_v41, %v4079_v60  ;;  %vm2102_vm9 = vcmp.gt.f32.partialorder %v6821_v40, 0.0 }
 0x2c6   : > { %8814 = vst [vmem:[#allocation9_spill] sm:$0xff] %v6809_v0  ;;  %v1301_v0 = vadd.f32 %v8816_v20, %v8815_v18  ;;  %v1378_v54 = vadd.f32 %v8818_v9, %v8817_v39  ;;  %v2262_v9 = vmin.f32 %v6821_v40, 0.0  ;;  %v4081_v18 = vadd.f32 -1.0, %v4303_v61  ;;  %v4307_v21 = vpop.eup %4306  ;;  %v8826_v60 = vld [vmem:[#allocation17_spill] sm:$0xff] }
 0x2c7   : > { %3169 = vmatmul.f32.gmra.mxu0 %v2875_v45  ;;  %3246 = vmatmul.f32.gmra.mxu1 %v2876_v32  ;;  %v2261_v45 = vmin.f32 %v6814_v24, 0.0  ;;  %v8819_v32 = vld [vmem:[#allocation15_spill] sm:$0xff]  ;;  %v4082_v62 = vadd.f32 -1.0, %v4305_v33  ;;  %v2884_v33 = vsel %vm2084_vm14, %v6688_v5, %v4080_v4  ;;  %4314 = vpow2.f32 %v2459_v46 }
 0x2c8   : > { %3323 = vmatmul.f32.gmra.mxu2 %v2877_v59  ;;  %3400 = vmatmul.f32.gmra.mxu3 %v2878_v6  ;;  %v1455_v49 = vadd.f32 %v6217_v30, %v8819_v32  ;;  %v1532_v59 = vadd.f32 %v8821_v15, %v8820_v1  ;;  %v6851_v20 = vadd.f32 %v6515_v28, %v1301_v0  ;;  %v2461_v0 = vmul.f32 1.442695, %v2260_v14 }
 0x2c9   : > { %v6859_v39 = vadd.f32 %v6521_v27, %v1378_v54  ;;  %v2463_v54 = vmul.f32 1.442695, %v2261_v45  ;;  %v4309_v52 = vpop.eup %4308  ;;  %v2885_v14 = vsel %vm2085_vm15, %v6697_v50, %v4081_v18  ;;  %v2886_v45 = vsel %vm2086_vm1, %v6704_v57, %v4082_v62  ;;  %v8828_v50 = vld [vmem:[#allocation18_spill] sm:$0xff]  ;;  %v8829_v18 = vld [vmem:[#allocation156_spill] sm:$0xff]  ;;  %v8830_v62 = vld [vmem:[#allocation19_spill] sm:$0xff] }
 0x2ca   : > { %v6868_v61 = vadd.f32 %v6527_v23, %v1455_v49  ;;  %v6878_v1 = vadd.f32 %v6540_v3, %v1532_v59  ;;  %v2465_v49 = vmul.f32 1.442695, %v2262_v9  ;;  %v4311_v15 = vpop.eup %4310  ;;  %v2267_v41 = vmin.f32 %v6851_v20, 0.0 }
 0x2cb   : > { %v6853_v6 = vpop.f32.mrf.mxu2  ;;  %v6855_v30 = vpop.f32.mrf.mxu3  ;;  %v2268_v59 = vmin.f32 %v6859_v39, 0.0  ;;  %v4087_v9 = vadd.f32 -1.0, %v4307_v21  ;;  %4316 = vpow2.f32 %v2461_v0  ;;  %v1458_v46 = vadd.f32 %v6238_v7, %v8830_v62  ;;  %v3109_v0 = vld [vmem:[%s8597_s6 + $0x2d0] sm:$0xff] }
 0x2cc   : > { %8822 = vst [vmem:[#allocation149_spill] sm:$0xff] %v6853_v6  ;;  %v6861_v17 = vpop.f32.mrf.mxu0  ;;  %v6863_v32 = vpop.f32.mrf.mxu1  ;;  %v2269_v57 = vmin.f32 %v6868_v61, 0.0  ;;  %4318 = vpow2.f32 %v2463_v54  ;;  %v2270_v21 = vmin.f32 %v6878_v1, 0.0  ;;  %3537 = vmatpush.msrb.mxu1 %v3109_v0  ;;  %vm2107_vm10 = vcmp.gt.f32.partialorder %v6851_v20, 0.0 }
 0x2cd   : > { %8823 = vst [vmem:[#allocation10_spill] sm:$0xff] %v6855_v30  ;;  %v4313_v4 = vpop.eup %4312  ;;  %4320 = vpow2.f32 %v2465_v49  ;;  %v2477_v49 = vmul.f32 1.442695, %v2268_v59  ;;  %vm2108_vm11 = vcmp.gt.f32.partialorder %v6859_v39, 0.0  ;;  %vm2109_vm12 = vcmp.gt.f32.partialorder %v6868_v61, 0.0 }
 0x2ce   : > { %8824 = vst [vmem:[#allocation150_spill] sm:$0xff] %v6861_v17  ;;  %v1381_v17 = vadd.f32 %v8829_v18, %v8828_v50  ;;  %v4089_v50 = vadd.f32 -1.0, %v4311_v15  ;;  %v4315_v15 = vpop.eup %4314  ;;  %vm2110_vm13 = vcmp.gt.f32.partialorder %v6878_v1, 0.0 }
 0x2cf   : > { %8825 = vst [vmem:[#allocation11_spill] sm:$0xff] %v6863_v32  ;;  %v8827_v32 = vld [vmem:[#allocation155_spill] sm:$0xff]  ;;  %3172 = vmatmul.f32.gmra.mxu0 %v2883_v51  ;;  %3249 = vmatmul.f32.gmra.mxu1 %v2884_v33  ;;  %v3141_v51 = vld [vmem:[%s8597_s6 + $0x3d0] sm:$0xff]  ;;  %v4088_v33 = vadd.f32 -1.0, %v4309_v52  ;;  %v4090_v52 = vadd.f32 -1.0, %v4313_v4 }
 0x2d0   : > { %v1304_v5 = vadd.f32 %v8827_v32, %v8826_v60  ;;  %3326 = vmatmul.f32.gmra.mxu2 %v2885_v14  ;;  %3403 = vmatmul.f32.gmra.mxu3 %v2886_v45  ;;  %v3093_v32 = vld [vmem:[%s8597_s6 + $0x250] sm:$0xff]  ;;  %v8831_v14 = vld [vmem:[#allocation20_spill] sm:$0xff]  ;;  %v8832_v60 = vld [vmem:[#allocation157_spill] sm:$0xff]  ;;  %v2893_v59 = vsel %vm2093_vm4, %v6757_v37, %v4089_v50 }
 0x2d1   : > { %3460 = vmatpush.msrb.mxu0 %v3093_v32  ;;  %3691 = vmatpush.msrb.mxu3 %v3141_v51  ;;  %v1535_v45 = vadd.f32 %v8832_v60, %v8831_v14  ;;  %v2475_v32 = vmul.f32 1.442695, %v2267_v41  ;;  %v6917_v51 = vadd.f32 %v6521_v27, %v1381_v17  ;;  %v2891_v41 = vsel %vm2091_vm2, %v6740_v56, %v4087_v9  ;;  %v4317_v4 = vpop.eup %4316  ;;  %v8837_v56 = vld [vmem:[#allocation21_spill] sm:$0xff]  ;;  %v8838_v9 = vld [vmem:[#allocation158_spill] sm:$0xff] }
 0x2d2   : > { %v6909_v18 = vadd.f32 %v6515_v28, %v1304_v5  ;;  %v6926_v5 = vadd.f32 %v6527_v23, %v1458_v46  ;;  %v2479_v17 = vmul.f32 1.442695, %v2269_v57  ;;  %v2892_v60 = vsel %vm2092_vm3, %v6748_v31, %v4088_v33  ;;  %v8839_v33 = vld [vmem:[#allocation22_spill] sm:$0xff]  ;;  %v3124_v50 = vld [vmem:[%s8597_s6 + $0x348] sm:$0xff] }
 0x2d3   : > { %v6911_v7 = vpop.f32.mrf.mxu2  ;;  %v6913_v54 = vpop.f32.mrf.mxu3  ;;  %v6933_v0 = vadd.f32 %v6540_v3, %v1535_v45  ;;  %v2481_v46 = vmul.f32 1.442695, %v2270_v21  ;;  %v2894_v57 = vsel %vm2094_vm5, %v6764_v36, %v4090_v52  ;;  %4322 = vpow2.f32 %v2475_v32  ;;  %3615 = vmatpush.msrb.mxu2 %v3124_v50  ;;  %v3140_v32 = vld [vmem:[%s8597_s6 + $0x3c8] sm:$0xff] }
 0x2d4   : > { %8833 = vst [vmem:[#allocation12_spill] sm:$0xff] %v6911_v7  ;;  %v6919_v62 = vpop.f32.mrf.mxu0  ;;  %v6921_v14 = vpop.f32.mrf.mxu1  ;;  %v2276_v31 = vmin.f32 %v6917_v51, 0.0  ;;  %v8840_v7 = vld [vmem:[#allocation159_spill] sm:$0xff]  ;;  %v4095_v21 = vadd.f32 -1.0, %v4315_v15  ;;  %4324 = vpow2.f32 %v2477_v49  ;;  %v4096_v52 = vadd.f32 -1.0, %v4317_v4  ;;  %v3108_v49 = vld [vmem:[%s8597_s6 + $0x2c8] sm:$0xff]  ;;  %3692 = vmatpush.msrb.mxu3 %v3140_v32 }
 0x2d5   : > { %8834 = vst [vmem:[#allocation151_spill] sm:$0xff] %v6913_v54  ;;  %v1307_v54 = vadd.f32 %v8838_v9, %v8837_v56  ;;  %v1384_v37 = vadd.f32 %v8840_v7, %v8839_v33  ;;  %v8842_v56 = vld [vmem:[#allocation160_spill] sm:$0xff]  ;;  %4326 = vpow2.f32 %v2479_v17  ;;  %v3092_v7 = vld [vmem:[%s8597_s6 + $0x248] sm:$0xff]  ;;  %v2278_v15 = vmin.f32 %v6933_v0, 0.0  ;;  %3538 = vmatpush.msrb.mxu1 %v3108_v49 }
 0x2d6   : > { %8835 = vst [vmem:[#allocation13_spill] sm:$0xff] %v6919_v62  ;;  %v2275_v62 = vmin.f32 %v6909_v18, 0.0  ;;  %v8844_v9 = vld [vmem:[#allocation161_spill] sm:$0xff]  ;;  %4328 = vpow2.f32 %v2481_v46  ;;  %3461 = vmatpush.msrb.mxu0 %v3092_v7  ;;  %v2493_v46 = vmul.f32 1.442695, %v2276_v31  ;;  %vm2115_vm14 = vcmp.gt.f32.partialorder %v6909_v18, 0.0 }
 0x2d7   : > { %8836 = vst [vmem:[#allocation152_spill] sm:$0xff] %v6921_v14  ;;  %v4319_v14 = vpop.eup %4318  ;;  %3175 = vmatmul.f32.gmra.mxu0 %v2891_v41  ;;  %3252 = vmatmul.f32.gmra.mxu1 %v2892_v60  ;;  %v2277_v41 = vmin.f32 %v6926_v5, 0.0  ;;  %v8841_v60 = vld [vmem:[#allocation23_spill] sm:$0xff]  ;;  %v6969_v17 = vadd.f32 %v6515_v28, %v1307_v54  ;;  %v6977_v30 = vadd.f32 %v6521_v27, %v1384_v37  ;;  %v2497_v31 = vmul.f32 1.442695, %v2278_v15 }
 0x2d8   : > { %v4321_v45 = vpop.eup %4320  ;;  %3329 = vmatmul.f32.gmra.mxu2 %v2893_v59  ;;  %3406 = vmatmul.f32.gmra.mxu3 %v2894_v57  ;;  %v1461_v36 = vadd.f32 %v8842_v56, %v8841_v60  ;;  %v8843_v59 = vld [vmem:[#allocation24_spill] sm:$0xff]  ;;  %v4097_v4 = vadd.f32 -1.0, %v4319_v14  ;;  %v2491_v56 = vmul.f32 1.442695, %v2275_v62  ;;  %v2899_v54 = vsel %vm2099_vm6, %v6797_v38, %v4095_v21 }
 0x2d9   : > { %v1538_v57 = vadd.f32 %v8844_v9, %v8843_v59  ;;  %v4098_v60 = vadd.f32 -1.0, %v4321_v45  ;;  %v4323_v7 = vpop.eup %4322  ;;  %v2900_v62 = vsel %vm2100_vm7, %v6805_v44, %v4096_v52  ;;  %v2495_v45 = vmul.f32 1.442695, %v2277_v41  ;;  %v8849_v44 = vld [vmem:[#allocation25_spill] sm:$0xff]  ;;  %v8850_v52 = vld [vmem:[#allocation162_spill] sm:$0xff] }
 0x2da   : > { %v6988_v32 = vadd.f32 %v6527_v23, %v1461_v36  ;;  %v4325_v37 = vpop.eup %4324  ;;  %v2901_v38 = vsel %vm2101_vm8, %v6814_v24, %v4097_v4  ;;  %v2283_v36 = vmin.f32 %v6969_v17, 0.0  ;;  %v1310_v9 = vadd.f32 %v8850_v52, %v8849_v44  ;;  %v8851_v24 = vld [vmem:[#allocation26_spill] sm:$0xff]  ;;  %v8852_v4 = vld [vmem:[#allocation163_spill] sm:$0xff] }
 0x2db   : > { %v6971_v33 = vpop.f32.mrf.mxu2  ;;  %v6973_v50 = vpop.f32.mrf.mxu3  ;;  %v6996_v49 = vadd.f32 %v6540_v3, %v1538_v57  ;;  %v2902_v41 = vsel %vm2102_vm9, %v6821_v40, %v4098_v60  ;;  %4330 = vpow2.f32 %v2491_v56  ;;  %v4103_v15 = vadd.f32 -1.0, %v4323_v7  ;;  %v8853_v44 = vld [vmem:[#allocation27_spill] sm:$0xff]  ;;  %v3123_v40 = vld [vmem:[%s8597_s6 + $0x340] sm:$0xff] }
 0x2dc   : > { %8845 = vst [vmem:[#allocation14_spill] sm:$0xff] %v6971_v33  ;;  %v6979_v59 = vpop.f32.mrf.mxu0  ;;  %v6981_v14 = vpop.f32.mrf.mxu1  ;;  %4332 = vpow2.f32 %v2493_v46  ;;  %v3091_v60 = vld [vmem:[%s8597_s6 + $0x240] sm:$0xff]  ;;  %3616 = vmatpush.msrb.mxu2 %v3123_v40  ;;  %vm2116_vm15 = vcmp.gt.f32.partialorder %v6917_v51, 0.0  ;;  %vm2117_vm1 = vcmp.gt.f32.partialorder %v6926_v5, 0.0  ;;  %vm2118_vm2 = vcmp.gt.f32.partialorder %v6933_v0, 0.0 }
 0x2dd   : > { %8846 = vst [vmem:[#allocation153_spill] sm:$0xff] %v6973_v50  ;;  %v4327_v21 = vpop.eup %4326  ;;  %v2285_v50 = vmin.f32 %v6988_v32, 0.0  ;;  %4334 = vpow2.f32 %v2495_v45  ;;  %v3139_v56 = vld [vmem:[%s8597_s6 + $0x3c0] sm:$0xff]  ;;  %v2286_v46 = vmin.f32 %v6996_v49, 0.0  ;;  %3462 = vmatpush.msrb.mxu0 %v3091_v60  ;;  %vm2123_vm3 = vcmp.gt.f32.partialorder %v6969_v17, 0.0 }
 0x2de   : > { %8847 = vst [vmem:[#allocation15_spill] sm:$0xff] %v6979_v59  ;;  %v4329_v57 = vpop.eup %4328  ;;  %v1387_v59 = vadd.f32 %v8852_v4, %v8851_v24  ;;  %v8854_v7 = vld [vmem:[#allocation28_spill] sm:$0xff]  ;;  %4336 = vpow2.f32 %v2497_v31  ;;  %v2507_v4 = vmul.f32 1.442695, %v2283_v36  ;;  %3693 = vmatpush.msrb.mxu3 %v3139_v56  ;;  %v8859_v36 = vld [vmem:[#allocation29_spill] sm:$0xff]  ;;  %vm2124_vm4 = vcmp.gt.f32.partialorder %v6977_v30, 0.0 }
 0x2df   : > { %8848 = vst [vmem:[#allocation16_spill] sm:$0xff] %v6981_v14  ;;  %3178 = vmatmul.f32.gmra.mxu0 %v2899_v54  ;;  %3255 = vmatmul.f32.gmra.mxu1 %v2900_v62  ;;  %v2284_v14 = vmin.f32 %v6977_v30, 0.0  ;;  %v1464_v54 = vadd.f32 %v6286_v29, %v8853_v44  ;;  %v4104_v62 = vadd.f32 -1.0, %v4325_v37  ;;  %v4105_v29 = vadd.f32 -1.0, %v4327_v21  ;;  %v3107_v45 = vld [vmem:[%s8597_s6 + $0x2c0] sm:$0xff] }
 0x2e0   : > { %3332 = vmatmul.f32.gmra.mxu2 %v2901_v38  ;;  %3409 = vmatmul.f32.gmra.mxu3 %v2902_v41  ;;  %v1541_v38 = vadd.f32 %v6288_v25, %v8854_v7  ;;  %v7030_v37 = vadd.f32 %v6515_v28, %v1310_v9  ;;  %v4106_v24 = vadd.f32 -1.0, %v4329_v57  ;;  %v7038_v25 = vadd.f32 %v6521_v27, %v1387_v59  ;;  %v8860_v60 = vld [vmem:[#allocation164_spill] sm:$0xff] }
 0x2e1   : > { %3539 = vmatpush.msrb.mxu1 %v3107_v45  ;;  %v2907_v9 = vsel %vm2107_vm10, %v6851_v20, %v4103_v15  ;;  %v2509_v44 = vmul.f32 1.442695, %v2284_v14  ;;  %v4331_v57 = vpop.eup %4330  ;;  %v7049_v40 = vadd.f32 %v6527_v23, %v1464_v54  ;;  %v1313_v56 = vadd.f32 %v8860_v60, %v8859_v36  ;;  %v8861_v36 = vld [vmem:[#allocation30_spill] sm:$0xff]  ;;  %v8862_v60 = vld [vmem:[#allocation165_spill] sm:$0xff] }
 0x2e2   : > { %v2511_v59 = vmul.f32 1.442695, %v2285_v50  ;;  %v4333_v7 = vpop.eup %4332  ;;  %v7055_v45 = vadd.f32 %v6540_v3, %v1541_v38  ;;  %v2908_v20 = vsel %vm2108_vm11, %v6859_v39, %v4104_v62  ;;  %v2909_v14 = vsel %vm2109_vm12, %v6868_v61, %v4105_v29  ;;  %v8863_v62 = vld [vmem:[#allocation31_spill] sm:$0xff] }
 0x2e3   : > { %v7032_v52 = vpop.f32.mrf.mxu2  ;;  %v7034_v41 = vpop.f32.mrf.mxu3  ;;  %v2513_v15 = vmul.f32 1.442695, %v2286_v46  ;;  %v2910_v50 = vsel %vm2110_vm13, %v6878_v1, %v4106_v24  ;;  %4338 = vpow2.f32 %v2507_v4  ;;  %v2292_v39 = vmin.f32 %v7038_v25, 0.0  ;;  %v3122_v1 = vld [vmem:[%s8597_s6 + $0x338] sm:$0xff] }
 0x2e4   : > { %8855 = vst [vmem:[#allocation154_spill] sm:$0xff] %v7032_v52  ;;  %v7040_v31 = vpop.f32.mrf.mxu0  ;;  %v7042_v21 = vpop.f32.mrf.mxu1  ;;  %v1467_v61 = vadd.f32 %v6307_v19, %v8863_v62  ;;  %v4111_v46 = vadd.f32 -1.0, %v4331_v57  ;;  %4340 = vpow2.f32 %v2509_v44  ;;  %v2293_v29 = vmin.f32 %v7049_v40, 0.0  ;;  %v3090_v24 = vld [vmem:[%s8597_s6 + $0x238] sm:$0xff]  ;;  %v8864_v44 = vld [vmem:[#allocation32_spill] sm:$0xff]  ;;  %v8865_v57 = vld [vmem:[#allocation166_spill] sm:$0xff]  ;;  %3617 = vmatpush.msrb.mxu2 %v3122_v1 }
 0x2e5   : > { %8856 = vst [vmem:[#allocation17_spill] sm:$0xff] %v7034_v41  ;;  %v4335_v54 = vpop.eup %4334  ;;  %4342 = vpow2.f32 %v2511_v59  ;;  %v3138_v19 = vld [vmem:[%s8597_s6 + $0x3b8] sm:$0xff]  ;;  %v2294_v4 = vmin.f32 %v7055_v45, 0.0  ;;  %3463 = vmatpush.msrb.mxu0 %v3090_v24  ;;  %vm2125_vm5 = vcmp.gt.f32.partialorder %v6988_v32, 0.0  ;;  %vm2126_vm6 = vcmp.gt.f32.partialorder %v6996_v49, 0.0 }
 0x2e6   : > { %8857 = vst [vmem:[#allocation155_spill] sm:$0xff] %v7040_v31  ;;  %v1390_v31 = vadd.f32 %v8862_v60, %v8861_v36  ;;  %v4337_v38 = vpop.eup %4336  ;;  %4344 = vpow2.f32 %v2513_v15  ;;  %3694 = vmatpush.msrb.mxu3 %v3138_v19  ;;  %v7097_v62 = vadd.f32 %v6527_v23, %v1467_v61  ;;  %v8871_v24 = vld [vmem:[#allocation167_spill] sm:$0xff]  ;;  %vm2131_vm7 = vcmp.gt.f32.partialorder %v7030_v37, 0.0 }
 0x2e7   : > { %8858 = vst [vmem:[#allocation18_spill] sm:$0xff] %v7042_v21  ;;  %v2291_v21 = vmin.f32 %v7030_v37, 0.0  ;;  %3181 = vmatmul.f32.gmra.mxu0 %v2907_v9  ;;  %3258 = vmatmul.f32.gmra.mxu1 %v2908_v20  ;;  %v7074_v9 = vadd.f32 %v6515_v28, %v1313_v56  ;;  %v4112_v20 = vadd.f32 -1.0, %v4333_v7  ;;  %v1544_v56 = vadd.f32 %v8865_v57, %v8864_v44 }
 0x2e8   : > { %3335 = vmatmul.f32.gmra.mxu2 %v2909_v14  ;;  %3412 = vmatmul.f32.gmra.mxu3 %v2910_v50  ;;  %v4113_v14 = vadd.f32 -1.0, %v4335_v54  ;;  %v7089_v59 = vadd.f32 %v6521_v27, %v1390_v31  ;;  %v4114_v60 = vadd.f32 -1.0, %v4337_v38  ;;  %v2915_v31 = vsel %vm2115_vm14, %v6909_v18, %v4111_v46  ;;  %v8870_v38 = vld [vmem:[#allocation33_spill] sm:$0xff] }
 0x2e9   : > { %v2523_v50 = vmul.f32 1.442695, %v2291_v21  ;;  %v2525_v54 = vmul.f32 1.442695, %v2292_v39  ;;  %v4339_v1 = vpop.eup %4338  ;;  %v2299_v21 = vmin.f32 %v7074_v9, 0.0  ;;  %v1316_v61 = vadd.f32 %v8871_v24, %v8870_v38  ;;  %v8872_v38 = vld [vmem:[#allocation34_spill] sm:$0xff] }
 0x2ea   : > { %v2916_v19 = vsel %vm2116_vm15, %v6917_v51, %v4112_v20  ;;  %v2527_v57 = vmul.f32 1.442695, %v2293_v29  ;;  %v2917_v18 = vsel %vm2117_vm1, %v6926_v5, %v4113_v14  ;;  %v2529_v39 = vmul.f32 1.442695, %v2294_v4  ;;  %v8873_v24 = vld [vmem:[#allocation168_spill] sm:$0xff]  ;;  %v8874_v5 = vld [vmem:[#allocation35_spill] sm:$0xff] }
 0x2eb   : > { %v7091_v7 = vpop.f32.mrf.mxu2  ;;  %v7093_v36 = vpop.f32.mrf.mxu3  ;;  %v2918_v51 = vsel %vm2118_vm2, %v6933_v0, %v4114_v60  ;;  %4346 = vpow2.f32 %v2523_v50  ;;  %v2301_v20 = vmin.f32 %v7097_v62, 0.0  ;;  %v4119_v4 = vadd.f32 -1.0, %v4339_v1  ;;  %v3106_v14 = vld [vmem:[%s8597_s6 + $0x2b8] sm:$0xff]  ;;  %v3121_v60 = vld [vmem:[%s8597_s6 + $0x330] sm:$0xff]  ;;  %v8875_v50 = vld [vmem:[#allocation36_spill] sm:$0xff] }
 0x2ec   : > { %8866 = vst [vmem:[#allocation156_spill] sm:$0xff] %v7091_v7  ;;  %v7099_v44 = vpop.f32.mrf.mxu0  ;;  %v7101_v15 = vpop.f32.mrf.mxu1  ;;  %v1393_v7 = vadd.f32 %v8873_v24, %v8872_v38  ;;  %4348 = vpow2.f32 %v2525_v54  ;;  %v2539_v0 = vmul.f32 1.442695, %v2299_v21  ;;  %3540 = vmatpush.msrb.mxu1 %v3106_v14  ;;  %v8876_v1 = vld [vmem:[#allocation169_spill] sm:$0xff]  ;;  %3618 = vmatpush.msrb.mxu2 %v3121_v60  ;;  %vm2132_vm8 = vcmp.gt.f32.partialorder %v7038_v25, 0.0 }
 0x2ed   : > { %8867 = vst [vmem:[#allocation19_spill] sm:$0xff] %v7093_v36  ;;  %v2300_v36 = vmin.f32 %v7089_v59, 0.0  ;;  %4350 = vpow2.f32 %v2527_v57  ;;  %v1547_v54 = vadd.f32 %v8876_v1, %v8875_v50  ;;  %vm2133_vm9 = vcmp.gt.f32.partialorder %v7049_v40, 0.0 }
 0x2ee   : > { %8868 = vst [vmem:[#allocation20_spill] sm:$0xff] %v7099_v44  ;;  %v7115_v44 = vadd.f32 %v6540_v3, %v1544_v56  ;;  %v1470_v56 = vadd.f32 %v6325_v8, %v8874_v5  ;;  %4352 = vpow2.f32 %v2529_v39  ;;  %v7143_v38 = vadd.f32 %v6521_v27, %v1393_v7  ;;  %v8880_v5 = vld [vmem:[#allocation170_spill] sm:$0xff] }
 0x2ef   : > { %8869 = vst [vmem:[#allocation157_spill] sm:$0xff] %v7101_v15  ;;  %v4341_v15 = vpop.eup %4340  ;;  %3184 = vmatmul.f32.gmra.mxu0 %v2915_v31  ;;  %3261 = vmatmul.f32.gmra.mxu1 %v2916_v19  ;;  %v7134_v31 = vadd.f32 %v6515_v28, %v1316_v61  ;;  %v2541_v57 = vmul.f32 1.442695, %v2300_v36  ;;  %v2543_v7 = vmul.f32 1.442695, %v2301_v20  ;;  %v2923_v36 = vsel %vm2123_vm3, %v6969_v17, %v4119_v4  ;;  %v8883_v17 = vld [vmem:[#allocation38_spill] sm:$0xff] }
 0x2f0   : > { %v4343_v46 = vpop.eup %4342  ;;  %3338 = vmatmul.f32.gmra.mxu2 %v2917_v18  ;;  %3415 = vmatmul.f32.gmra.mxu3 %v2918_v51  ;;  %v4120_v19 = vadd.f32 -1.0, %v4341_v15  ;;  %v2302_v8 = vmin.f32 %v7115_v44, 0.0  ;;  %v7151_v24 = vadd.f32 %v6527_v23, %v1470_v56  ;;  %v8879_v51 = vld [vmem:[#allocation37_spill] sm:$0xff]  ;;  %v7169_v1 = vadd.f32 %v6540_v3, %v1547_v54  ;;  %v8884_v4 = vld [vmem:[#allocation171_spill] sm:$0xff] }
 0x2f1   : > { %v4345_v29 = vpop.eup %4344  ;;  %v4121_v18 = vadd.f32 -1.0, %v4343_v46  ;;  %v1319_v14 = vadd.f32 %v8880_v5, %v8879_v51  ;;  %v2307_v50 = vmin.f32 %v7134_v31, 0.0  ;;  %4354 = vpow2.f32 %v2539_v0  ;;  %v8885_v0 = vld [vmem:[#allocation39_spill] sm:$0xff] }
 0x2f2   : > { %v4122_v21 = vadd.f32 -1.0, %v4345_v29  ;;  %v4347_v60 = vpop.eup %4346  ;;  %v2924_v29 = vsel %vm2124_vm4, %v6977_v30, %v4120_v19  ;;  %v2545_v51 = vmul.f32 1.442695, %v2302_v8  ;;  %4356 = vpow2.f32 %v2541_v57 }
 0x2f3   : > { %v7145_v61 = vpop.f32.mrf.mxu2  ;;  %v7147_v15 = vpop.f32.mrf.mxu3  ;;  %v2925_v20 = vsel %vm2125_vm5, %v6988_v32, %v4121_v18  ;;  %v2309_v54 = vmin.f32 %v7151_v24, 0.0  ;;  %v7182_v32 = vadd.f32 %v6515_v28, %v1319_v14  ;;  %v1473_v8 = vadd.f32 %v6346_v34, %v8885_v0  ;;  %v3089_v18 = vld [vmem:[%s8597_s6 + $0x230] sm:$0xff] }
 0x2f4   : > { %8877 = vst [vmem:[#allocation21_spill] sm:$0xff] %v7145_v61  ;;  %v7155_v46 = vpop.f32.mrf.mxu0  ;;  %v7157_v39 = vpop.f32.mrf.mxu1  ;;  %v2926_v30 = vsel %vm2126_vm6, %v6996_v49, %v4122_v21  ;;  %4358 = vpow2.f32 %v2543_v7  ;;  %v3137_v49 = vld [vmem:[%s8597_s6 + $0x3b0] sm:$0xff]  ;;  %v4127_v21 = vadd.f32 -1.0, %v4347_v60  ;;  %v2555_v14 = vmul.f32 1.442695, %v2307_v50  ;;  %3464 = vmatpush.msrb.mxu0 %v3089_v18 }
 0x2f5   : > { %8878 = vst [vmem:[#allocation158_spill] sm:$0xff] %v7147_v15  ;;  %v4349_v56 = vpop.eup %4348  ;;  %3695 = vmatpush.msrb.mxu3 %v3137_v49  ;;  %v3105_v34 = vld [vmem:[%s8597_s6 + $0x2b0] sm:$0xff]  ;;  %v2310_v7 = vmin.f32 %v7169_v1, 0.0  ;;  %4360 = vpow2.f32 %v2545_v51  ;;  %vm2134_vm10 = vcmp.gt.f32.partialorder %v7055_v45, 0.0  ;;  %v2315_v18 = vmin.f32 %v7182_v32, 0.0 }
 0x2f6   : > { %8881 = vst [vmem:[#allocation22_spill] sm:$0xff] %v7155_v46  ;;  %v4351_v5 = vpop.eup %4350  ;;  %v1396_v46 = vadd.f32 %v8884_v4, %v8883_v17  ;;  %v4128_v57 = vadd.f32 -1.0, %v4349_v56  ;;  %3541 = vmatpush.msrb.mxu1 %v3105_v34  ;;  %v7209_v49 = vadd.f32 %v6527_v23, %v1473_v8  ;;  %vm2139_vm11 = vcmp.gt.f32.partialorder %v7074_v9, 0.0 }
 0x2f7   : > { %8882 = vst [vmem:[#allocation159_spill] sm:$0xff] %v7157_v39  ;;  %v2308_v39 = vmin.f32 %v7143_v38, 0.0  ;;  %3187 = vmatmul.f32.gmra.mxu0 %v2923_v36  ;;  %3264 = vmatmul.f32.gmra.mxu1 %v2924_v29  ;;  %v4353_v19 = vpop.eup %4352  ;;  %v8886_v36 = vld [vmem:[#allocation40_spill] sm:$0xff]  ;;  %v4129_v17 = vadd.f32 -1.0, %v4351_v5  ;;  %vm2140_vm12 = vcmp.gt.f32.partialorder %v7089_v59, 0.0  ;;  %4362 = vpow2.f32 %v2555_v14 }
 0x2f8   : > { %3341 = vmatmul.f32.gmra.mxu2 %v2925_v20  ;;  %3418 = vmatmul.f32.gmra.mxu3 %v2926_v30  ;;  %v8887_v29 = vld [vmem:[#allocation172_spill] sm:$0xff]  ;;  %v7200_v60 = vadd.f32 %v6521_v27, %v1396_v46  ;;  %v4130_v4 = vadd.f32 -1.0, %v4353_v19  ;;  %v4355_v0 = vpop.eup %4354  ;;  %v2559_v46 = vmul.f32 1.442695, %v2309_v54  ;;  %v2932_v8 = vsel %vm2132_vm8, %v7038_v25, %v4128_v57 }
 0x2f9   : > { %v1550_v20 = vadd.f32 %v8887_v29, %v8886_v36  ;;  %v2557_v30 = vmul.f32 1.442695, %v2308_v39  ;;  %v4357_v34 = vpop.eup %4356  ;;  %v8892_v36 = vld [vmem:[#allocation41_spill] sm:$0xff]  ;;  %v2931_v39 = vsel %vm2131_vm7, %v7030_v37, %v4127_v21  ;;  %v2933_v54 = vsel %vm2133_vm9, %v7049_v40, %v4129_v17  ;;  %v8895_v37 = vld [vmem:[#allocation174_spill] sm:$0xff]  ;;  %v8897_v40 = vld [vmem:[#allocation175_spill] sm:$0xff] }
 0x2fa   : > { %v8893_v29 = vld [vmem:[#allocation173_spill] sm:$0xff]  ;;  %vm2141_vm13 = vcmp.gt.f32.partialorder %v7097_v62, 0.0  ;;  %v2934_v25 = vsel %vm2134_vm10, %v7055_v45, %v4130_v4  ;;  %v2317_v14 = vmin.f32 %v7209_v49, 0.0  ;;  %v4136_v45 = vadd.f32 -1.0, %v4357_v34 }
 0x2fb   : > { %v7202_v56 = vpop.f32.mrf.mxu2  ;;  %v7204_v50 = vpop.f32.mrf.mxu3  ;;  %v1322_v19 = vadd.f32 %v8893_v29, %v8892_v36  ;;  %v2561_v36 = vmul.f32 1.442695, %v2310_v7  ;;  %v2316_v29 = vmin.f32 %v7200_v60, 0.0  ;;  %4364 = vpow2.f32 %v2557_v30  ;;  %v3088_v30 = vld [vmem:[%s8597_s6 + $0x228] sm:$0xff] }
 0x2fc   : > { %8888 = vst [vmem:[#allocation23_spill] sm:$0xff] %v7202_v56  ;;  %v7211_v5 = vpop.f32.mrf.mxu0  ;;  %v7213_v51 = vpop.f32.mrf.mxu1  ;;  %4366 = vpow2.f32 %v2559_v46  ;;  %v2571_v7 = vmul.f32 1.442695, %v2315_v18  ;;  %v3136_v46 = vld [vmem:[%s8597_s6 + $0x3a8] sm:$0xff]  ;;  %vm2142_vm14 = vcmp.gt.f32.partialorder %v7115_v44, 0.0  ;;  %3465 = vmatpush.msrb.mxu0 %v3088_v30  ;;  %vm2147_vm15 = vcmp.gt.f32.partialorder %v7134_v31, 0.0 }
 0x2fd   : > { %8889 = vst [vmem:[#allocation160_spill] sm:$0xff] %v7204_v50  ;;  %v8894_v50 = vld [vmem:[#allocation42_spill] sm:$0xff]  ;;  %v3104_v18 = vld [vmem:[%s8597_s6 + $0x2a8] sm:$0xff]  ;;  %4368 = vpow2.f32 %v2561_v36  ;;  %3696 = vmatpush.msrb.mxu3 %v3136_v46  ;;  %vm2148_vm1 = vcmp.gt.f32.partialorder %v7143_v38, 0.0  ;;  %vm2149_vm2 = vcmp.gt.f32.partialorder %v7151_v24, 0.0  ;;  %vm2150_vm3 = vcmp.gt.f32.partialorder %v7169_v1, 0.0 }
 0x2fe   : > { %8890 = vst [vmem:[#allocation24_spill] sm:$0xff] %v7211_v5  ;;  %v4359_v5 = vpop.eup %4358  ;;  %v1399_v21 = vadd.f32 %v8895_v37, %v8894_v50  ;;  %v3120_v50 = vld [vmem:[%s8597_s6 + $0x328] sm:$0xff]  ;;  %v8899_v37 = vld [vmem:[#allocation176_spill] sm:$0xff]  ;;  %3542 = vmatpush.msrb.mxu1 %v3104_v18  ;;  %4370 = vpow2.f32 %v2571_v7  ;;  %v8907_v56 = vld [vmem:[#allocation178_spill] sm:$0xff]  ;;  %vm2155_vm4 = vcmp.gt.f32.partialorder %v7182_v32, 0.0  ;;  %vm2156_vm5 = vcmp.gt.f32.partialorder %v7200_v60, 0.0 }
 0x2ff   : > { %8891 = vst [vmem:[#allocation161_spill] sm:$0xff] %v7213_v51  ;;  %v7226_v51 = vadd.f32 %v6540_v3, %v1550_v20  ;;  %3190 = vmatmul.f32.gmra.mxu0 %v2931_v39  ;;  %3267 = vmatmul.f32.gmra.mxu1 %v2932_v8  ;;  %v4361_v57 = vpop.eup %4360  ;;  %v8896_v20 = vld [vmem:[#allocation43_spill] sm:$0xff]  ;;  %v7245_v39 = vadd.f32 %v6515_v28, %v1322_v19  ;;  %v4135_v8 = vadd.f32 -1.0, %v4355_v0  ;;  %v4137_v4 = vadd.f32 -1.0, %v4359_v5  ;;  %v8898_v19 = vld [vmem:[#allocation44_spill] sm:$0xff]  ;;  %v8905_v7 = vld [vmem:[#allocation177_spill] sm:$0xff] }
 0x300   : > { %v1476_v17 = vadd.f32 %v8897_v40, %v8896_v20  ;;  %3344 = vmatmul.f32.gmra.mxu2 %v2933_v54  ;;  %3421 = vmatmul.f32.gmra.mxu3 %v2934_v25  ;;  %v1553_v0 = vadd.f32 %v8899_v37, %v8898_v19  ;;  %v4363_v5 = vpop.eup %4362  ;;  %v7261_v34 = vadd.f32 %v6521_v27, %v1399_v21  ;;  %v4138_v40 = vadd.f32 -1.0, %v4361_v57 }
 0x301   : > { %3619 = vmatpush.msrb.mxu2 %v3120_v50  ;;  %v2318_v54 = vmin.f32 %v7226_v51, 0.0  ;;  %v2573_v50 = vmul.f32 1.442695, %v2316_v29  ;;  %v2575_v21 = vmul.f32 1.442695, %v2317_v14  ;;  %v4365_v30 = vpop.eup %4364  ;;  %v2323_v57 = vmin.f32 %v7245_v39, 0.0 }
 0x302   : > { %v7269_v19 = vadd.f32 %v6527_v23, %v1476_v17  ;;  %v2939_v29 = vsel %vm2139_vm11, %v7074_v9, %v4135_v8  ;;  %v2940_v17 = vsel %vm2140_vm12, %v7089_v59, %v4136_v45  ;;  %v2941_v46 = vsel %vm2141_vm13, %v7097_v62, %v4137_v4  ;;  %v4367_v18 = vpop.eup %4366  ;;  %v8904_v14 = vld [vmem:[#allocation45_spill] sm:$0xff]  ;;  %v8906_v8 = vld [vmem:[#allocation46_spill] sm:$0xff] }
 0x303   : > { %v7263_v25 = vpop.f32.mrf.mxu2  ;;  %v7265_v20 = vpop.f32.mrf.mxu3  ;;  %v2324_v9 = vmin.f32 %v7261_v34, 0.0  ;;  %v1402_v59 = vadd.f32 %v8907_v56, %v8906_v8  ;;  %v2942_v62 = vsel %vm2142_vm14, %v7115_v44, %v4138_v40  ;;  %4372 = vpow2.f32 %v2573_v50  ;;  %v3119_v56 = vld [vmem:[%s8597_s6 + $0x320] sm:$0xff] }
 0x304   : > { %8900 = vst [vmem:[#allocation25_spill] sm:$0xff] %v7263_v25  ;;  %v7271_v37 = vpop.f32.mrf.mxu0  ;;  %v7273_v36 = vpop.f32.mrf.mxu1  ;;  %v2577_v25 = vmul.f32 1.442695, %v2318_v54  ;;  %v2325_v4 = vmin.f32 %v7269_v19, 0.0  ;;  %v4144_v54 = vadd.f32 -1.0, %v4365_v30  ;;  %4374 = vpow2.f32 %v2575_v21  ;;  %v3087_v44 = vld [vmem:[%s8597_s6 + $0x220] sm:$0xff]  ;;  %3620 = vmatpush.msrb.mxu2 %v3119_v56 }
 0x305   : > { %8901 = vst [vmem:[#allocation162_spill] sm:$0xff] %v7265_v20  ;;  %v4143_v20 = vadd.f32 -1.0, %v4363_v5  ;;  %v4369_v45 = vpop.eup %4368  ;;  %v3135_v40 = vld [vmem:[%s8597_s6 + $0x3a0] sm:$0xff]  ;;  %3466 = vmatpush.msrb.mxu0 %v3087_v44  ;;  %vm2157_vm6 = vcmp.gt.f32.partialorder %v7209_v49, 0.0  ;;  %vm2158_vm7 = vcmp.gt.f32.partialorder %v7226_v51, 0.0  ;;  %vm2163_vm8 = vcmp.gt.f32.partialorder %v7245_v39, 0.0 }
 0x306   : > { %8902 = vst [vmem:[#allocation26_spill] sm:$0xff] %v7271_v37  ;;  %v1325_v37 = vadd.f32 %v8905_v7, %v8904_v14  ;;  %v4145_v14 = vadd.f32 -1.0, %v4367_v18  ;;  %v2587_v7 = vmul.f32 1.442695, %v2323_v57  ;;  %v4371_v50 = vpop.eup %4370  ;;  %v8909_v21 = vld [vmem:[#allocation48_spill] sm:$0xff]  ;;  %4376 = vpow2.f32 %v2577_v25  ;;  %3697 = vmatpush.msrb.mxu3 %v3135_v40 }
 0x307   : > { %8903 = vst [vmem:[#allocation163_spill] sm:$0xff] %v7273_v36  ;;  %v7288_v36 = vadd.f32 %v6540_v3, %v1553_v0  ;;  %3193 = vmatmul.f32.gmra.mxu0 %v2939_v29  ;;  %3270 = vmatmul.f32.gmra.mxu1 %v2940_v17  ;;  %v8908_v0 = vld [vmem:[#allocation47_spill] sm:$0xff]  ;;  %v1556_v57 = vadd.f32 %v6396_v26, %v8909_v21  ;;  %v3103_v29 = vld [vmem:[%s8597_s6 + $0x2a0] sm:$0xff]  ;;  %v4146_v8 = vadd.f32 -1.0, %v4369_v45  ;;  %v4151_v56 = vadd.f32 -1.0, %v4371_v50 }
 0x308   : > { %v1479_v5 = vadd.f32 %v6394_v2, %v8908_v0  ;;  %3347 = vmatmul.f32.gmra.mxu2 %v2941_v46  ;;  %3424 = vmatmul.f32.gmra.mxu3 %v2942_v62  ;;  %v7313_v30 = vadd.f32 %v6515_v28, %v1325_v37  ;;  %v7321_v17 = vadd.f32 %v6521_v27, %v1402_v59  ;;  %v2589_v37 = vmul.f32 1.442695, %v2324_v9  ;;  %v8918_v50 = vld [vmem:[#allocation51_spill] sm:$0xff] }
 0x309   : > { %v2326_v2 = vmin.f32 %v7288_v36, 0.0  ;;  %3543 = vmatpush.msrb.mxu1 %v3103_v29  ;;  %v2947_v59 = vsel %vm2147_vm15, %v7134_v31, %v4143_v20  ;;  %v2591_v0 = vmul.f32 1.442695, %v2325_v4  ;;  %v4373_v45 = vpop.eup %4372  ;;  %v2948_v9 = vsel %vm2148_vm1, %v7143_v38, %v4144_v54  ;;  %v8914_v31 = vld [vmem:[#allocation49_spill] sm:$0xff]  ;;  %v8915_v20 = vld [vmem:[#allocation179_spill] sm:$0xff]  ;;  %v8917_v38 = vld [vmem:[#allocation180_spill] sm:$0xff] }
 0x30a   : > { %v7329_v26 = vadd.f32 %v6527_v23, %v1479_v5  ;;  %v2949_v5 = vsel %vm2149_vm2, %v7151_v24, %v4145_v14  ;;  %4378 = vpow2.f32 %v2587_v7  ;;  %v4375_v44 = vpop.eup %4374  ;;  %v2331_v40 = vmin.f32 %v7313_v30, 0.0 }
 0x30b   : > { %v7323_v46 = vpop.f32.mrf.mxu2  ;;  %v7325_v18 = vpop.f32.mrf.mxu3  ;;  %v7347_v21 = vadd.f32 %v6540_v3, %v1556_v57  ;;  %v1328_v4 = vadd.f32 %v8915_v20, %v8914_v31  ;;  %v2593_v29 = vmul.f32 1.442695, %v2326_v2  ;;  %v2950_v24 = vsel %vm2150_vm3, %v7169_v1, %v4146_v8  ;;  %v8919_v57 = vld [vmem:[#allocation181_spill] sm:$0xff]  ;;  %v8920_v2 = vld [vmem:[#allocation52_spill] sm:$0xff]  ;;  %v3118_v1 = vld [vmem:[%s8597_s6 + $0x318] sm:$0xff] }
 0x30c   : > { %8910 = vst [vmem:[#allocation27_spill] sm:$0xff] %v7323_v46  ;;  %v7331_v25 = vpop.f32.mrf.mxu0  ;;  %v7333_v62 = vpop.f32.mrf.mxu1  ;;  %4380 = vpow2.f32 %v2589_v37  ;;  %v2333_v7 = vmin.f32 %v7329_v26, 0.0  ;;  %v4153_v31 = vadd.f32 -1.0, %v4375_v44  ;;  %v3086_v8 = vld [vmem:[%s8597_s6 + $0x218] sm:$0xff]  ;;  %3621 = vmatpush.msrb.mxu2 %v3118_v1  ;;  %vm2164_vm9 = vcmp.gt.f32.partialorder %v7261_v34, 0.0  ;;  %v8945_v46 = vld [vmem:[#allocation190_spill] sm:$0xff] }
 0x30d   : > { %8911 = vst [vmem:[#allocation28_spill] sm:$0xff] %v7325_v18  ;;  %v4377_v14 = vpop.eup %4376  ;;  %v1482_v18 = vadd.f32 %v8919_v57, %v8918_v50  ;;  %4382 = vpow2.f32 %v2591_v0  ;;  %v3134_v37 = vld [vmem:[%s8597_s6 + $0x398] sm:$0xff]  ;;  %v2334_v0 = vmin.f32 %v7347_v21, 0.0  ;;  %3467 = vmatpush.msrb.mxu0 %v3086_v8  ;;  %v2955_v50 = vsel %vm2155_vm4, %v7182_v32, %v4151_v56  ;;  %v8926_v32 = vld [vmem:[#allocation53_spill] sm:$0xff] }
 0x30e   : > { %8912 = vst [vmem:[#allocation29_spill] sm:$0xff] %v7331_v25  ;;  %v8916_v25 = vld [vmem:[#allocation50_spill] sm:$0xff]  ;;  %4384 = vpow2.f32 %v2593_v29  ;;  %3698 = vmatpush.msrb.mxu3 %v3134_v37  ;;  %vm2165_vm10 = vcmp.gt.f32.partialorder %v7269_v19, 0.0  ;;  %v8927_v56 = vld [vmem:[#allocation183_spill] sm:$0xff]  ;;  %vm2166_vm11 = vcmp.gt.f32.partialorder %v7288_v36, 0.0  ;;  %vm2171_vm12 = vcmp.gt.f32.partialorder %v7313_v30, 0.0 }
 0x30f   : > { %8913 = vst [vmem:[#allocation164_spill] sm:$0xff] %v7333_v62  ;;  %v2332_v62 = vmin.f32 %v7321_v17, 0.0  ;;  %v1405_v54 = vadd.f32 %v8917_v38, %v8916_v25  ;;  %3196 = vmatmul.f32.gmra.mxu0 %v2947_v59  ;;  %3273 = vmatmul.f32.gmra.mxu1 %v2948_v9  ;;  %v8921_v25 = vld [vmem:[#allocation182_spill] sm:$0xff]  ;;  %v4152_v9 = vadd.f32 -1.0, %v4373_v45  ;;  %v2603_v45 = vmul.f32 1.442695, %v2331_v40 }
 0x310   : > { %3350 = vmatmul.f32.gmra.mxu2 %v2949_v5  ;;  %3427 = vmatmul.f32.gmra.mxu3 %v2950_v24  ;;  %v1559_v59 = vadd.f32 %v8921_v25, %v8920_v2  ;;  %v7375_v5 = vadd.f32 %v6515_v28, %v1328_v4  ;;  %v4379_v44 = vpop.eup %4378  ;;  %v4154_v4 = vadd.f32 -1.0, %v4377_v14  ;;  %v7389_v29 = vadd.f32 %v6527_v23, %v1482_v18 }
 0x311   : > { %v7379_v20 = vadd.f32 %v6521_v27, %v1405_v54  ;;  %v2605_v57 = vmul.f32 1.442695, %v2332_v62  ;;  %v2607_v54 = vmul.f32 1.442695, %v2333_v7  ;;  %v1331_v62 = vadd.f32 %v8927_v56, %v8926_v32  ;;  %v8929_v7 = vld [vmem:[#allocation184_spill] sm:$0xff]  ;;  %v8931_v56 = vld [vmem:[#allocation185_spill] sm:$0xff] }
 0x312   : > { %v4381_v25 = vpop.eup %4380  ;;  %v7398_v1 = vadd.f32 %v6540_v3, %v1559_v59  ;;  %v2956_v18 = vsel %vm2156_vm5, %v7200_v60, %v4152_v9  ;;  %v2957_v14 = vsel %vm2157_vm6, %v7209_v49, %v4153_v31  ;;  %v2339_v37 = vmin.f32 %v7375_v5, 0.0  ;;  %v8930_v31 = vld [vmem:[#allocation55_spill] sm:$0xff] }
 0x313   : > { %v7381_v38 = vpop.f32.mrf.mxu2  ;;  %v7383_v24 = vpop.f32.mrf.mxu3  ;;  %4386 = vpow2.f32 %v2603_v45  ;;  %v2609_v59 = vmul.f32 1.442695, %v2334_v0  ;;  %v2958_v60 = vsel %vm2158_vm7, %v7226_v51, %v4154_v4  ;;  %v4159_v9 = vadd.f32 -1.0, %v4379_v44  ;;  %v3102_v0 = vld [vmem:[%s8597_s6 + $0x298] sm:$0xff]  ;;  %v3117_v51 = vld [vmem:[%s8597_s6 + $0x310] sm:$0xff] }
 0x314   : > { %8922 = vst [vmem:[#allocation30_spill] sm:$0xff] %v7381_v38  ;;  %v7391_v40 = vpop.f32.mrf.mxu0  ;;  %v7393_v2 = vpop.f32.mrf.mxu1  ;;  %4388 = vpow2.f32 %v2605_v57  ;;  %v2341_v49 = vmin.f32 %v7389_v29, 0.0  ;;  %v1485_v38 = vadd.f32 %v8931_v56, %v8930_v31  ;;  %v4160_v45 = vadd.f32 -1.0, %v4381_v25  ;;  %3544 = vmatpush.msrb.mxu1 %v3102_v0  ;;  %3622 = vmatpush.msrb.mxu2 %v3117_v51  ;;  %v8939_v0 = vld [vmem:[#allocation187_spill] sm:$0xff] }
 0x315   : > { %8923 = vst [vmem:[#allocation165_spill] sm:$0xff] %v7383_v24  ;;  %v4383_v8 = vpop.eup %4382  ;;  %v2340_v24 = vmin.f32 %v7379_v20, 0.0  ;;  %4390 = vpow2.f32 %v2607_v54  ;;  %v2342_v44 = vmin.f32 %v7398_v1, 0.0  ;;  %v8933_v54 = vld [vmem:[#allocation186_spill] sm:$0xff]  ;;  %vm2172_vm13 = vcmp.gt.f32.partialorder %v7321_v17, 0.0 }
 0x316   : > { %8924 = vst [vmem:[#allocation31_spill] sm:$0xff] %v7391_v40  ;;  %v4385_v32 = vpop.eup %4384  ;;  %v4161_v4 = vadd.f32 -1.0, %v4383_v8  ;;  %4392 = vpow2.f32 %v2609_v59  ;;  %vm2173_vm14 = vcmp.gt.f32.partialorder %v7329_v26, 0.0  ;;  %vm2174_vm15 = vcmp.gt.f32.partialorder %v7347_v21, 0.0 }
 0x317   : > { %8925 = vst [vmem:[#allocation32_spill] sm:$0xff] %v7393_v2  ;;  %v8928_v2 = vld [vmem:[#allocation54_spill] sm:$0xff]  ;;  %3199 = vmatmul.f32.gmra.mxu0 %v2955_v50  ;;  %3276 = vmatmul.f32.gmra.mxu1 %v2956_v18  ;;  %v7426_v50 = vadd.f32 %v6515_v28, %v1331_v62  ;;  %v2619_v18 = vmul.f32 1.442695, %v2339_v37  ;;  %v2963_v62 = vsel %vm2163_vm8, %v7245_v39, %v4159_v9  ;;  %v4162_v8 = vadd.f32 -1.0, %v4385_v32  ;;  %v8938_v32 = vld [vmem:[#allocation57_spill] sm:$0xff] }
 0x318   : > { %v1408_v40 = vadd.f32 %v8929_v7, %v8928_v2  ;;  %3353 = vmatmul.f32.gmra.mxu2 %v2957_v14  ;;  %3430 = vmatmul.f32.gmra.mxu3 %v2958_v60  ;;  %v8932_v2 = vld [vmem:[#allocation56_spill] sm:$0xff]  ;;  %v2621_v60 = vmul.f32 1.442695, %v2340_v24  ;;  %v2964_v37 = vsel %vm2164_vm9, %v7261_v34, %v4160_v45  ;;  %v2623_v39 = vmul.f32 1.442695, %v2341_v49  ;;  %v8940_v45 = vld [vmem:[#allocation58_spill] sm:$0xff] }
 0x319   : > { %v1562_v25 = vadd.f32 %v8933_v54, %v8932_v2  ;;  %v4387_v31 = vpop.eup %4386  ;;  %v2347_v24 = vmin.f32 %v7426_v50, 0.0  ;;  %v2965_v51 = vsel %vm2165_vm10, %v7269_v19, %v4161_v4  ;;  %v2625_v2 = vmul.f32 1.442695, %v2342_v44  ;;  %v3133_v19 = vld [vmem:[%s8597_s6 + $0x390] sm:$0xff]  ;;  %v8942_v44 = vld [vmem:[#allocation59_spill] sm:$0xff]  ;;  %v8943_v4 = vld [vmem:[#allocation189_spill] sm:$0xff] }
 0x31a   : > { %v7430_v57 = vadd.f32 %v6521_v27, %v1408_v40  ;;  %v7443_v40 = vadd.f32 %v6527_v23, %v1485_v38  ;;  %v4389_v9 = vpop.eup %4388  ;;  %v1334_v38 = vadd.f32 %v8939_v0, %v8938_v32  ;;  %4394 = vpow2.f32 %v2619_v18  ;;  %v3085_v32 = vld [vmem:[%s8597_s6 + $0x210] sm:$0xff]  ;;  %3699 = vmatpush.msrb.mxu3 %v3133_v19 }
 0x31b   : > { %v7434_v14 = vpop.f32.mrf.mxu2  ;;  %v7436_v7 = vpop.f32.mrf.mxu3  ;;  %v7462_v34 = vadd.f32 %v6540_v3, %v1562_v25  ;;  %v1488_v0 = vadd.f32 %v8943_v4, %v8942_v44  ;;  %v2966_v25 = vsel %vm2166_vm11, %v7288_v36, %v4162_v8  ;;  %4396 = vpow2.f32 %v2621_v60  ;;  %v3101_v18 = vld [vmem:[%s8597_s6 + $0x290] sm:$0xff]  ;;  %3468 = vmatpush.msrb.mxu0 %v3085_v32 }
 0x31c   : > { %8934 = vst [vmem:[#allocation166_spill] sm:$0xff] %v7434_v14  ;;  %v7445_v56 = vpop.f32.mrf.mxu0  ;;  %v7447_v59 = vpop.f32.mrf.mxu1  ;;  %v8944_v14 = vld [vmem:[#allocation60_spill] sm:$0xff]  ;;  %4398 = vpow2.f32 %v2623_v39  ;;  %v7490_v36 = vadd.f32 %v6515_v28, %v1334_v38  ;;  %v4168_v8 = vadd.f32 -1.0, %v4389_v9  ;;  %vm2179_vm1 = vcmp.gt.f32.partialorder %v7375_v5, 0.0  ;;  %3545 = vmatpush.msrb.mxu1 %v3101_v18  ;;  %v8950_v18 = vld [vmem:[#allocation61_spill] sm:$0xff] }
 0x31d   : > { %8935 = vst [vmem:[#allocation33_spill] sm:$0xff] %v7436_v7  ;;  %v4391_v54 = vpop.eup %4390  ;;  %v2349_v7 = vmin.f32 %v7443_v40, 0.0  ;;  %v1565_v15 = vadd.f32 %v8945_v46, %v8944_v14  ;;  %4400 = vpow2.f32 %v2625_v2  ;;  %v7500_v39 = vadd.f32 %v6527_v23, %v1488_v0 }
 0x31e   : > { %8936 = vst [vmem:[#allocation167_spill] sm:$0xff] %v7445_v56  ;;  %v8941_v56 = vld [vmem:[#allocation188_spill] sm:$0xff]  ;;  %v4169_v60 = vadd.f32 -1.0, %v4391_v54  ;;  %vm2180_vm2 = vcmp.gt.f32.partialorder %v7379_v20, 0.0  ;;  %vm2181_vm3 = vcmp.gt.f32.partialorder %v7389_v29, 0.0  ;;  %vm2182_vm4 = vcmp.gt.f32.partialorder %v7398_v1, 0.0 }
 0x31f   : > { %8937 = vst [vmem:[#allocation34_spill] sm:$0xff] %v7447_v59  ;;  %v2348_v59 = vmin.f32 %v7430_v57, 0.0  ;;  %v1411_v49 = vadd.f32 %v8941_v56, %v8940_v45  ;;  %3202 = vmatmul.f32.gmra.mxu0 %v2963_v62  ;;  %3279 = vmatmul.f32.gmra.mxu1 %v2964_v37  ;;  %v4167_v56 = vadd.f32 -1.0, %v4387_v31  ;;  %v4393_v45 = vpop.eup %4392  ;;  %v4594_v62 = vld [vmem:[%s8596_s5] sm:$0xff]  ;;  %v2350_v31 = vmin.f32 %v7462_v34, 0.0 }
 0x320   : > { %v7487_v37 = vperm.slane %v4594_v62, 4  ;;  %3356 = vmatmul.f32.gmra.mxu2 %v2965_v51  ;;  %3433 = vmatmul.f32.gmra.mxu3 %v2966_v25  ;;  %v7496_v14 = vperm.slane %v4594_v62, 5  ;;  %v2635_v51 = vmul.f32 1.442695, %v2347_v24  ;;  %v4170_v54 = vadd.f32 -1.0, %v4393_v45  ;;  %v4395_v32 = vpop.eup %4394 }
 0x321   : > { %v7494_v46 = vadd.f32 %v6521_v27, %v1411_v49  ;;  %v2971_v2 = vsel %vm2171_vm12, %v7313_v30, %v4167_v56  ;;  %v2637_v49 = vmul.f32 1.442695, %v2348_v59  ;;  %v7511_v19 = vadd.f32 %v6540_v3, %v1565_v15  ;;  %v4397_v30 = vpop.eup %4396  ;;  %v8951_v59 = vld [vmem:[#allocation191_spill] sm:$0xff] }
 0x322   : > { %v7513_v24 = vperm.slane %v4594_v62, 6  ;;  %v7515_v44 = vperm.slane %v4594_v62, 7  ;;  %v2639_v25 = vmul.f32 1.442695, %v2349_v7  ;;  %v2355_v56 = vmin.f32 %v7490_v36, 0.0  ;;  %v8952_v7 = vld [vmem:[#allocation62_spill] sm:$0xff] }
 0x323   : > { %v7502_v38 = vpop.f32.mrf.mxu2  ;;  %v7504_v9 = vpop.f32.mrf.mxu3  ;;  %v1337_v45 = vadd.f32 %v8951_v59, %v8950_v18  ;;  %v2972_v15 = vsel %vm2172_vm13, %v7321_v17, %v4168_v8  ;;  %v2973_v62 = vsel %vm2173_vm14, %v7329_v26, %v4169_v60  ;;  %4402 = vpow2.f32 %v2635_v51  ;;  %v3116_v18 = vld [vmem:[%s8597_s6 + $0x308] sm:$0xff]  ;;  %v8954_v59 = vld [vmem:[#allocation63_spill] sm:$0xff] }
 0x324   : > { %8946 = vst [vmem:[#allocation168_spill] sm:$0xff] %v7502_v38  ;;  %v7517_v4 = vpop.f32.mrf.mxu0  ;;  %v7519_v0 = vpop.f32.mrf.mxu1  ;;  %v2641_v61 = vmul.f32 1.442695, %v2350_v31  ;;  %v3084_v17 = vld [vmem:[%s8597_s6 + $0x208] sm:$0xff]  ;;  %v2357_v26 = vmin.f32 %v7500_v39, 0.0  ;;  %v2974_v60 = vsel %vm2174_vm15, %v7347_v21, %v4170_v54  ;;  %4404 = vpow2.f32 %v2637_v49  ;;  %v8956_v54 = vld [vmem:[#allocation64_spill] sm:$0xff]  ;;  %3623 = vmatpush.msrb.mxu2 %v3116_v18 }
 0x325   : > { %8947 = vst [vmem:[#allocation35_spill] sm:$0xff] %v7504_v9  ;;  %v8953_v9 = vld [vmem:[#allocation192_spill] sm:$0xff]  ;;  %v3132_v31 = vld [vmem:[%s8597_s6 + $0x388] sm:$0xff]  ;;  %v2358_v51 = vmin.f32 %v7511_v19, 0.0  ;;  %v4176_v52 = vadd.f32 -1.0, %v4397_v30  ;;  %4406 = vpow2.f32 %v2639_v25  ;;  %v7555_v21 = vadd.f32 %v6515_v28, %v1337_v45  ;;  %v8957_v49 = vld [vmem:[#allocation194_spill] sm:$0xff]  ;;  %3469 = vmatpush.msrb.mxu0 %v3084_v17 }
 0x326   : > { %8948 = vst [vmem:[#allocation36_spill] sm:$0xff] %v7517_v4  ;;  %v2356_v4 = vmin.f32 %v7494_v46, 0.0  ;;  %v1414_v38 = vadd.f32 %v8953_v9, %v8952_v7  ;;  %v4175_v9 = vadd.f32 -1.0, %v4395_v32  ;;  %v8955_v7 = vld [vmem:[#allocation193_spill] sm:$0xff]  ;;  %v1568_v32 = vadd.f32 %v8957_v49, %v8956_v54  ;;  %3700 = vmatpush.msrb.mxu3 %v3132_v31  ;;  %v8963_v49 = vld [vmem:[#allocation199_spill] sm:$0xff] }
 0x327   : > { %8949 = vst [vmem:[#allocation169_spill] sm:$0xff] %v7519_v0  ;;  %v4399_v0 = vpop.eup %4398  ;;  %3205 = vmatmul.f32.gmra.mxu0 %v2971_v2  ;;  %3282 = vmatmul.f32.gmra.mxu1 %v2972_v15  ;;  %v1491_v41 = vadd.f32 %v8955_v7, %v8954_v59  ;;  %v3100_v2 = vld [vmem:[%s8597_s6 + $0x288] sm:$0xff]  ;;  %v2651_v33 = vmul.f32 1.442695, %v2355_v56  ;;  %4408 = vpow2.f32 %v2641_v61  ;;  %vm2187_vm5 = vcmp.gt.f32.partialorder %v7426_v50, 0.0 }
 0x328   : > { %v4401_v8 = vpop.eup %4400  ;;  %3359 = vmatmul.f32.gmra.mxu2 %v2973_v62  ;;  %3436 = vmatmul.f32.gmra.mxu3 %v2974_v60  ;;  %v4177_v15 = vadd.f32 -1.0, %v4399_v0  ;;  %v7560_v59 = vadd.f32 %v6521_v27, %v1414_v38  ;;  %v2653_v25 = vmul.f32 1.442695, %v2356_v4  ;;  %v8958_v30 = vld [vmem:[#allocation65_spill] sm:$0xff]  ;;  %v8959_v60 = vld [vmem:[#allocation195_spill] sm:$0xff]  ;;  %v2979_v0 = vsel %vm2179_vm1, %v7375_v5, %v4175_v9 }
 0x329   : > { %v4178_v62 = vadd.f32 -1.0, %v4401_v8  ;;  %3546 = vmatpush.msrb.mxu1 %v3100_v2  ;;  %v1340_v7 = vadd.f32 %v8959_v60, %v8958_v30  ;;  %vm2188_vm6 = vcmp.gt.f32.partialorder %v7430_v57, 0.0  ;;  %v2655_v38 = vmul.f32 1.442695, %v2357_v26  ;;  %v4403_v61 = vpop.eup %4402  ;;  %v8962_v54 = vld [vmem:[#allocation69_spill] sm:$0xff] }
 0x32a   : > { %v7574_v4 = vadd.f32 %v6527_v23, %v1491_v41  ;;  %v2980_v17 = vsel %vm2180_vm2, %v7379_v20, %v4176_v52  ;;  %vm2189_vm7 = vcmp.gt.f32.partialorder %v7443_v40, 0.0  ;;  %v2657_v5 = vmul.f32 1.442695, %v2358_v51  ;;  %v4405_v8 = vpop.eup %4404  ;;  %v3115_v51 = vld [vmem:[%s8597_s6 + $0x300] sm:$0xff] }
 0x32b   : > { %v7564_v45 = vpop.f32.mrf.mxu2  ;;  %v7566_v6 = vpop.f32.mrf.mxu3  ;;  %v2363_v9 = vmin.f32 %v7555_v21, 0.0  ;;  %v7586_v26 = vadd.f32 %v6540_v3, %v1568_v32  ;;  %v2981_v41 = vsel %vm2181_vm3, %v7389_v29, %v4177_v15  ;;  %4410 = vpow2.f32 %v2651_v33  ;;  %v8964_v33 = vld [vmem:[#allocation66_spill] sm:$0xff]  ;;  %v8965_v32 = vld [vmem:[#allocation196_spill] sm:$0xff]  ;;  %3624 = vmatpush.msrb.mxu2 %v3115_v51 }
 0x32c   : > { %v7576_v56 = vpop.f32.mrf.mxu0  ;;  %v7578_v18 = vpop.f32.mrf.mxu1  ;;  %v2364_v2 = vmin.f32 %v7560_v59, 0.0  ;;  %v1591_v52 = vadd.f32 %v8963_v49, %v8962_v54  ;;  %v2982_v20 = vsel %vm2182_vm4, %v7398_v1, %v4178_v62  ;;  %vm2190_vm8 = vcmp.gt.f32.partialorder %v7462_v34, 0.0  ;;  %v8966_v62 = vld [vmem:[#allocation70_spill] sm:$0xff]  ;;  %v8967_v54 = vld [vmem:[#allocation200_spill] sm:$0xff] }
 0x32d   : > { %8960 = vst [vmem:[#allocation37_spill] sm:$0xff] %v7576_v56  ;;  %v4407_v31 = vpop.eup %4406  ;;  %4412 = vpow2.f32 %v2653_v25  ;;  %v7602_v29 = vadd.f32 %v6515_v28, %v1340_v7  ;;  %v1417_v15 = vadd.f32 %v8965_v32, %v8964_v33  ;;  %v4183_v30 = vadd.f32 -1.0, %v4403_v61  ;;  %v3083_v28 = vld [vmem:[%s8597_s6 + $0x200] sm:$0xff]  ;;  %v8968_v61 = vld [vmem:[#allocation67_spill] sm:$0xff]  ;;  %v8971_v33 = vld [vmem:[#allocation198_spill] sm:$0xff] }
 0x32e   : > { %8961 = vst [vmem:[#allocation170_spill] sm:$0xff] %v7578_v18  ;;  %4414 = vpow2.f32 %v2655_v38  ;;  %v4409_v60 = vpop.eup %4408  ;;  %v2365_v1 = vmin.f32 %v7574_v4, 0.0  ;;  %v1668_v25 = vadd.f32 %v8967_v54, %v8966_v62  ;;  %v4184_v49 = vadd.f32 -1.0, %v4405_v8  ;;  %v3131_v7 = vld [vmem:[%s8597_s6 + $0x380] sm:$0xff]  ;;  %3470 = vmatpush.msrb.mxu0 %v3083_v28 }
 0x32f   : > { %3208 = vmatmul.f32.gmra.mxu0 %v2979_v0  ;;  %3285 = vmatmul.f32.gmra.mxu1 %v2980_v17  ;;  %4416 = vpow2.f32 %v2657_v5  ;;  %v3099_v0 = vld [vmem:[%s8597_s6 + $0x280] sm:$0xff]  ;;  %v2366_v38 = vmin.f32 %v7586_v26, 0.0  ;;  %v8969_v17 = vld [vmem:[#allocation197_spill] sm:$0xff]  ;;  %v2667_v8 = vmul.f32 1.442695, %v2363_v9  ;;  %v7624_v62 = vadd.f32 %v7487_v37, %v1591_v52 }
 0x330   : > { %3362 = vmatmul.f32.gmra.mxu2 %v2981_v41  ;;  %3439 = vmatmul.f32.gmra.mxu3 %v2982_v20  ;;  %v1494_v41 = vadd.f32 %v8969_v17, %v8968_v61  ;;  %v4185_v20 = vadd.f32 -1.0, %v4407_v31  ;;  %v8970_v5 = vld [vmem:[#allocation68_spill] sm:$0xff]  ;;  %vm2195_vm9 = vcmp.gt.f32.partialorder %v7490_v36, 0.0  ;;  %v2669_v54 = vmul.f32 1.442695, %v2364_v2 }
 0x331   : > { %v1571_v32 = vadd.f32 %v8971_v33, %v8970_v5  ;;  %3701 = vmatpush.msrb.mxu3 %v3131_v7  ;;  %3547 = vmatpush.msrb.mxu1 %v3099_v0  ;;  %v4411_v18 = vpop.eup %4410  ;;  %v2371_v56 = vmin.f32 %v7602_v29, 0.0  ;;  %v7629_v61 = vadd.f32 %v6521_v27, %v1417_v15  ;;  %v4186_v51 = vadd.f32 -1.0, %v4409_v60  ;;  %v8972_v33 = vld [vmem:[#allocation71_spill] sm:$0xff] }
 0x332   : > { %vm2196_vm10 = vcmp.gt.f32.partialorder %v7494_v46, 0.0  ;;  %v7637_v28 = vadd.f32 %v7496_v14, %v1668_v25  ;;  %v2987_v0 = vsel %vm2187_vm5, %v7426_v50, %v4183_v30  ;;  %v2988_v27 = vsel %vm2188_vm6, %v7430_v57, %v4184_v49 }
 0x333   : > { %v7631_v9 = vpop.f32.mrf.mxu2  ;;  %v7633_v31 = vpop.f32.mrf.mxu3  ;;  %vm2197_vm11 = vcmp.gt.f32.partialorder %v7500_v39, 0.0  ;;  %vm2198_vm12 = vcmp.gt.f32.partialorder %v7511_v19, 0.0  ;;  %v2671_v15 = vmul.f32 1.442695, %v2365_v1  ;;  %v7648_v17 = vadd.f32 %v6527_v23, %v1494_v41 }
 0x334   : > { %v4413_v52 = vpop.eup %4412  ;;  %v3164_v2 = vpop.f32.mrf.mxu0  ;;  %v2989_v25 = vsel %vm2189_vm7, %v7443_v40, %v4185_v20  ;;  %4418 = vpow2.f32 %v2667_v8  ;;  %v2673_v5 = vmul.f32 1.442695, %v2366_v38  ;;  %v7654_v30 = vadd.f32 %v6540_v3, %v1571_v32  ;;  %v8973_v3 = vld [vmem:[#allocation72_spill] sm:$0xff]  ;;  %v8974_v20 = vld [vmem:[#allocation201_spill] sm:$0xff] }
 0x335   : > { %v3241_v7 = vpop.f32.mrf.mxu1  ;;  %v4415_v60 = vpop.eup %4414  ;;  %v2223_v57 = vmin.f32 %v7624_v62, 0.0  ;;  %v4191_v49 = vadd.f32 -1.0, %v4411_v18  ;;  %4420 = vpow2.f32 %v2669_v54  ;;  %v2372_v1 = vmin.f32 %v7629_v61, 0.0 }
 0x336   : > { %v4417_v50 = vpop.eup %4416  ;;  %v1745_v23 = vadd.f32 %v6545_v16, %v8972_v33  ;;  %v2990_v40 = vsel %vm2190_vm8, %v7462_v34, %v4186_v51  ;;  %v2683_v38 = vmul.f32 1.442695, %v2371_v56  ;;  %v2224_v41 = vmin.f32 %v7637_v28, 0.0 }
 0x337   : > { %3211 = vmatmul.f32.gmra.mxu0 %v2987_v0  ;;  %3288 = vmatmul.f32.gmra.mxu1 %v2988_v27  ;;  %v1822_v8 = vadd.f32 %v8974_v20, %v8973_v3  ;;  %v4192_v18 = vadd.f32 -1.0, %v4413_v52  ;;  %4422 = vpow2.f32 %v2671_v15  ;;  %v2373_v32 = vmin.f32 %v7648_v17, 0.0  ;;  %v8975_v52 = vld [vmem:[#allocation73_spill] sm:$0xff]  ;;  %v8976_v15 = vld [vmem:[#allocation202_spill] sm:$0xff]  ;;  %v8978_v20 = vld [vmem:[#allocation203_spill] sm:$0xff] }
 0x338   : > { %3365 = vmatmul.f32.gmra.mxu2 %v2989_v25  ;;  %3442 = vmatmul.f32.gmra.mxu3 %v2990_v40  ;;  %v4193_v54 = vadd.f32 -1.0, %v4415_v60  ;;  %v4194_v16 = vadd.f32 -1.0, %v4417_v50  ;;  %4424 = vpow2.f32 %v2673_v5  ;;  %v2374_v0 = vmin.f32 %v7654_v30, 0.0  ;;  %v8977_v3 = vld [vmem:[#allocation74_spill] sm:$0xff] }
 0x339   : > { %v2387_v27 = vmul.f32 1.442695, %v2223_v57  ;;  %v3242_v33 = vadd.f32 %v3241_v7, %v3164_v2  ;;  %v2995_v34 = vsel %vm2195_vm9, %v7490_v36, %v4191_v49  ;;  %vm2203_vm13 = vcmp.gt.f32.partialorder %v7555_v21, 0.0 }
 0x33a   : > { %vm2204_vm14 = vcmp.gt.f32.partialorder %v7560_v59, 0.0  ;;  %v4419_v56 = vpop.eup %4418  ;;  %v7674_v51 = vadd.f32 %v7513_v24, %v1745_v23  ;;  %v1594_v60 = vadd.f32 %v8976_v15, %v8975_v52  ;;  %4426 = vpow2.f32 %v2683_v38 }
 0x33b   : > { %v3318_v25 = vpop.f32.mrf.mxu2  ;;  %v3395_v5 = vpop.f32.mrf.mxu3  ;;  %v2685_v50 = vmul.f32 1.442695, %v2372_v1  ;;  %v2389_v7 = vmul.f32 1.442695, %v2224_v41  ;;  %v7679_v57 = vadd.f32 %v7515_v44, %v1822_v8  ;;  %v2996_v23 = vsel %vm2196_vm10, %v7494_v46, %v4192_v18 }
 0x33c   : > { %v4421_v2 = vpop.eup %4420  ;;  %v3319_v36 = vadd.f32 %v3318_v25, %v3242_v33  ;;  %v3167_v49 = vpop.f32.mrf.mxu0  ;;  %vm2205_vm15 = vcmp.gt.f32.partialorder %v7574_v4, 0.0  ;;  %v1671_v52 = vadd.f32 %v8978_v20, %v8977_v3  ;;  %v2997_v1 = vsel %vm2197_vm11, %v7500_v39, %v4193_v54 }
 0x33d   : > { %v3244_v40 = vpop.f32.mrf.mxu1  ;;  %v2998_v38 = vsel %vm2198_vm12, %v7511_v19, %v4194_v16  ;;  %v2687_v41 = vmul.f32 1.442695, %v2373_v32  ;;  %v4423_v8 = vpop.eup %4422  ;;  %4428 = vpow2.f32 %v2387_v27  ;;  %v4199_v15 = vadd.f32 -1.0, %v4419_v56  ;;  %v8979_v16 = vld [vmem:[#allocation75_spill] sm:$0xff] }
 0x33e   : > { %v7693_v33 = vadd.f32 %v3395_v5, %v3319_v36  ;;  %v2689_v46 = vmul.f32 1.442695, %v2374_v0  ;;  %v4425_v18 = vpop.eup %4424  ;;  %v2225_v25 = vmin.f32 %v7674_v51, 0.0  ;;  %v7697_v3 = vadd.f32 %v7487_v37, %v1594_v60 }
 0x33f   : > { %3214 = vmatmul.f32.gmra.mxu0 %v2995_v34  ;;  %3291 = vmatmul.f32.gmra.mxu1 %v2996_v23  ;;  %v4200_v39 = vadd.f32 -1.0, %v4421_v2  ;;  %4430 = vpow2.f32 %v2685_v50  ;;  %v2226_v19 = vmin.f32 %v7679_v57, 0.0  ;;  %vm2206_vm1 = vcmp.gt.f32.partialorder %v7586_v26, 0.0  ;;  %v8980_v34 = vld [vmem:[#allocation76_spill] sm:$0xff] }
 0x340   : > { %4432 = vpow2.f32 %v2389_v7  ;;  %3368 = vmatmul.f32.gmra.mxu2 %v2997_v1  ;;  %3445 = vmatmul.f32.gmra.mxu3 %v2998_v38  ;;  %vm2211_vm2 = vcmp.gt.f32.partialorder %v7602_v29, 0.0  ;;  %v4427_v32 = vpop.eup %4426  ;;  %v7703_v54 = vadd.f32 %v7496_v14, %v1671_v52  ;;  %v1748_v0 = vadd.f32 %v6587_v11, %v8979_v16 }
 0x341   : > { %v4201_v27 = vadd.f32 -1.0, %v4423_v8  ;;  %4434 = vpow2.f32 %v2687_v41  ;;  %v1825_v56 = vadd.f32 %v6589_v43, %v8980_v34  ;;  %v3245_v60 = vadd.f32 %v3244_v40, %v3167_v49  ;;  %v8981_v49 = vld [vmem:[#allocation77_spill] sm:$0xff] }
 0x342   : > { %v4202_v5 = vadd.f32 -1.0, %v4425_v18  ;;  %4436 = vpow2.f32 %v2689_v46  ;;  %v2391_v50 = vmul.f32 1.442695, %v2225_v25  ;;  %v2231_v2 = vmin.f32 %v7697_v3, 0.0 }
 0x343   : > { %v3321_v7 = vpop.f32.mrf.mxu2  ;;  %v3398_v36 = vpop.f32.mrf.mxu3  ;;  %v3003_v23 = vsel %vm2203_vm13, %v7555_v21, %v4199_v15  ;;  %v3004_v11 = vsel %vm2204_vm14, %v7560_v59, %v4200_v39  ;;  %vm2212_vm3 = vcmp.gt.f32.partialorder %v7629_v61, 0.0  ;;  %v2393_v43 = vmul.f32 1.442695, %v2226_v19  ;;  %v8982_v15 = vld [vmem:[#allocation78_spill] sm:$0xff] }
 0x344   : > { %v4429_v20 = vpop.eup %4428  ;;  %v1597_v40 = vadd.f32 %v6594_v13, %v8981_v49  ;;  %v3322_v52 = vadd.f32 %v3321_v7, %v3245_v60  ;;  %v3170_v1 = vpop.f32.mrf.mxu0  ;;  %v4207_v41 = vadd.f32 -1.0, %v4427_v32  ;;  %v2232_v46 = vmin.f32 %v7703_v54, 0.0 }
 0x345   : > { %v3247_v38 = vpop.f32.mrf.mxu1  ;;  %v4431_v8 = vpop.eup %4430  ;;  %v7721_v21 = vadd.f32 %v7513_v24, %v1748_v0  ;;  %v1674_v59 = vadd.f32 %v6596_v12, %v8982_v15  ;;  %v3005_v18 = vsel %vm2205_vm15, %v7574_v4, %v4201_v27  ;;  %v7729_v13 = vadd.f32 %v7515_v44, %v1825_v56  ;;  %v8983_v56 = vld [vmem:[#allocation79_spill] sm:$0xff]  ;;  %v8987_v15 = vld [vmem:[#allocation205_spill] sm:$0xff] }
 0x346   : > { %v4433_v25 = vpop.eup %4432  ;;  %v7731_v39 = vadd.f32 %v3398_v36, %v3322_v52  ;;  %v3006_v19 = vsel %vm2206_vm1, %v7586_v26, %v4202_v5  ;;  %vm2213_vm4 = vcmp.gt.f32.partialorder %v7648_v17, 0.0  ;;  %vm2214_vm5 = vcmp.gt.f32.partialorder %v7654_v30, 0.0  ;;  %v8984_v5 = vld [vmem:[#allocation80_spill] sm:$0xff] }
 0x347   : > { %v4435_v32 = vpop.eup %4434  ;;  %4438 = vpow2.f32 %v2391_v50  ;;  %3217 = vmatmul.f32.gmra.mxu0 %v3003_v23  ;;  %3294 = vmatmul.f32.gmra.mxu1 %v3004_v11  ;;  %vm2063_vm6 = vcmp.gt.f32.partialorder %v7624_v62, 0.0  ;;  %v4059_v12 = vadd.f32 -1.0, %v4429_v20  ;;  %vm2064_vm7 = vcmp.gt.f32.partialorder %v7637_v28, 0.0  ;;  %v8985_v50 = vld [vmem:[#allocation204_spill] sm:$0xff] }
 0x348   : > { %v4437_v4 = vpop.eup %4436  ;;  %4440 = vpow2.f32 %v2393_v43  ;;  %v7741_v16 = vadd.f32 %v7487_v37, %v1597_v40  ;;  %3371 = vmatmul.f32.gmra.mxu2 %v3005_v18  ;;  %3448 = vmatmul.f32.gmra.mxu3 %v3006_v19  ;;  %v3011_v26 = vsel %vm2211_vm2, %v7602_v29, %v4207_v41  ;;  %v4208_v0 = vadd.f32 -1.0, %v4431_v8 }
 0x349   : > { %v2233_v27 = vmin.f32 %v7721_v21, 0.0  ;;  %v7748_v34 = vadd.f32 %v7496_v14, %v1674_v59  ;;  %v1751_v60 = vadd.f32 %v6632_v42, %v8983_v56  ;;  %v1828_v7 = vadd.f32 %v8985_v50, %v8984_v5  ;;  %v8986_v42 = vld [vmem:[#allocation81_spill] sm:$0xff] }
 0x34a   : > { %v2234_v36 = vmin.f32 %v7729_v13, 0.0  ;;  %v3248_v23 = vadd.f32 %v3247_v38, %v3170_v1  ;;  %v4060_v11 = vadd.f32 -1.0, %v4433_v25  ;;  %v2403_v20 = vmul.f32 1.442695, %v2231_v2 }
 0x34b   : > { %v3324_v43 = vpop.f32.mrf.mxu2  ;;  %v3401_v49 = vpop.f32.mrf.mxu3  ;;  %v4209_v29 = vadd.f32 -1.0, %v4435_v32  ;;  %v4210_v40 = vadd.f32 -1.0, %v4437_v4  ;;  %v2863_v52 = vsel %vm2063_vm6, %v7624_v62, %v4059_v12  ;;  %v2405_v41 = vmul.f32 1.442695, %v2232_v46 }
 0x34c   : > { %v2239_v8 = vmin.f32 %v7741_v16, 0.0  ;;  %v1600_v59 = vadd.f32 %v8987_v15, %v8986_v42  ;;  %v3325_v18 = vadd.f32 %v3324_v43, %v3248_v23  ;;  %v3173_v19 = vpop.f32.mrf.mxu0  ;;  %v3012_v2 = vsel %vm2212_vm3, %v7629_v61, %v4208_v0  ;;  %v8988_v61 = vld [vmem:[#allocation82_spill] sm:$0xff] }
 0x34d   : > { %v3250_v56 = vpop.f32.mrf.mxu1  ;;  %v4439_v1 = vpop.eup %4438  ;;  %v2240_v38 = vmin.f32 %v7748_v34, 0.0  ;;  %v7766_v25 = vadd.f32 %v7513_v24, %v1751_v60  ;;  %v7769_v62 = vadd.f32 %v7515_v44, %v1828_v7  ;;  %v2407_v46 = vmul.f32 1.442695, %v2233_v27  ;;  %v8989_v0 = vld [vmem:[#allocation206_spill] sm:$0xff] }
 0x34e   : > { %v4441_v32 = vpop.eup %4440  ;;  %v7771_v12 = vadd.f32 %v3401_v49, %v3325_v18  ;;  %v2864_v4 = vsel %vm2064_vm7, %v7637_v28, %v4060_v11  ;;  %4442 = vpow2.f32 %v2403_v20  ;;  %v2409_v5 = vmul.f32 1.442695, %v2234_v36  ;;  %v8993_v18 = vld [vmem:[#allocation86_spill] sm:$0xff] }
 0x34f   : > { %v1677_v50 = vadd.f32 %v8989_v0, %v8988_v61  ;;  %3220 = vmatmul.f32.gmra.mxu0 %v3011_v26  ;;  %3297 = vmatmul.f32.gmra.mxu1 %v3012_v2  ;;  %v3013_v60 = vsel %vm2213_vm4, %v7648_v17, %v4209_v29  ;;  %v3014_v27 = vsel %vm2214_vm5, %v7654_v30, %v4210_v40  ;;  %4444 = vpow2.f32 %v2405_v41  ;;  %v8990_v17 = vld [vmem:[#allocation83_spill] sm:$0xff]  ;;  %v8991_v30 = vld [vmem:[#allocation84_spill] sm:$0xff] }
 0x350   : > { %v7785_v7 = vadd.f32 %v7487_v37, %v1600_v59  ;;  %3374 = vmatmul.f32.gmra.mxu2 %v3013_v60  ;;  %3451 = vmatmul.f32.gmra.mxu3 %v3014_v27  ;;  %vm2065_vm8 = vcmp.gt.f32.partialorder %v7674_v51, 0.0  ;;  %v4061_v28 = vadd.f32 -1.0, %v4439_v1  ;;  %vm2066_vm9 = vcmp.gt.f32.partialorder %v7679_v57, 0.0  ;;  %v8992_v59 = vld [vmem:[#allocation85_spill] sm:$0xff]  ;;  %v8994_v2 = vld [vmem:[#allocation207_spill] sm:$0xff] }
 0x351   : > { %v2241_v26 = vmin.f32 %v7766_v25, 0.0  ;;  %v2242_v36 = vmin.f32 %v7769_v62, 0.0  ;;  %v1754_v23 = vadd.f32 %v6682_v47, %v8990_v17  ;;  %4446 = vpow2.f32 %v2407_v46 }
 0x352   : > { %v1831_v11 = vadd.f32 %v6684_v35, %v8991_v30  ;;  %v3251_v20 = vadd.f32 %v3250_v56, %v3173_v19  ;;  %4448 = vpow2.f32 %v2409_v5  ;;  %v2419_v43 = vmul.f32 1.442695, %v2239_v8 }
 0x353   : > { %v7796_v49 = vadd.f32 %v7496_v14, %v1677_v50  ;;  %v3327_v29 = vpop.f32.mrf.mxu2  ;;  %v3404_v40 = vpop.f32.mrf.mxu3  ;;  %v4062_v41 = vadd.f32 -1.0, %v4441_v32  ;;  %vm2071_vm10 = vcmp.gt.f32.partialorder %v7697_v3, 0.0  ;;  %v2421_v42 = vmul.f32 1.442695, %v2240_v38 }
 0x354   : > { %v4443_v15 = vpop.eup %4442  ;;  %v1603_v47 = vadd.f32 %v6690_v63, %v8992_v59  ;;  %v1680_v1 = vadd.f32 %v8994_v2, %v8993_v18  ;;  %v3328_v35 = vadd.f32 %v3327_v29, %v3251_v20  ;;  %v3176_v19 = vpop.f32.mrf.mxu0  ;;  %vm2072_vm11 = vcmp.gt.f32.partialorder %v7703_v54, 0.0 }
 0x355   : > { %v3253_v56 = vpop.f32.mrf.mxu1  ;;  %v4445_v8 = vpop.eup %4444  ;;  %v2247_v46 = vmin.f32 %v7785_v7, 0.0  ;;  %v7806_v32 = vadd.f32 %v7513_v24, %v1754_v23  ;;  %v2865_v38 = vsel %vm2065_vm8, %v7674_v51, %v4061_v28  ;;  %v2423_v5 = vmul.f32 1.442695, %v2241_v26 }
 0x356   : > { %v7812_v63 = vadd.f32 %v7515_v44, %v1831_v11  ;;  %v7814_v61 = vadd.f32 %v3404_v40, %v3328_v35  ;;  %vm2073_vm12 = vcmp.gt.f32.partialorder %v7721_v21, 0.0  ;;  %4450 = vpow2.f32 %v2419_v43 }
 0x357   : > { %v2425_v0 = vmul.f32 1.442695, %v2242_v36  ;;  %v4447_v50 = vpop.eup %4446  ;;  %v2248_v60 = vmin.f32 %v7796_v49, 0.0  ;;  %3471 = vmatmul.f32.vlgmr.msrb.gmra.mxu0 %v2863_v52  ;;  %3548 = vmatmul.f32.vlgmr.msrb.gmra.mxu1 %v2864_v4  ;;  %v2866_v27 = vsel %vm2066_vm9, %v7679_v57, %v4062_v41  ;;  %v4067_v51 = vadd.f32 -1.0, %v4443_v15  ;;  %v8995_v4 = vld [vmem:[#allocation87_spill] sm:$0xff]  ;;  %v8996_v57 = vld [vmem:[#allocation88_spill] sm:$0xff] }
 0x358   : > { %4452 = vpow2.f32 %v2421_v42  ;;  %v4449_v28 = vpop.eup %4448  ;;  %v7822_v26 = vadd.f32 %v7487_v37, %v1603_v47  ;;  %v7825_v17 = vadd.f32 %v7496_v14, %v1680_v1  ;;  %3625 = vmatmul.f32.vlgmr.msrb.gmra.mxu2 %v2865_v38  ;;  %3702 = vmatmul.f32.vlgmr.msrb.gmra.mxu3 %v2866_v27  ;;  %v4068_v36 = vadd.f32 -1.0, %v4445_v8  ;;  %v8997_v47 = vld [vmem:[#allocation89_spill] sm:$0xff] }
 0x359   : > { %vm2074_vm13 = vcmp.gt.f32.partialorder %v7729_v13, 0.0  ;;  %v2249_v52 = vmin.f32 %v7806_v32, 0.0  ;;  %v1757_v23 = vadd.f32 %v6742_v48, %v8995_v4  ;;  %v1834_v30 = vadd.f32 %v6744_v58, %v8996_v57 }
 0x35a   : > { %4454 = vpow2.f32 %v2423_v5  ;;  %v2250_v11 = vmin.f32 %v7812_v63, 0.0  ;;  %v3254_v20 = vadd.f32 %v3253_v56, %v3176_v19  ;;  %v2435_v43 = vmul.f32 1.442695, %v2247_v46  ;;  %v8998_v46 = vld [vmem:[#allocation90_spill] sm:$0xff] }
 0x35b   : > { %4456 = vpow2.f32 %v2425_v0  ;;  %v3330_v29 = vpop.f32.mrf.mxu2  ;;  %v3407_v40 = vpop.f32.mrf.mxu3  ;;  %v2871_v41 = vsel %vm2071_vm10, %v7697_v3, %v4067_v51  ;;  %v4069_v42 = vadd.f32 -1.0, %v4447_v50  ;;  %v4070_v15 = vadd.f32 -1.0, %v4449_v28 }
 0x35c   : > { %vm2079_vm14 = vcmp.gt.f32.partialorder %v7741_v16, 0.0  ;;  %v2437_v48 = vmul.f32 1.442695, %v2248_v60  ;;  %v4451_v59 = vpop.eup %4450  ;;  %v2255_v58 = vmin.f32 %v7822_v26, 0.0  ;;  %v1606_v18 = vadd.f32 %v6750_v10, %v8997_v47  ;;  %v3179_v1 = vpop.f32.mrf.mxu0  ;;  %v8999_v60 = vld [vmem:[#allocation91_spill] sm:$0xff] }
 0x35d   : > { %v3331_v2 = vadd.f32 %v3330_v29, %v3254_v20  ;;  %v3256_v35 = vpop.f32.mrf.mxu1  ;;  %v2872_v19 = vsel %vm2072_vm11, %v7703_v54, %v4068_v36  ;;  %vm2080_vm15 = vcmp.gt.f32.partialorder %v7748_v34, 0.0  ;;  %v7846_v56 = vadd.f32 %v7513_v24, %v1757_v23 }
 0x35e   : > { %v4453_v3 = vpop.eup %4452  ;;  %v7849_v8 = vadd.f32 %v7515_v44, %v1834_v30  ;;  %v1683_v38 = vadd.f32 %v6752_v22, %v8998_v46  ;;  %v2439_v10 = vmul.f32 1.442695, %v2249_v52  ;;  %v2256_v5 = vmin.f32 %v7825_v17, 0.0 }
 0x35f   : > { %v7854_v0 = vadd.f32 %v3407_v40, %v3331_v2  ;;  %vm2081_vm1 = vcmp.gt.f32.partialorder %v7766_v25, 0.0  ;;  %4458 = vpow2.f32 %v2435_v43  ;;  %v2441_v54 = vmul.f32 1.442695, %v2250_v11  ;;  %3474 = vmatmul.f32.gmra.mxu0 %v2871_v41  ;;  %3551 = vmatmul.f32.gmra.mxu1 %v2872_v19 }
 0x360   : > { %v4455_v50 = vpop.eup %4454  ;;  %v1760_v27 = vadd.f32 %v6799_v55, %v8999_v60  ;;  %v2873_v51 = vsel %vm2073_vm12, %v7721_v21, %v4069_v42  ;;  %v2874_v22 = vsel %vm2074_vm13, %v7729_v13, %v4070_v15  ;;  %4460 = vpow2.f32 %v2437_v48  ;;  %v9000_v13 = vld [vmem:[#allocation92_spill] sm:$0xff]  ;;  %v9001_v48 = vld [vmem:[#allocation93_spill] sm:$0xff] }
 0x361   : > { %v4457_v28 = vpop.eup %4456  ;;  %v7866_v36 = vadd.f32 %v7487_v37, %v1606_v18  ;;  %3628 = vmatmul.f32.gmra.mxu2 %v2873_v51  ;;  %3705 = vmatmul.f32.gmra.mxu3 %v2874_v22  ;;  %v4075_v52 = vadd.f32 -1.0, %v4451_v59  ;;  %v4076_v4 = vadd.f32 -1.0, %v4453_v3  ;;  %vm2082_vm2 = vcmp.gt.f32.partialorder %v7769_v62, 0.0  ;;  %v9002_v59 = vld [vmem:[#allocation8_spill] sm:$0xff]  ;;  %v9004_v18 = vld [vmem:[#allocation9_spill] sm:$0xff] }
 0x362   : > { %v2257_v55 = vmin.f32 %v7846_v56, 0.0  ;;  %v2258_v23 = vmin.f32 %v7849_v8, 0.0  ;;  %v7872_v21 = vadd.f32 %v7496_v14, %v1683_v38  ;;  %4462 = vpow2.f32 %v2439_v10 }
 0x363   : > { %v1837_v57 = vadd.f32 %v6801_v53, %v9000_v13  ;;  %v3257_v30 = vadd.f32 %v3256_v35, %v3179_v1  ;;  %4464 = vpow2.f32 %v2441_v54  ;;  %v2451_v11 = vmul.f32 1.442695, %v2255_v58  ;;  %v3333_v43 = vpop.f32.mrf.mxu2  ;;  %v3410_v29 = vpop.f32.mrf.mxu3  ;;  %v9003_v53 = vld [vmem:[#allocation94_spill] sm:$0xff]  ;;  %v9006_v13 = vld [vmem:[#allocation149_spill] sm:$0xff] }
 0x364   : > { %v7877_v20 = vadd.f32 %v7513_v24, %v1760_v27  ;;  %v4077_v40 = vadd.f32 -1.0, %v4455_v50  ;;  %v4078_v41 = vadd.f32 -1.0, %v4457_v28  ;;  %vm2087_vm3 = vcmp.gt.f32.partialorder %v7785_v7, 0.0  ;;  %v3182_v1 = vpop.f32.mrf.mxu0 }
 0x365   : > { %vm2088_vm4 = vcmp.gt.f32.partialorder %v7796_v49, 0.0  ;;  %v2453_v42 = vmul.f32 1.442695, %v2256_v5  ;;  %v4459_v15 = vpop.eup %4458  ;;  %v1609_v47 = vadd.f32 %v9002_v59, %v9001_v48  ;;  %v1686_v2 = vadd.f32 %v9004_v18, %v9003_v53  ;;  %v3259_v35 = vpop.f32.mrf.mxu1  ;;  %v9009_v53 = vld [vmem:[#allocation97_spill] sm:$0xff]  ;;  %v9010_v18 = vld [vmem:[#allocation150_spill] sm:$0xff] }
 0x366   : > { %v3334_v58 = vadd.f32 %v3333_v43, %v3257_v30  ;;  %v2879_v19 = vsel %vm2079_vm14, %v7741_v16, %v4075_v52  ;;  %v4461_v3 = vpop.eup %4460  ;;  %v2263_v46 = vmin.f32 %v7866_v36, 0.0  ;;  %v2264_v38 = vmin.f32 %v7872_v21, 0.0  ;;  %v9008_v30 = vld [vmem:[#allocation10_spill] sm:$0xff] }
 0x367   : > { %v2880_v10 = vsel %vm2080_vm15, %v7748_v34, %v4076_v4  ;;  %v2455_v5 = vmul.f32 1.442695, %v2257_v55  ;;  %v7894_v54 = vadd.f32 %v7515_v44, %v1837_v57  ;;  %vm2089_vm5 = vcmp.gt.f32.partialorder %v7806_v32, 0.0  ;;  %3477 = vmatmul.f32.gmra.mxu0 %v2879_v19 }
 0x368   : > { %v7896_v50 = vadd.f32 %v3410_v29, %v3334_v58  ;;  %vm2090_vm6 = vcmp.gt.f32.partialorder %v7812_v63, 0.0  ;;  %4466 = vpow2.f32 %v2451_v11  ;;  %v2457_v16 = vmul.f32 1.442695, %v2258_v23  ;;  %v4463_v60 = vpop.eup %4462  ;;  %3554 = vmatmul.f32.gmra.mxu1 %v2880_v10  ;;  %v9005_v23 = vld [vmem:[#allocation95_spill] sm:$0xff] }
 0x369   : > { %v2265_v27 = vmin.f32 %v7877_v20, 0.0  ;;  %v2881_v34 = vsel %vm2081_vm1, %v7766_v25, %v4077_v40  ;;  %v2882_v51 = vsel %vm2082_vm2, %v7769_v62, %v4078_v41  ;;  %4468 = vpow2.f32 %v2453_v42  ;;  %v4465_v22 = vpop.eup %4464  ;;  %v9007_v25 = vld [vmem:[#allocation96_spill] sm:$0xff] }
 0x36a   : > { %v7908_v28 = vadd.f32 %v7487_v37, %v1609_v47  ;;  %v7911_v52 = vadd.f32 %v7496_v14, %v1686_v2  ;;  %3631 = vmatmul.f32.gmra.mxu2 %v2881_v34  ;;  %3708 = vmatmul.f32.gmra.mxu3 %v2882_v51  ;;  %v4083_v4 = vadd.f32 -1.0, %v4459_v15  ;;  %v4084_v55 = vadd.f32 -1.0, %v4461_v3  ;;  %v9011_v34 = vld [vmem:[#allocation98_spill] sm:$0xff]  ;;  %v9012_v51 = vld [vmem:[#allocation11_spill] sm:$0xff] }
 0x36b   : > { %v1763_v57 = vadd.f32 %v9006_v13, %v9005_v23  ;;  %v1840_v11 = vadd.f32 %v9008_v30, %v9007_v25  ;;  %4470 = vpow2.f32 %v2455_v5  ;;  %v2467_v62 = vmul.f32 1.442695, %v2263_v46  ;;  %v3336_v41 = vpop.f32.mrf.mxu2  ;;  %v3413_v42 = vpop.f32.mrf.mxu3 }
 0x36c   : > { %v2266_v43 = vmin.f32 %v7894_v54, 0.0  ;;  %v3260_v29 = vadd.f32 %v3259_v35, %v3182_v1  ;;  %4472 = vpow2.f32 %v2457_v16  ;;  %v2469_v40 = vmul.f32 1.442695, %v2264_v38  ;;  %v3185_v19 = vpop.f32.mrf.mxu0 }
 0x36d   : > { %v4085_v48 = vadd.f32 -1.0, %v4463_v60  ;;  %v4086_v59 = vadd.f32 -1.0, %v4465_v22  ;;  %vm2095_vm7 = vcmp.gt.f32.partialorder %v7822_v26, 0.0  ;;  %vm2096_vm8 = vcmp.gt.f32.partialorder %v7825_v17, 0.0  ;;  %v3262_v3 = vpop.f32.mrf.mxu1 }
 0x36e   : > { %v2471_v15 = vmul.f32 1.442695, %v2265_v27  ;;  %v4467_v47 = vpop.eup %4466  ;;  %v1612_v2 = vadd.f32 %v9010_v18, %v9009_v53  ;;  %v3337_v58 = vadd.f32 %v3336_v41, %v3260_v29  ;;  %v2887_v1 = vsel %vm2087_vm3, %v7785_v7, %v4083_v4 }
 0x36f   : > { %v2888_v35 = vsel %vm2088_vm4, %v7796_v49, %v4084_v55  ;;  %v4469_v46 = vpop.eup %4468  ;;  %v2271_v38 = vmin.f32 %v7908_v28, 0.0  ;;  %v7930_v10 = vadd.f32 %v7513_v24, %v1763_v57  ;;  %v7933_v5 = vadd.f32 %v7515_v44, %v1840_v11  ;;  %3480 = vmatmul.f32.gmra.mxu0 %v2887_v1  ;;  %v9014_v11 = vld [vmem:[#allocation12_spill] sm:$0xff] }
 0x370   : > { %4474 = vpow2.f32 %v2467_v62  ;;  %v2272_v16 = vmin.f32 %v7911_v52, 0.0  ;;  %v7936_v60 = vadd.f32 %v3413_v42, %v3337_v58  ;;  %v2473_v7 = vmul.f32 1.442695, %v2266_v43  ;;  %3557 = vmatmul.f32.gmra.mxu1 %v2888_v35  ;;  %v9016_v43 = vld [vmem:[#allocation151_spill] sm:$0xff] }
 0x371   : > { %4476 = vpow2.f32 %v2469_v40  ;;  %v4471_v27 = vpop.eup %4470  ;;  %v1689_v49 = vadd.f32 %v9012_v51, %v9011_v34  ;;  %v2889_v22 = vsel %vm2089_vm5, %v7806_v32, %v4085_v48  ;;  %v2890_v4 = vsel %vm2090_vm6, %v7812_v63, %v4086_v59  ;;  %v9013_v32 = vld [vmem:[#allocation99_spill] sm:$0xff]  ;;  %v9015_v63 = vld [vmem:[#allocation100_spill] sm:$0xff]  ;;  %v9019_v51 = vld [vmem:[#allocation102_spill] sm:$0xff] }
 0x372   : > { %4478 = vpow2.f32 %v2471_v15  ;;  %v4473_v55 = vpop.eup %4472  ;;  %v7947_v23 = vadd.f32 %v7487_v37, %v1612_v2  ;;  %3634 = vmatmul.f32.gmra.mxu2 %v2889_v22  ;;  %3711 = vmatmul.f32.gmra.mxu3 %v2890_v4  ;;  %v4091_v13 = vadd.f32 -1.0, %v4467_v47  ;;  %v4092_v57 = vadd.f32 -1.0, %v4469_v46 }
 0x373   : > { %vm2097_vm9 = vcmp.gt.f32.partialorder %v7846_v56, 0.0  ;;  %v2273_v25 = vmin.f32 %v7930_v10, 0.0  ;;  %v2274_v30 = vmin.f32 %v7933_v5, 0.0  ;;  %v1766_v62 = vadd.f32 %v9014_v11, %v9013_v32  ;;  %v3339_v59 = vpop.f32.mrf.mxu2  ;;  %v3416_v15 = vpop.f32.mrf.mxu3 }
 0x374   : > { %vm2098_vm10 = vcmp.gt.f32.partialorder %v7849_v8, 0.0  ;;  %v1843_v29 = vadd.f32 %v9016_v43, %v9015_v63  ;;  %v3263_v40 = vadd.f32 %v3262_v3, %v3185_v19  ;;  %4480 = vpow2.f32 %v2473_v7  ;;  %v3188_v35 = vpop.f32.mrf.mxu0  ;;  %v9017_v7 = vld [vmem:[#allocation101_spill] sm:$0xff] }
 0x375   : > { %v2483_v41 = vmul.f32 1.442695, %v2271_v38  ;;  %v7958_v48 = vadd.f32 %v7496_v14, %v1689_v49  ;;  %v4093_v47 = vadd.f32 -1.0, %v4471_v27  ;;  %v4094_v53 = vadd.f32 -1.0, %v4473_v55  ;;  %v3265_v46 = vpop.f32.mrf.mxu1  ;;  %v9018_v27 = vld [vmem:[#allocation13_spill] sm:$0xff]  ;;  %v9020_v49 = vld [vmem:[#allocation152_spill] sm:$0xff] }
 0x376   : > { %v4475_v42 = vpop.eup %4474  ;;  %vm2103_vm11 = vcmp.gt.f32.partialorder %v7866_v36, 0.0  ;;  %v2485_v18 = vmul.f32 1.442695, %v2272_v16  ;;  %v2279_v58 = vmin.f32 %v7947_v23, 0.0  ;;  %v3340_v1 = vadd.f32 %v3339_v59, %v3263_v40  ;;  %v9023_v59 = vld [vmem:[#allocation104_spill] sm:$0xff] }
 0x377   : > { %v4477_v2 = vpop.eup %4476  ;;  %v2895_v19 = vsel %vm2095_vm7, %v7822_v26, %v4091_v13  ;;  %v2896_v3 = vsel %vm2096_vm8, %v7825_v17, %v4092_v57  ;;  %vm2104_vm12 = vcmp.gt.f32.partialorder %v7872_v21, 0.0  ;;  %vm2105_vm13 = vcmp.gt.f32.partialorder %v7877_v20, 0.0  ;;  %v9021_v13 = vld [vmem:[#allocation103_spill] sm:$0xff]  ;;  %v9022_v57 = vld [vmem:[#allocation14_spill] sm:$0xff] }
 0x378   : > { %v4479_v38 = vpop.eup %4478  ;;  %v7971_v16 = vadd.f32 %v7513_v24, %v1766_v62  ;;  %v1615_v34 = vadd.f32 %v9018_v27, %v9017_v7  ;;  %v1692_v22 = vadd.f32 %v9020_v49, %v9019_v51  ;;  %v2487_v4 = vmul.f32 1.442695, %v2273_v25  ;;  %3483 = vmatmul.f32.gmra.mxu0 %v2895_v19  ;;  %3560 = vmatmul.f32.gmra.mxu1 %v2896_v3  ;;  %v9026_v7 = vld [vmem:[#allocation15_spill] sm:$0xff] }
 0x379   : > { %v7978_v26 = vadd.f32 %v7515_v44, %v1843_v29  ;;  %v7980_v55 = vadd.f32 %v3416_v15, %v3340_v1  ;;  %vm2106_vm14 = vcmp.gt.f32.partialorder %v7894_v54, 0.0  ;;  %4482 = vpow2.f32 %v2483_v41  ;;  %v9024_v15 = vld [vmem:[#allocation153_spill] sm:$0xff] }
 0x37a   : > { %v2489_v17 = vmul.f32 1.442695, %v2274_v30  ;;  %v1769_v32 = vadd.f32 %v9022_v57, %v9021_v13  ;;  %v2897_v11 = vsel %vm2097_vm9, %v7846_v56, %v4093_v47  ;;  %v2898_v25 = vsel %vm2098_vm10, %v7849_v8, %v4094_v53  ;;  %v4481_v62 = vpop.eup %4480 }
 0x37b   : > { %4484 = vpow2.f32 %v2485_v18  ;;  %v2280_v63 = vmin.f32 %v7958_v48, 0.0  ;;  %3637 = vmatmul.f32.gmra.mxu2 %v2897_v11  ;;  %3714 = vmatmul.f32.gmra.mxu3 %v2898_v25  ;;  %v4099_v30 = vadd.f32 -1.0, %v4475_v42  ;;  %v4100_v43 = vadd.f32 -1.0, %v4477_v2  ;;  %v3342_v18 = vpop.f32.mrf.mxu2  ;;  %v3419_v2 = vpop.f32.mrf.mxu3 }
 0x37c   : > { %v4101_v29 = vadd.f32 -1.0, %v4479_v38  ;;  %v2281_v40 = vmin.f32 %v7971_v16, 0.0  ;;  %v7994_v41 = vadd.f32 %v7487_v37, %v1615_v34  ;;  %v7997_v56 = vadd.f32 %v7496_v14, %v1692_v22  ;;  %v9025_v38 = vld [vmem:[#allocation105_spill] sm:$0xff]  ;;  %v3191_v51 = vpop.f32.mrf.mxu0 }
 0x37d   : > { %4486 = vpow2.f32 %v2487_v4  ;;  %v2282_v8 = vmin.f32 %v7978_v26, 0.0  ;;  %v1846_v47 = vadd.f32 %v9024_v15, %v9023_v59  ;;  %v3266_v53 = vadd.f32 %v3265_v46, %v3188_v35  ;;  %v3268_v49 = vpop.f32.mrf.mxu1  ;;  %v9029_v59 = vld [vmem:[#allocation107_spill] sm:$0xff]  ;;  %v9030_v15 = vld [vmem:[#allocation154_spill] sm:$0xff] }
 0x37e   : > { %4488 = vpow2.f32 %v2489_v17  ;;  %v8003_v42 = vadd.f32 %v7513_v24, %v1769_v32  ;;  %v4102_v1 = vadd.f32 -1.0, %v4481_v62  ;;  %vm2111_vm15 = vcmp.gt.f32.partialorder %v7908_v28, 0.0  ;;  %v9027_v62 = vld [vmem:[#allocation106_spill] sm:$0xff] }
 0x37f   : > { %v2499_v19 = vmul.f32 1.442695, %v2279_v58  ;;  %v4483_v3 = vpop.eup %4482  ;;  %v1618_v27 = vadd.f32 %v9026_v7, %v9025_v38  ;;  %v3343_v34 = vadd.f32 %v3342_v18, %v3266_v53  ;;  %v2903_v35 = vsel %vm2103_vm11, %v7866_v36, %v4099_v30  ;;  %v9031_v53 = vld [vmem:[#allocation108_spill] sm:$0xff]  ;;  %v9032_v18 = vld [vmem:[#allocation17_spill] sm:$0xff] }
 0x380   : > { %vm2112_vm1 = vcmp.gt.f32.partialorder %v7911_v52, 0.0  ;;  %v2501_v46 = vmul.f32 1.442695, %v2280_v63  ;;  %v2287_v4 = vmin.f32 %v7994_v41, 0.0  ;;  %v2904_v58 = vsel %vm2104_vm12, %v7872_v21, %v4100_v43  ;;  %v9028_v63 = vld [vmem:[#allocation16_spill] sm:$0xff]  ;;  %3486 = vmatmul.f32.gmra.mxu0 %v2903_v35 }
 0x381   : > { %v4485_v22 = vpop.eup %4484  ;;  %v2905_v17 = vsel %vm2105_vm13, %v7877_v20, %v4101_v29  ;;  %v2503_v13 = vmul.f32 1.442695, %v2281_v40  ;;  %v2288_v57 = vmin.f32 %v7997_v56, 0.0  ;;  %v8021_v32 = vadd.f32 %v7515_v44, %v1846_v47  ;;  %3563 = vmatmul.f32.gmra.mxu1 %v2904_v58  ;;  %v9034_v58 = vld [vmem:[#allocation155_spill] sm:$0xff] }
 0x382   : > { %v8023_v36 = vadd.f32 %v3419_v2, %v3343_v34  ;;  %vm2113_vm2 = vcmp.gt.f32.partialorder %v7930_v10, 0.0  ;;  %vm2114_vm3 = vcmp.gt.f32.partialorder %v7933_v5, 0.0  ;;  %v2505_v11 = vmul.f32 1.442695, %v2282_v8 }
 0x383   : > { %v4487_v25 = vpop.eup %4486  ;;  %v2289_v21 = vmin.f32 %v8003_v42, 0.0  ;;  %v1695_v30 = vadd.f32 %v9028_v63, %v9027_v62  ;;  %v2906_v20 = vsel %vm2106_vm14, %v7894_v54, %v4102_v1  ;;  %4490 = vpow2.f32 %v2499_v19  ;;  %3640 = vmatmul.f32.gmra.mxu2 %v2905_v17 }
 0x384   : > { %v4489_v43 = vpop.eup %4488  ;;  %v8034_v29 = vadd.f32 %v7487_v37, %v1618_v27  ;;  %3717 = vmatmul.f32.gmra.mxu3 %v2906_v20  ;;  %v4107_v40 = vadd.f32 -1.0, %v4483_v3  ;;  %v4108_v8 = vadd.f32 -1.0, %v4485_v22  ;;  %4492 = vpow2.f32 %v2501_v46  ;;  %v3345_v27 = vpop.f32.mrf.mxu2  ;;  %v9033_v22 = vld [vmem:[#allocation109_spill] sm:$0xff] }
 0x385   : > { %v1772_v47 = vadd.f32 %v9030_v15, %v9029_v59  ;;  %v1849_v2 = vadd.f32 %v9032_v18, %v9031_v53  ;;  %4494 = vpow2.f32 %v2503_v13  ;;  %v2515_v38 = vmul.f32 1.442695, %v2287_v4  ;;  %v3422_v3 = vpop.f32.mrf.mxu3  ;;  %v9035_v13 = vld [vmem:[#allocation110_spill] sm:$0xff] }
 0x386   : > { %v2290_v54 = vmin.f32 %v8021_v32, 0.0  ;;  %v3269_v1 = vadd.f32 %v3268_v49, %v3191_v51  ;;  %4496 = vpow2.f32 %v2505_v11  ;;  %v2517_v19 = vmul.f32 1.442695, %v2288_v57  ;;  %v9036_v4 = vld [vmem:[#allocation18_spill] sm:$0xff]  ;;  %v3194_v51 = vpop.f32.mrf.mxu0  ;;  %v3271_v49 = vpop.f32.mrf.mxu1 }
 0x387   : > { %v8042_v7 = vadd.f32 %v7496_v14, %v1695_v30  ;;  %v4109_v34 = vadd.f32 -1.0, %v4487_v25  ;;  %v4110_v35 = vadd.f32 -1.0, %v4489_v43  ;;  %vm2119_vm4 = vcmp.gt.f32.partialorder %v7947_v23, 0.0 }
 0x388   : > { %v2519_v46 = vmul.f32 1.442695, %v2289_v21  ;;  %v1621_v17 = vadd.f32 %v9034_v58, %v9033_v22  ;;  %v1698_v62 = vadd.f32 %v9036_v4, %v9035_v13  ;;  %v3346_v63 = vadd.f32 %v3345_v27, %v3269_v1  ;;  %v9038_v1 = vld [vmem:[#allocation156_spill] sm:$0xff] }
 0x389   : > { %v2911_v57 = vsel %vm2111_vm15, %v7908_v28, %v4107_v40  ;;  %vm2120_vm5 = vcmp.gt.f32.partialorder %v7958_v48, 0.0  ;;  %v4491_v11 = vpop.eup %4490  ;;  %v8054_v25 = vadd.f32 %v7513_v24, %v1772_v47  ;;  %v8057_v21 = vadd.f32 %v7515_v44, %v1849_v2  ;;  %v9039_v27 = vld [vmem:[#allocation112_spill] sm:$0xff] }
 0x38a   : > { %v2912_v30 = vsel %vm2112_vm1, %v7911_v52, %v4108_v8  ;;  %4498 = vpow2.f32 %v2515_v38  ;;  %v4493_v20 = vpop.eup %4492  ;;  %v2295_v43 = vmin.f32 %v8034_v29, 0.0  ;;  %v8063_v59 = vadd.f32 %v3422_v3, %v3346_v63  ;;  %3489 = vmatmul.f32.gmra.mxu0 %v2911_v57  ;;  %v9040_v3 = vld [vmem:[#allocation19_spill] sm:$0xff] }
 0x38b   : > { %vm2121_vm6 = vcmp.gt.f32.partialorder %v7971_v16, 0.0  ;;  %4500 = vpow2.f32 %v2517_v19  ;;  %v2521_v28 = vmul.f32 1.442695, %v2290_v54  ;;  %v4495_v40 = vpop.eup %4494  ;;  %v2296_v15 = vmin.f32 %v8042_v7, 0.0  ;;  %3566 = vmatmul.f32.gmra.mxu1 %v2912_v30  ;;  %v9037_v54 = vld [vmem:[#allocation111_spill] sm:$0xff]  ;;  %v9042_v30 = vld [vmem:[#allocation20_spill] sm:$0xff] }
 0x38c   : > { %v2913_v47 = vsel %vm2113_vm2, %v7930_v10, %v4109_v34  ;;  %v2914_v52 = vsel %vm2114_vm3, %v7933_v5, %v4110_v35  ;;  %4502 = vpow2.f32 %v2519_v46  ;;  %v4497_v8 = vpop.eup %4496  ;;  %v8074_v53 = vadd.f32 %v7487_v37, %v1621_v17  ;;  %v3348_v58 = vpop.f32.mrf.mxu2 }
 0x38d   : > { %v8077_v18 = vadd.f32 %v7496_v14, %v1698_v62  ;;  %3643 = vmatmul.f32.gmra.mxu2 %v2913_v47  ;;  %3720 = vmatmul.f32.gmra.mxu3 %v2914_v52  ;;  %v4115_v2 = vadd.f32 -1.0, %v4491_v11  ;;  %vm2122_vm7 = vcmp.gt.f32.partialorder %v7978_v26, 0.0  ;;  %v2297_v38 = vmin.f32 %v8054_v25, 0.0  ;;  %v3425_v17 = vpop.f32.mrf.mxu3  ;;  %v9041_v11 = vld [vmem:[#allocation113_spill] sm:$0xff] }
 0x38e   : > { %v2298_v10 = vmin.f32 %v8057_v21, 0.0  ;;  %v1775_v5 = vadd.f32 %v9038_v1, %v9037_v54  ;;  %v4116_v19 = vadd.f32 -1.0, %v4493_v20  ;;  %v1852_v34 = vadd.f32 %v9040_v3, %v9039_v27  ;;  %v9044_v27 = vld [vmem:[#allocation157_spill] sm:$0xff] }
 0x38f   : > { %v3272_v35 = vadd.f32 %v3271_v49, %v3194_v51  ;;  %4504 = vpow2.f32 %v2521_v28  ;;  %v2531_v46 = vmul.f32 1.442695, %v2295_v43  ;;  %v4117_v13 = vadd.f32 -1.0, %v4495_v40  ;;  %v3197_v51 = vpop.f32.mrf.mxu0  ;;  %v3274_v49 = vpop.f32.mrf.mxu1 }
 0x390   : > { %v4499_v22 = vpop.eup %4498  ;;  %v4118_v4 = vadd.f32 -1.0, %v4497_v8  ;;  %vm2127_vm8 = vcmp.gt.f32.partialorder %v7994_v41, 0.0  ;;  %vm2128_vm9 = vcmp.gt.f32.partialorder %v7997_v56, 0.0  ;;  %v2533_v62 = vmul.f32 1.442695, %v2296_v15 }
 0x391   : > { %v4501_v63 = vpop.eup %4500  ;;  %v2303_v57 = vmin.f32 %v8074_v53, 0.0  ;;  %v1624_v20 = vadd.f32 %v9042_v30, %v9041_v11  ;;  %v3349_v47 = vadd.f32 %v3348_v58, %v3272_v35  ;;  %v2919_v43 = vsel %vm2119_vm4, %v7947_v23, %v4115_v2  ;;  %v9043_v2 = vld [vmem:[#allocation114_spill] sm:$0xff]  ;;  %v9045_v58 = vld [vmem:[#allocation115_spill] sm:$0xff] }
 0x392   : > { %vm2129_vm10 = vcmp.gt.f32.partialorder %v8003_v42, 0.0  ;;  %v4503_v28 = vpop.eup %4502  ;;  %v2304_v40 = vmin.f32 %v8077_v18, 0.0  ;;  %v8097_v15 = vadd.f32 %v7513_v24, %v1775_v5  ;;  %v2920_v52 = vsel %vm2120_vm5, %v7958_v48, %v4116_v19  ;;  %3492 = vmatmul.f32.gmra.mxu0 %v2919_v43 }
 0x393   : > { %v2535_v8 = vmul.f32 1.442695, %v2297_v38  ;;  %v8103_v54 = vadd.f32 %v7515_v44, %v1852_v34  ;;  %v8105_v1 = vadd.f32 %v3425_v17, %v3349_v47  ;;  %vm2130_vm11 = vcmp.gt.f32.partialorder %v8021_v32, 0.0  ;;  %3569 = vmatmul.f32.gmra.mxu1 %v2920_v52  ;;  %v9046_v17 = vld [vmem:[#allocation21_spill] sm:$0xff] }
 0x394   : > { %4506 = vpow2.f32 %v2531_v46  ;;  %v2537_v23 = vmul.f32 1.442695, %v2298_v10  ;;  %v1701_v3 = vadd.f32 %v9044_v27, %v9043_v2  ;;  %v2921_v5 = vsel %vm2121_vm6, %v7971_v16, %v4117_v13  ;;  %v9047_v16 = vld [vmem:[#allocation116_spill] sm:$0xff]  ;;  %v9048_v13 = vld [vmem:[#allocation158_spill] sm:$0xff]  ;;  %v9049_v52 = vld [vmem:[#allocation117_spill] sm:$0xff] }
 0x395   : > { %v2922_v48 = vsel %vm2122_vm7, %v7978_v26, %v4118_v4  ;;  %4508 = vpow2.f32 %v2533_v62  ;;  %v4505_v38 = vpop.eup %4504  ;;  %v8117_v19 = vadd.f32 %v7487_v37, %v1624_v20  ;;  %3646 = vmatmul.f32.gmra.mxu2 %v2921_v5  ;;  %v4123_v10 = vadd.f32 -1.0, %v4499_v22  ;;  %v3351_v22 = vpop.f32.mrf.mxu2  ;;  %v9050_v2 = vld [vmem:[#allocation22_spill] sm:$0xff] }
 0x396   : > { %3723 = vmatmul.f32.gmra.mxu3 %v2922_v48  ;;  %v4124_v34 = vadd.f32 -1.0, %v4501_v63  ;;  %v4125_v35 = vadd.f32 -1.0, %v4503_v28  ;;  %v2305_v46 = vmin.f32 %v8097_v15, 0.0  ;;  %v1778_v11 = vadd.f32 %v9046_v17, %v9045_v58  ;;  %v3428_v63 = vpop.f32.mrf.mxu3 }
 0x397   : > { %v1855_v30 = vadd.f32 %v9048_v13, %v9047_v16  ;;  %4510 = vpow2.f32 %v2535_v8  ;;  %v2306_v26 = vmin.f32 %v8103_v54, 0.0  ;;  %v3275_v4 = vadd.f32 %v3274_v49, %v3197_v51  ;;  %v3200_v5 = vpop.f32.mrf.mxu0  ;;  %v3277_v51 = vpop.f32.mrf.mxu1 }
 0x398   : > { %4512 = vpow2.f32 %v2537_v23  ;;  %v2547_v62 = vmul.f32 1.442695, %v2303_v57  ;;  %v8126_v20 = vadd.f32 %v7496_v14, %v1701_v3  ;;  %v4126_v47 = vadd.f32 -1.0, %v4505_v38 }
 0x399   : > { %vm2135_vm12 = vcmp.gt.f32.partialorder %v8034_v29, 0.0  ;;  %vm2136_vm13 = vcmp.gt.f32.partialorder %v8042_v7, 0.0  ;;  %v2549_v43 = vmul.f32 1.442695, %v2304_v40  ;;  %v1627_v8 = vadd.f32 %v9050_v2, %v9049_v52 }
 0x39a   : > { %v4507_v28 = vpop.eup %4506  ;;  %v3352_v27 = vadd.f32 %v3351_v22, %v3275_v4  ;;  %v2927_v57 = vsel %vm2127_vm8, %v7994_v41, %v4123_v10  ;;  %v2928_v49 = vsel %vm2128_vm9, %v7997_v56, %v4124_v34  ;;  %v8139_v3 = vadd.f32 %v7513_v24, %v1778_v11  ;;  %v9052_v11 = vld [vmem:[#allocation159_spill] sm:$0xff] }
 0x39b   : > { %v4509_v23 = vpop.eup %4508  ;;  %v8142_v40 = vadd.f32 %v7515_v44, %v1855_v30  ;;  %v2929_v48 = vsel %vm2129_vm10, %v8003_v42, %v4125_v35  ;;  %v2551_v38 = vmul.f32 1.442695, %v2305_v46  ;;  %v2311_v58 = vmin.f32 %v8117_v19, 0.0  ;;  %3495 = vmatmul.f32.gmra.mxu0 %v2927_v57  ;;  %3572 = vmatmul.f32.gmra.mxu1 %v2928_v49  ;;  %v9051_v46 = vld [vmem:[#allocation118_spill] sm:$0xff] }
 0x39c   : > { %v8148_v17 = vadd.f32 %v3428_v63, %v3352_v27  ;;  %vm2137_vm14 = vcmp.gt.f32.partialorder %v8054_v25, 0.0  ;;  %4514 = vpow2.f32 %v2547_v62  ;;  %v2553_v41 = vmul.f32 1.442695, %v2306_v26  ;;  %v9053_v62 = vld [vmem:[#allocation119_spill] sm:$0xff]  ;;  %v9055_v63 = vld [vmem:[#allocation120_spill] sm:$0xff] }
 0x39d   : > { %v4511_v56 = vpop.eup %4510  ;;  %v2312_v10 = vmin.f32 %v8126_v20, 0.0  ;;  %v2930_v34 = vsel %vm2130_vm11, %v8021_v32, %v4126_v47  ;;  %vm2138_vm15 = vcmp.gt.f32.partialorder %v8057_v21, 0.0  ;;  %4516 = vpow2.f32 %v2549_v43  ;;  %3649 = vmatmul.f32.gmra.mxu2 %v2929_v48  ;;  %v9054_v32 = vld [vmem:[#allocation23_spill] sm:$0xff]  ;;  %v9056_v47 = vld [vmem:[#allocation160_spill] sm:$0xff] }
 0x39e   : > { %v4513_v42 = vpop.eup %4512  ;;  %v8157_v35 = vadd.f32 %v7487_v37, %v1627_v8  ;;  %v1704_v16 = vadd.f32 %v9052_v11, %v9051_v46  ;;  %3726 = vmatmul.f32.gmra.mxu3 %v2930_v34  ;;  %v4131_v13 = vadd.f32 -1.0, %v4507_v28  ;;  %v4132_v30 = vadd.f32 -1.0, %v4509_v23  ;;  %v3354_v8 = vpop.f32.mrf.mxu2 }
 0x39f   : > { %v2313_v26 = vmin.f32 %v8139_v3, 0.0  ;;  %v2314_v4 = vmin.f32 %v8142_v40, 0.0  ;;  %v1781_v22 = vadd.f32 %v9054_v32, %v9053_v62  ;;  %4518 = vpow2.f32 %v2551_v38  ;;  %v3431_v27 = vpop.f32.mrf.mxu3  ;;  %v3203_v46 = vpop.f32.mrf.mxu0  ;;  %v9060_v32 = vld [vmem:[#allocation161_spill] sm:$0xff] }
 0x3a0   : > { %v1858_v43 = vadd.f32 %v9056_v47, %v9055_v63  ;;  %v3278_v52 = vadd.f32 %v3277_v51, %v3200_v5  ;;  %4520 = vpow2.f32 %v2553_v41  ;;  %v2563_v2 = vmul.f32 1.442695, %v2311_v58  ;;  %v3280_v38 = vpop.f32.mrf.mxu1 }
 0x3a1   : > { %v4133_v57 = vadd.f32 -1.0, %v4511_v56  ;;  %v4134_v49 = vadd.f32 -1.0, %v4513_v42  ;;  %vm2143_vm1 = vcmp.gt.f32.partialorder %v8074_v53, 0.0  ;;  %v2565_v28 = vmul.f32 1.442695, %v2312_v10  ;;  %v9057_v10 = vld [vmem:[#allocation121_spill] sm:$0xff] }
 0x3a2   : > { %v4515_v23 = vpop.eup %4514  ;;  %v8169_v48 = vadd.f32 %v7496_v14, %v1704_v16  ;;  %v3355_v34 = vadd.f32 %v3354_v8, %v3278_v52  ;;  %v2935_v5 = vsel %vm2135_vm12, %v8034_v29, %v4131_v13  ;;  %v2936_v51 = vsel %vm2136_vm13, %v8042_v7, %v4132_v30  ;;  %v9058_v42 = vld [vmem:[#allocation24_spill] sm:$0xff]  ;;  %v9059_v30 = vld [vmem:[#allocation122_spill] sm:$0xff] }
 0x3a3   : > { %vm2144_vm2 = vcmp.gt.f32.partialorder %v8077_v18, 0.0  ;;  %v4517_v58 = vpop.eup %4516  ;;  %v2319_v41 = vmin.f32 %v8157_v35, 0.0  ;;  %v8180_v56 = vadd.f32 %v7513_v24, %v1781_v22  ;;  %v1630_v11 = vadd.f32 %v9058_v42, %v9057_v10  ;;  %3498 = vmatmul.f32.gmra.mxu0 %v2935_v5  ;;  %3575 = vmatmul.f32.gmra.mxu1 %v2936_v51 }
 0x3a4   : > { %v2567_v16 = vmul.f32 1.442695, %v2313_v26  ;;  %v8185_v62 = vadd.f32 %v7515_v44, %v1858_v43  ;;  %v8187_v29 = vadd.f32 %v3431_v27, %v3355_v34  ;;  %vm2145_vm3 = vcmp.gt.f32.partialorder %v8097_v15, 0.0  ;;  %v9062_v27 = vld [vmem:[#allocation25_spill] sm:$0xff] }
 0x3a5   : > { %4522 = vpow2.f32 %v2563_v2  ;;  %v2569_v7 = vmul.f32 1.442695, %v2314_v4  ;;  %v4519_v13 = vpop.eup %4518  ;;  %v1707_v63 = vadd.f32 %v9060_v32, %v9059_v30  ;;  %v2937_v22 = vsel %vm2137_vm14, %v8054_v25, %v4133_v57  ;;  %v9061_v25 = vld [vmem:[#allocation123_spill] sm:$0xff] }
 0x3a6   : > { %v2938_v26 = vsel %vm2138_vm15, %v8057_v21, %v4134_v49  ;;  %4524 = vpow2.f32 %v2565_v28  ;;  %v4521_v47 = vpop.eup %4520  ;;  %v2320_v43 = vmin.f32 %v8169_v48, 0.0  ;;  %3652 = vmatmul.f32.gmra.mxu2 %v2937_v22  ;;  %v4139_v4 = vadd.f32 -1.0, %v4515_v23  ;;  %v9063_v49 = vld [vmem:[#allocation124_spill] sm:$0xff]  ;;  %v9064_v28 = vld [vmem:[#allocation162_spill] sm:$0xff]  ;;  %v3357_v51 = vpop.f32.mrf.mxu2 }
 0x3a7   : > { %3729 = vmatmul.f32.gmra.mxu3 %v2938_v26  ;;  %v4140_v52 = vadd.f32 -1.0, %v4517_v58  ;;  %vm2146_vm4 = vcmp.gt.f32.partialorder %v8103_v54, 0.0  ;;  %v2321_v2 = vmin.f32 %v8180_v56, 0.0  ;;  %v8202_v8 = vadd.f32 %v7487_v37, %v1630_v11  ;;  %v3434_v58 = vpop.f32.mrf.mxu3  ;;  %v3206_v22 = vpop.f32.mrf.mxu0 }
 0x3a8   : > { %v1784_v57 = vadd.f32 %v9062_v27, %v9061_v25  ;;  %4526 = vpow2.f32 %v2567_v16  ;;  %v2322_v21 = vmin.f32 %v8185_v62, 0.0  ;;  %v1861_v34 = vadd.f32 %v9064_v28, %v9063_v49  ;;  %v3283_v26 = vpop.f32.mrf.mxu1  ;;  %v9067_v28 = vld [vmem:[#allocation126_spill] sm:$0xff] }
 0x3a9   : > { %v3281_v5 = vadd.f32 %v3280_v38, %v3203_v46  ;;  %4528 = vpow2.f32 %v2569_v7  ;;  %v8210_v23 = vadd.f32 %v7496_v14, %v1707_v63  ;;  %v4141_v10 = vadd.f32 -1.0, %v4519_v13  ;;  %v9065_v13 = vld [vmem:[#allocation125_spill] sm:$0xff]  ;;  %v9066_v63 = vld [vmem:[#allocation26_spill] sm:$0xff] }
 0x3aa   : > { %v4142_v42 = vadd.f32 -1.0, %v4521_v47  ;;  %v2579_v11 = vmul.f32 1.442695, %v2319_v41  ;;  %v2943_v16 = vsel %vm2143_vm1, %v8074_v53, %v4139_v4  ;;  %vm2151_vm5 = vcmp.gt.f32.partialorder %v8117_v19, 0.0 }
 0x3ab   : > { %v4523_v30 = vpop.eup %4522  ;;  %v3358_v32 = vadd.f32 %v3357_v51, %v3281_v5  ;;  %vm2152_vm6 = vcmp.gt.f32.partialorder %v8126_v20, 0.0  ;;  %v2581_v46 = vmul.f32 1.442695, %v2320_v43  ;;  %v8218_v7 = vadd.f32 %v7513_v24, %v1784_v57  ;;  %3501 = vmatmul.f32.gmra.mxu0 %v2943_v16 }
 0x3ac   : > { %v4525_v38 = vpop.eup %4524  ;;  %v1633_v41 = vadd.f32 %v9066_v63, %v9065_v13  ;;  %v2944_v47 = vsel %vm2144_vm2, %v8077_v18, %v4140_v52  ;;  %v2583_v25 = vmul.f32 1.442695, %v2321_v2  ;;  %v2327_v27 = vmin.f32 %v8202_v8, 0.0 }
 0x3ad   : > { %v8227_v53 = vadd.f32 %v7515_v44, %v1861_v34  ;;  %v8229_v4 = vadd.f32 %v3434_v58, %v3358_v32  ;;  %vm2153_vm7 = vcmp.gt.f32.partialorder %v8139_v3, 0.0  ;;  %vm2154_vm8 = vcmp.gt.f32.partialorder %v8142_v40, 0.0  ;;  %3578 = vmatmul.f32.gmra.mxu1 %v2944_v47  ;;  %v9068_v34 = vld [vmem:[#allocation163_spill] sm:$0xff] }
 0x3ae   : > { %v2585_v43 = vmul.f32 1.442695, %v2322_v21  ;;  %v4527_v57 = vpop.eup %4526  ;;  %v2328_v49 = vmin.f32 %v8210_v23, 0.0  ;;  %v2945_v18 = vsel %vm2145_vm3, %v8097_v15, %v4141_v10  ;;  %v2946_v52 = vsel %vm2146_vm4, %v8103_v54, %v4142_v42  ;;  %v9069_v15 = vld [vmem:[#allocation127_spill] sm:$0xff]  ;;  %v9071_v42 = vld [vmem:[#allocation128_spill] sm:$0xff]  ;;  %v3360_v47 = vpop.f32.mrf.mxu2 }
 0x3af   : > { %4530 = vpow2.f32 %v2579_v11  ;;  %v4529_v2 = vpop.eup %4528  ;;  %v1710_v5 = vadd.f32 %v9068_v34, %v9067_v28  ;;  %3655 = vmatmul.f32.gmra.mxu2 %v2945_v18  ;;  %3732 = vmatmul.f32.gmra.mxu3 %v2946_v52  ;;  %v4147_v21 = vadd.f32 -1.0, %v4523_v30  ;;  %v4148_v51 = vadd.f32 -1.0, %v4525_v38  ;;  %v9070_v10 = vld [vmem:[#allocation27_spill] sm:$0xff]  ;;  %v9072_v11 = vld [vmem:[#allocation28_spill] sm:$0xff]  ;;  %v3437_v30 = vpop.f32.mrf.mxu3 }
 0x3b0   : > { %4532 = vpow2.f32 %v2581_v46  ;;  %v2329_v58 = vmin.f32 %v8218_v7, 0.0  ;;  %v8244_v32 = vadd.f32 %v7487_v37, %v1633_v41  ;;  %v1787_v16 = vadd.f32 %v9070_v10, %v9069_v15  ;;  %v3209_v28 = vpop.f32.mrf.mxu0 }
 0x3b1   : > { %4534 = vpow2.f32 %v2583_v25  ;;  %v2330_v54 = vmin.f32 %v8227_v53, 0.0  ;;  %v1864_v13 = vadd.f32 %v9072_v11, %v9071_v42  ;;  %v3284_v63 = vadd.f32 %v3283_v26, %v3206_v22  ;;  %v3286_v25 = vpop.f32.mrf.mxu1 }
 0x3b2   : > { %4536 = vpow2.f32 %v2585_v43  ;;  %v4149_v38 = vadd.f32 -1.0, %v4527_v57  ;;  %v4150_v46 = vadd.f32 -1.0, %v4529_v2  ;;  %vm2159_vm9 = vcmp.gt.f32.partialorder %v8157_v35, 0.0 }
 0x3b3   : > { %v2595_v18 = vmul.f32 1.442695, %v2327_v27  ;;  %v8253_v41 = vadd.f32 %v7496_v14, %v1710_v5  ;;  %v3361_v52 = vadd.f32 %v3360_v47, %v3284_v63  ;;  %vm2160_vm10 = vcmp.gt.f32.partialorder %v8169_v48, 0.0 }
 0x3b4   : > { %v2597_v34 = vmul.f32 1.442695, %v2328_v49  ;;  %v8257_v22 = vadd.f32 %v7513_v24, %v1787_v16  ;;  %v2951_v26 = vsel %vm2151_vm5, %v8117_v19, %v4147_v21  ;;  %v2952_v27 = vsel %vm2152_vm6, %v8126_v20, %v4148_v51  ;;  %v9073_v19 = vld [vmem:[#allocation129_spill] sm:$0xff] }
 0x3b5   : > { %v4531_v15 = vpop.eup %4530  ;;  %v2599_v43 = vmul.f32 1.442695, %v2329_v58  ;;  %v2335_v2 = vmin.f32 %v8244_v32, 0.0  ;;  %v8267_v5 = vadd.f32 %v7515_v44, %v1864_v13  ;;  %v8269_v49 = vadd.f32 %v3437_v30, %v3361_v52  ;;  %v9074_v21 = vld [vmem:[#allocation29_spill] sm:$0xff]  ;;  %3504 = vmatmul.f32.gmra.mxu0 %v2951_v26  ;;  %3581 = vmatmul.f32.gmra.mxu1 %v2952_v27  ;;  %v9075_v13 = vld [vmem:[#allocation130_spill] sm:$0xff]  ;;  %v9077_v52 = vld [vmem:[#allocation131_spill] sm:$0xff] }
 0x3b6   : > { %v4533_v57 = vpop.eup %4532  ;;  %vm2161_vm11 = vcmp.gt.f32.partialorder %v8180_v56, 0.0  ;;  %vm2162_vm12 = vcmp.gt.f32.partialorder %v8185_v62, 0.0  ;;  %v2601_v10 = vmul.f32 1.442695, %v2330_v54  ;;  %v1636_v42 = vadd.f32 %v9074_v21, %v9073_v19  ;;  %v9076_v54 = vld [vmem:[#allocation164_spill] sm:$0xff]  ;;  %v9078_v26 = vld [vmem:[#allocation30_spill] sm:$0xff] }
 0x3b7   : > { %v4535_v16 = vpop.eup %4534  ;;  %v2953_v20 = vsel %vm2153_vm7, %v8139_v3, %v4149_v38  ;;  %v2954_v51 = vsel %vm2154_vm8, %v8142_v40, %v4150_v46  ;;  %4538 = vpow2.f32 %v2595_v18  ;;  %v2336_v11 = vmin.f32 %v8253_v41, 0.0  ;;  %v9079_v46 = vld [vmem:[#allocation132_spill] sm:$0xff]  ;;  %v9080_v18 = vld [vmem:[#allocation165_spill] sm:$0xff] }
 0x3b8   : > { %v4537_v58 = vpop.eup %4536  ;;  %v1713_v63 = vadd.f32 %v9076_v54, %v9075_v13  ;;  %3658 = vmatmul.f32.gmra.mxu2 %v2953_v20  ;;  %3735 = vmatmul.f32.gmra.mxu3 %v2954_v51  ;;  %v4155_v47 = vadd.f32 -1.0, %v4531_v15  ;;  %4540 = vpow2.f32 %v2597_v34  ;;  %v2337_v30 = vmin.f32 %v8257_v22, 0.0  ;;  %v3363_v20 = vpop.f32.mrf.mxu2 }
 0x3b9   : > { %v1790_v3 = vadd.f32 %v9078_v26, %v9077_v52  ;;  %v4156_v38 = vadd.f32 -1.0, %v4533_v57  ;;  %4542 = vpow2.f32 %v2599_v43  ;;  %v2338_v40 = vmin.f32 %v8267_v5, 0.0  ;;  %v3440_v15 = vpop.f32.mrf.mxu3  ;;  %v3212_v54 = vpop.f32.mrf.mxu0 }
 0x3ba   : > { %v1867_v27 = vadd.f32 %v9080_v18, %v9079_v46  ;;  %v3287_v19 = vadd.f32 %v3286_v25, %v3209_v28  ;;  %4544 = vpow2.f32 %v2601_v10  ;;  %v8291_v21 = vadd.f32 %v7487_v37, %v1636_v42  ;;  %v3289_v52 = vpop.f32.mrf.mxu1  ;;  %v9081_v46 = vld [vmem:[#allocation133_spill] sm:$0xff]  ;;  %v9082_v18 = vld [vmem:[#allocation31_spill] sm:$0xff] }
 0x3bb   : > { %v4157_v34 = vadd.f32 -1.0, %v4535_v16  ;;  %v4158_v51 = vadd.f32 -1.0, %v4537_v58  ;;  %vm2167_vm13 = vcmp.gt.f32.partialorder %v8202_v8, 0.0  ;;  %v2611_v13 = vmul.f32 1.442695, %v2335_v2 }
 0x3bc   : > { %v8295_v57 = vadd.f32 %v7496_v14, %v1713_v63  ;;  %v3364_v43 = vadd.f32 %v3363_v20, %v3287_v19  ;;  %v2959_v28 = vsel %vm2159_vm9, %v8157_v35, %v4155_v47  ;;  %vm2168_vm14 = vcmp.gt.f32.partialorder %v8210_v23, 0.0  ;;  %v9083_v20 = vld [vmem:[#allocation134_spill] sm:$0xff] }
 0x3bd   : > { %v2613_v25 = vmul.f32 1.442695, %v2336_v11  ;;  %v4539_v10 = vpop.eup %4538  ;;  %v8302_v16 = vadd.f32 %v7513_v24, %v1790_v3  ;;  %v3290_v42 = vadd.f32 %v3289_v52, %v3212_v54  ;;  %v2960_v2 = vsel %vm2160_vm10, %v8169_v48, %v4156_v38  ;;  %3507 = vmatmul.f32.gmra.mxu0 %v2959_v28  ;;  %v9085_v52 = vld [vmem:[#allocation135_spill] sm:$0xff]  ;;  %v9086_v28 = vld [vmem:[#allocation166_spill] sm:$0xff] }
 0x3be   : > { %v2615_v58 = vmul.f32 1.442695, %v2337_v30  ;;  %v4541_v63 = vpop.eup %4540  ;;  %v8308_v26 = vadd.f32 %v7515_v44, %v1867_v27  ;;  %v1639_v35 = vadd.f32 %v9082_v18, %v9081_v46  ;;  %v8312_v47 = vadd.f32 %v3440_v15, %v3364_v43  ;;  %3584 = vmatmul.f32.gmra.mxu1 %v2960_v2  ;;  %v9084_v15 = vld [vmem:[#allocation32_spill] sm:$0xff]  ;;  %v9088_v2 = vld [vmem:[#allocation33_spill] sm:$0xff] }
 0x3bf   : > { %vm2169_vm15 = vcmp.gt.f32.partialorder %v8218_v7, 0.0  ;;  %vm2170_vm1 = vcmp.gt.f32.partialorder %v8227_v53, 0.0  ;;  %v2617_v11 = vmul.f32 1.442695, %v2338_v40  ;;  %v4543_v3 = vpop.eup %4542  ;;  %v2343_v19 = vmin.f32 %v8291_v21, 0.0 }
 0x3c0   : > { %v2961_v48 = vsel %vm2161_vm11, %v8180_v56, %v4157_v34  ;;  %v2962_v30 = vsel %vm2162_vm12, %v8185_v62, %v4158_v51  ;;  %4546 = vpow2.f32 %v2611_v13  ;;  %v4545_v38 = vpop.eup %4544  ;;  %v2344_v27 = vmin.f32 %v8295_v57, 0.0  ;;  %v9087_v13 = vld [vmem:[#allocation136_spill] sm:$0xff]  ;;  %v3366_v18 = vpop.f32.mrf.mxu2 }
 0x3c1   : > { %v1716_v40 = vadd.f32 %v9084_v15, %v9083_v20  ;;  %3661 = vmatmul.f32.gmra.mxu2 %v2961_v48  ;;  %3738 = vmatmul.f32.gmra.mxu3 %v2962_v30  ;;  %v4163_v43 = vadd.f32 -1.0, %v4539_v10  ;;  %4548 = vpow2.f32 %v2613_v25  ;;  %v2345_v54 = vmin.f32 %v8302_v16, 0.0  ;;  %v3443_v48 = vpop.f32.mrf.mxu3 }
 0x3c2   : > { %v1793_v56 = vadd.f32 %v9086_v28, %v9085_v52  ;;  %v4164_v34 = vadd.f32 -1.0, %v4541_v63  ;;  %4550 = vpow2.f32 %v2615_v58  ;;  %v2346_v62 = vmin.f32 %v8308_v26, 0.0  ;;  %v3215_v63 = vpop.f32.mrf.mxu0  ;;  %v3292_v15 = vpop.f32.mrf.mxu1 }
 0x3c3   : > { %v8331_v51 = vadd.f32 %v7487_v37, %v1639_v35  ;;  %v1870_v46 = vadd.f32 %v9088_v2, %v9087_v13  ;;  %4552 = vpow2.f32 %v2617_v11  ;;  %v4165_v10 = vadd.f32 -1.0, %v4543_v3  ;;  %v9090_v2 = vld [vmem:[#allocation167_spill] sm:$0xff] }
 0x3c4   : > { %v4166_v25 = vadd.f32 -1.0, %v4545_v38  ;;  %vm2175_vm2 = vcmp.gt.f32.partialorder %v8244_v32, 0.0  ;;  %v2627_v30 = vmul.f32 1.442695, %v2343_v19  ;;  %v8337_v20 = vadd.f32 %v7496_v14, %v1716_v40 }
 0x3c5   : > { %v3367_v58 = vadd.f32 %v3366_v18, %v3290_v42  ;;  %v2967_v35 = vsel %vm2167_vm13, %v8202_v8, %v4163_v43  ;;  %vm2176_vm3 = vcmp.gt.f32.partialorder %v8253_v41, 0.0  ;;  %v2629_v11 = vmul.f32 1.442695, %v2344_v27 }
 0x3c6   : > { %v4547_v52 = vpop.eup %4546  ;;  %v8344_v3 = vadd.f32 %v7513_v24, %v1793_v56  ;;  %v3293_v38 = vadd.f32 %v3292_v15, %v3215_v63  ;;  %v2968_v19 = vsel %vm2168_vm14, %v8210_v23, %v4164_v34  ;;  %v2631_v40 = vmul.f32 1.442695, %v2345_v54  ;;  %v9089_v56 = vld [vmem:[#allocation137_spill] sm:$0xff]  ;;  %3510 = vmatmul.f32.gmra.mxu0 %v2967_v35  ;;  %v9093_v35 = vld [vmem:[#allocation139_spill] sm:$0xff] }
 0x3c7   : > { %v4549_v42 = vpop.eup %4548  ;;  %v2351_v28 = vmin.f32 %v8331_v51, 0.0  ;;  %v8351_v13 = vadd.f32 %v7515_v44, %v1870_v46  ;;  %v8353_v8 = vadd.f32 %v3443_v48, %v3367_v58  ;;  %vm2177_vm4 = vcmp.gt.f32.partialorder %v8257_v22, 0.0  ;;  %3587 = vmatmul.f32.gmra.mxu1 %v2968_v19  ;;  %v9091_v48 = vld [vmem:[#allocation138_spill] sm:$0xff]  ;;  %v9094_v19 = vld [vmem:[#allocation168_spill] sm:$0xff] }
 0x3c8   : > { %v2633_v27 = vmul.f32 1.442695, %v2346_v62  ;;  %v4551_v43 = vpop.eup %4550  ;;  %v1642_v18 = vadd.f32 %v9090_v2, %v9089_v56  ;;  %v2969_v23 = vsel %vm2169_vm15, %v8218_v7, %v4165_v10  ;;  %v2970_v54 = vsel %vm2170_vm1, %v8227_v53, %v4166_v25  ;;  %v9092_v62 = vld [vmem:[#allocation34_spill] sm:$0xff]  ;;  %v9095_v25 = vld [vmem:[#allocation140_spill] sm:$0xff] }
 0x3c9   : > { %4554 = vpow2.f32 %v2627_v30  ;;  %v4553_v34 = vpop.eup %4552  ;;  %v2352_v46 = vmin.f32 %v8337_v20, 0.0  ;;  %v1719_v58 = vadd.f32 %v9092_v62, %v9091_v48  ;;  %3664 = vmatmul.f32.gmra.mxu2 %v2969_v23  ;;  %3741 = vmatmul.f32.gmra.mxu3 %v2970_v54  ;;  %v4171_v63 = vadd.f32 -1.0, %v4547_v52  ;;  %v9096_v30 = vld [vmem:[#allocation35_spill] sm:$0xff]  ;;  %v3369_v52 = vpop.f32.mrf.mxu2 }
 0x3ca   : > { %4556 = vpow2.f32 %v2629_v11  ;;  %v2353_v15 = vmin.f32 %v8344_v3, 0.0  ;;  %v1796_v7 = vadd.f32 %v9094_v19, %v9093_v35  ;;  %v4172_v10 = vadd.f32 -1.0, %v4549_v42  ;;  %v3446_v11 = vpop.f32.mrf.mxu3  ;;  %v3218_v62 = vpop.f32.mrf.mxu0 }
 0x3cb   : > { %4558 = vpow2.f32 %v2631_v40  ;;  %v2354_v53 = vmin.f32 %v8351_v13, 0.0  ;;  %v1873_v56 = vadd.f32 %v9096_v30, %v9095_v25  ;;  %vm2178_vm5 = vcmp.gt.f32.partialorder %v8267_v5, 0.0  ;;  %v3295_v35 = vpop.f32.mrf.mxu1  ;;  %v9097_v30 = vld [vmem:[#allocation141_spill] sm:$0xff] }
 0x3cc   : > { %4560 = vpow2.f32 %v2633_v27  ;;  %v8375_v2 = vadd.f32 %v7487_v37, %v1642_v18  ;;  %v4173_v23 = vadd.f32 -1.0, %v4551_v43  ;;  %v4174_v54 = vadd.f32 -1.0, %v4553_v34 }
 0x3cd   : > { %vm2183_vm6 = vcmp.gt.f32.partialorder %v8291_v21, 0.0  ;;  %v2643_v48 = vmul.f32 1.442695, %v2351_v28  ;;  %v8379_v40 = vadd.f32 %v7496_v14, %v1719_v58  ;;  %v3370_v42 = vadd.f32 %v3369_v52, %v3293_v38  ;;  %v9098_v52 = vld [vmem:[#allocation36_spill] sm:$0xff] }
 0x3ce   : > { %v2975_v27 = vsel %vm2175_vm2, %v8244_v32, %v4171_v63  ;;  %vm2184_vm7 = vcmp.gt.f32.partialorder %v8295_v57, 0.0  ;;  %v2645_v18 = vmul.f32 1.442695, %v2352_v46  ;;  %v8386_v43 = vadd.f32 %v7513_v24, %v1796_v7 }
 0x3cf   : > { %v4555_v19 = vpop.eup %4554  ;;  %v3296_v34 = vadd.f32 %v3295_v35, %v3218_v62  ;;  %v2976_v28 = vsel %vm2176_vm3, %v8253_v41, %v4172_v10  ;;  %v2647_v58 = vmul.f32 1.442695, %v2353_v15  ;;  %v8392_v25 = vadd.f32 %v7515_v44, %v1873_v56  ;;  %3513 = vmatmul.f32.gmra.mxu0 %v2975_v27 }
 0x3d0   : > { %v4557_v38 = vpop.eup %4556  ;;  %v1645_v32 = vadd.f32 %v9098_v52, %v9097_v30  ;;  %v8396_v63 = vadd.f32 %v3446_v11, %v3370_v42  ;;  %vm2185_vm8 = vcmp.gt.f32.partialorder %v8302_v16, 0.0  ;;  %v2649_v46 = vmul.f32 1.442695, %v2354_v53  ;;  %3590 = vmatmul.f32.gmra.mxu1 %v2976_v28  ;;  %v9099_v11 = vld [vmem:[#allocation142_spill] sm:$0xff]  ;;  %v9100_v42 = vld [vmem:[#allocation169_spill] sm:$0xff]  ;;  %v9101_v28 = vld [vmem:[#allocation143_spill] sm:$0xff] }
 0x3d1   : > { %v4559_v7 = vpop.eup %4558  ;;  %v2359_v62 = vmin.f32 %v8375_v2, 0.0  ;;  %v2977_v41 = vsel %vm2177_vm4, %v8257_v22, %v4173_v23  ;;  %v2978_v15 = vsel %vm2178_vm5, %v8267_v5, %v4174_v54  ;;  %4562 = vpow2.f32 %v2643_v48  ;;  %v9102_v48 = vld [vmem:[#allocation144_spill] sm:$0xff]  ;;  %v3372_v52 = vpop.f32.mrf.mxu2 }
 0x3d2   : > { %v4561_v10 = vpop.eup %4560  ;;  %v2360_v56 = vmin.f32 %v8379_v40, 0.0  ;;  %v1722_v53 = vadd.f32 %v9100_v42, %v9099_v11  ;;  %3667 = vmatmul.f32.gmra.mxu2 %v2977_v41  ;;  %3744 = vmatmul.f32.gmra.mxu3 %v2978_v15  ;;  %v4179_v35 = vadd.f32 -1.0, %v4555_v19  ;;  %4564 = vpow2.f32 %v2645_v18  ;;  %v3449_v41 = vpop.f32.mrf.mxu3 }
 0x3d3   : > { %v2361_v27 = vmin.f32 %v8386_v43, 0.0  ;;  %v1799_v22 = vadd.f32 %v7564_v45, %v9101_v28  ;;  %v4180_v23 = vadd.f32 -1.0, %v4557_v38  ;;  %4566 = vpow2.f32 %v2647_v58  ;;  %v3221_v38 = vpop.f32.mrf.mxu0  ;;  %v3298_v11 = vpop.f32.mrf.mxu1 }
 0x3d4   : > { %v2362_v5 = vmin.f32 %v8392_v25, 0.0  ;;  %v8414_v54 = vadd.f32 %v7487_v37, %v1645_v32  ;;  %v1876_v30 = vadd.f32 %v7566_v6, %v9102_v48  ;;  %4568 = vpow2.f32 %v2649_v46  ;;  %v9103_v48 = vld [vmem:[#allocation145_spill] sm:$0xff] }
 0x3d5   : > { %v4181_v19 = vadd.f32 -1.0, %v4559_v7  ;;  %vm2186_vm9 = vcmp.gt.f32.partialorder %v8308_v26, 0.0  ;;  %v4182_v18 = vadd.f32 -1.0, %v4561_v10  ;;  %v2659_v15 = vmul.f32 1.442695, %v2359_v62 }
 0x3d6   : > { %v8420_v45 = vadd.f32 %v7496_v14, %v1722_v53  ;;  %v3373_v58 = vadd.f32 %v3372_v52, %v3296_v34  ;;  %v2983_v32 = vsel %vm2183_vm6, %v8291_v21, %v4179_v35  ;;  %vm2191_vm10 = vcmp.gt.f32.partialorder %v8331_v51, 0.0  ;;  %v9104_v52 = vld [vmem:[#allocation37_spill] sm:$0xff] }
 0x3d7   : > { %vm2192_vm11 = vcmp.gt.f32.partialorder %v8337_v20, 0.0  ;;  %v2661_v6 = vmul.f32 1.442695, %v2360_v56  ;;  %v4563_v46 = vpop.eup %4562  ;;  %v8428_v7 = vadd.f32 %v7513_v24, %v1799_v22  ;;  %v3299_v62 = vadd.f32 %v3298_v11, %v3221_v38  ;;  %3516 = vmatmul.f32.gmra.mxu0 %v2983_v32  ;;  %v9107_v32 = vld [vmem:[#allocation147_spill] sm:$0xff] }
 0x3d8   : > { %v2984_v34 = vsel %vm2184_vm7, %v8295_v57, %v4180_v23  ;;  %v2663_v10 = vmul.f32 1.442695, %v2361_v27  ;;  %v4565_v42 = vpop.eup %4564  ;;  %v2367_v53 = vmin.f32 %v8414_v54, 0.0  ;;  %v8435_v21 = vadd.f32 %v7515_v44, %v1876_v30 }
 0x3d9   : > { %v8437_v35 = vadd.f32 %v3449_v41, %v3373_v58  ;;  %v2665_v28 = vmul.f32 1.442695, %v2362_v5  ;;  %v4567_v56 = vpop.eup %4566  ;;  %v1648_v22 = vadd.f32 %v9104_v52, %v9103_v48  ;;  %3593 = vmatmul.f32.gmra.mxu1 %v2984_v34  ;;  %v2985_v57 = vsel %vm2185_vm8, %v8302_v16, %v4181_v19  ;;  %v9105_v41 = vld [vmem:[#allocation146_spill] sm:$0xff] }
 0x3da   : > { %v2986_v27 = vsel %vm2186_vm9, %v8308_v26, %v4182_v18  ;;  %4570 = vpow2.f32 %v2659_v15  ;;  %v4569_v23 = vpop.eup %4568  ;;  %v2368_v30 = vmin.f32 %v8420_v45, 0.0  ;;  %v9106_v5 = vld [vmem:[#allocation170_spill] sm:$0xff]  ;;  %3670 = vmatmul.f32.gmra.mxu2 %v2985_v57  ;;  %v4187_v38 = vadd.f32 -1.0, %v4563_v46  ;;  %v9108_v18 = vld [vmem:[#allocation148_spill] sm:$0xff]  ;;  %v3375_v46 = vpop.f32.mrf.mxu2 }
 0x3db   : > { %v1725_v58 = vadd.f32 %v9106_v5, %v9105_v41  ;;  %3747 = vmatmul.f32.gmra.mxu3 %v2986_v27  ;;  %4572 = vpow2.f32 %v2661_v6  ;;  %v2369_v11 = vmin.f32 %v8428_v7, 0.0  ;;  %v1802_v16 = vadd.f32 %v7631_v9, %v9107_v32  ;;  %v3452_v6 = vpop.f32.mrf.mxu3  ;;  %v3549_v27 = vpop.f32.mrf.mxu1 }
 0x3dc   : > { %v4188_v19 = vadd.f32 -1.0, %v4565_v42  ;;  %4574 = vpow2.f32 %v2663_v10  ;;  %v2370_v26 = vmin.f32 %v8435_v21, 0.0  ;;  %v1879_v15 = vadd.f32 %v7633_v31, %v9108_v18  ;;  %v3472_v42 = vpop.f32.mrf.mxu0 }
 0x3dd   : > { %vm2193_vm12 = vcmp.gt.f32.partialorder %v8344_v3, 0.0  ;;  %4576 = vpow2.f32 %v2665_v28  ;;  %v8458_v34 = vadd.f32 %v7487_v37, %v1648_v22  ;;  %v4189_v48 = vadd.f32 -1.0, %v4567_v56 }
 0x3de   : > { %v4190_v52 = vadd.f32 -1.0, %v4569_v23  ;;  %v2675_v57 = vmul.f32 1.442695, %v2367_v53  ;;  %v8461_v9 = vadd.f32 %v7496_v14, %v1725_v58  ;;  %v3376_v10 = vadd.f32 %v3375_v46, %v3299_v62 }
 0x3df   : > { %vm2194_vm13 = vcmp.gt.f32.partialorder %v8351_v13, 0.0  ;;  %v2677_v31 = vmul.f32 1.442695, %v2368_v30  ;;  %v8465_v28 = vadd.f32 %v7513_v24, %v1802_v16  ;;  %v2991_v37 = vsel %vm2191_vm10, %v8331_v51, %v4187_v38 }
 0x3e0   : > { %v4571_v41 = vpop.eup %4570  ;;  %v2992_v53 = vsel %vm2192_vm11, %v8337_v20, %v4188_v19  ;;  %v2679_v14 = vmul.f32 1.442695, %v2369_v11  ;;  %v8474_v62 = vadd.f32 %v7515_v44, %v1879_v15  ;;  %v8476_v22 = vadd.f32 %v3452_v6, %v3376_v10  ;;  %3519 = vmatmul.f32.gmra.mxu0 %v2991_v37 }
 0x3e1   : > { %v4573_v56 = vpop.eup %4572  ;;  %v3473_v23 = vadd.f32 %v3472_v42, %v7693_v33  ;;  %v2681_v30 = vmul.f32 1.442695, %v2370_v26  ;;  %v2375_v5 = vmin.f32 %v8458_v34, 0.0  ;;  %3596 = vmatmul.f32.gmra.mxu1 %v2992_v53  ;;  %v2993_v51 = vsel %vm2193_vm12, %v8344_v3, %v4189_v48 }
 0x3e2   : > { %v4575_v24 = vpop.eup %4574  ;;  %v2994_v20 = vsel %vm2194_vm13, %v8351_v13, %v4190_v52  ;;  %4578 = vpow2.f32 %v2675_v57  ;;  %v2376_v58 = vmin.f32 %v8461_v9, 0.0  ;;  %3673 = vmatmul.f32.gmra.mxu2 %v2993_v51  ;;  %v2377_v33 = vmin.f32 %v8465_v28, 0.0  ;;  %v3626_v16 = vpop.f32.mrf.mxu2 }
 0x3e3   : > { %v4577_v44 = vpop.eup %4576  ;;  %3750 = vmatmul.f32.gmra.mxu3 %v2994_v20  ;;  %4580 = vpow2.f32 %v2677_v31  ;;  %v4195_v38 = vadd.f32 -1.0, %v4571_v41  ;;  %v2378_v11 = vmin.f32 %v8474_v62, 0.0  ;;  %v3550_v32 = vadd.f32 %v3549_v27, %v3473_v23  ;;  %v3703_v19 = vpop.f32.mrf.mxu3 }
 0x3e4   : > { %4582 = vpow2.f32 %v2679_v14  ;;  %v4196_v3 = vadd.f32 -1.0, %v4573_v56  ;;  %v4197_v13 = vadd.f32 -1.0, %v4575_v24  ;;  %v4198_v26 = vadd.f32 -1.0, %v4577_v44  ;;  %v3475_v46 = vpop.f32.mrf.mxu0  ;;  %v3552_v6 = vpop.f32.mrf.mxu1 }
 0x3e5   : > { %4584 = vpow2.f32 %v2681_v30  ;;  %v2691_v18 = vmul.f32 1.442695, %v2375_v5  ;;  %v3627_v15 = vadd.f32 %v3626_v16, %v3550_v32  ;;  %vm2199_vm14 = vcmp.gt.f32.partialorder %v8375_v2, 0.0 }
 0x3e6   : > { %vm2200_vm15 = vcmp.gt.f32.partialorder %v8379_v40, 0.0  ;;  %v2693_v48 = vmul.f32 1.442695, %v2376_v58  ;;  %v2999_v57 = vsel %vm2199_vm14, %v8375_v2, %v4195_v38  ;;  %vm2201_vm1 = vcmp.gt.f32.partialorder %v8386_v43, 0.0 }
 0x3e7   : > { %vm2202_vm2 = vcmp.gt.f32.partialorder %v8392_v25, 0.0  ;;  %v2695_v10 = vmul.f32 1.442695, %v2377_v33  ;;  %v3704_v27 = vadd.f32 %v3703_v19, %v3627_v15  ;;  %v3476_v31 = vadd.f32 %v3475_v46, %v7731_v39 }
 0x3e8   : > { %v4579_v52 = vpop.eup %4578  ;;  %v3000_v41 = vsel %vm2200_vm15, %v8379_v40, %v4196_v3  ;;  %v2697_v37 = vmul.f32 1.442695, %v2378_v11  ;;  %3522 = vmatmul.f32.gmra.mxu0 %v2999_v57  ;;  %v3001_v14 = vsel %vm2201_vm1, %v8386_v43, %v4197_v13  ;;  %v3002_v2 = vsel %vm2202_vm2, %v8392_v25, %v4198_v26 }
 0x3e9   : > { %v4581_v42 = vpop.eup %4580  ;;  %3599 = vmatmul.f32.gmra.mxu1 %v3000_v41  ;;  %4586 = vpow2.f32 %v2691_v18  ;;  %3763 = vst.msk [vmem:[%s8495_s8] sm:$0xff] %vm588_vm0, %v3704_v27  ;;  %v3553_v23 = vadd.f32 %v3552_v6, %v3476_v31  ;;  %v4203_v39 = vadd.f32 -1.0, %v4579_v52  ;;  %vm2207_vm3 = vcmp.gt.f32.partialorder %v8414_v54, 0.0 }
 0x3ea   : > { %v4583_v53 = vpop.eup %4582  ;;  %3676 = vmatmul.f32.gmra.mxu2 %v3001_v14  ;;  %4588 = vpow2.f32 %v2693_v48  ;;  %v4204_v30 = vadd.f32 -1.0, %v4581_v42  ;;  %v3629_v40 = vpop.f32.mrf.mxu2  ;;  %vm2208_vm4 = vcmp.gt.f32.partialorder %v8420_v45, 0.0  ;;  %vm2209_vm5 = vcmp.gt.f32.partialorder %v8428_v7, 0.0 }
 0x3eb   : > { %v4585_v56 = vpop.eup %4584  ;;  %3753 = vmatmul.f32.gmra.mxu3 %v3002_v2  ;;  %4590 = vpow2.f32 %v2695_v10  ;;  %v3706_v24 = vpop.f32.mrf.mxu3  ;;  %v4205_v5 = vadd.f32 -1.0, %v4583_v53  ;;  %v3630_v20 = vadd.f32 %v3629_v40, %v3553_v23  ;;  %vm2210_vm6 = vcmp.gt.f32.partialorder %v8435_v21, 0.0 }
 0x3ec   : > { %4592 = vpow2.f32 %v2697_v37  ;;  %v4206_v51 = vadd.f32 -1.0, %v4585_v56  ;;  %v3478_v43 = vpop.f32.mrf.mxu0  ;;  %v3555_v44 = vpop.f32.mrf.mxu1  ;;  %v3007_v11 = vsel %vm2207_vm3, %v8414_v54, %v4203_v39  ;;  %v3008_v32 = vsel %vm2208_vm4, %v8420_v45, %v4204_v30 }
 0x3ed   : > { %v3707_v33 = vadd.f32 %v3706_v24, %v3630_v20  ;;  %v3479_v38 = vadd.f32 %v3478_v43, %v7771_v12  ;;  %v3009_v16 = vsel %vm2209_vm5, %v8428_v7, %v4205_v5  ;;  %vm2215_vm7 = vcmp.gt.f32.partialorder %v8458_v34, 0.0 }
 0x3ee   : > { %v3010_v19 = vsel %vm2210_vm6, %v8435_v21, %v4206_v51  ;;  %vm2216_vm8 = vcmp.gt.f32.partialorder %v8461_v9, 0.0  ;;  %vm2217_vm9 = vcmp.gt.f32.partialorder %v8465_v28, 0.0  ;;  %vm2218_vm10 = vcmp.gt.f32.partialorder %v8474_v62, 0.0 }
 0x3ef   : > { %v4587_v25 = vpop.eup %4586  ;;  %3764 = vst.msk [vmem:[%s8495_s8 + $0x8] sm:$0xff] %vm588_vm0, %v3707_v33  ;;  %v3556_v26 = vadd.f32 %v3555_v44, %v3479_v38 }
 0x3f0   : > { %v4589_v58 = vpop.eup %4588  ;;  %3525 = vmatmul.f32.gmra.mxu0 %v3007_v11  ;;  %v4211_v18 = vadd.f32 -1.0, %v4587_v25 }
 0x3f1   : > { %v4591_v3 = vpop.eup %4590  ;;  %3602 = vmatmul.f32.gmra.mxu1 %v3008_v32  ;;  %v4212_v15 = vadd.f32 -1.0, %v4589_v58 }
 0x3f2   : > { %v4593_v13 = vpop.eup %4592  ;;  %3679 = vmatmul.f32.gmra.mxu2 %v3009_v16  ;;  %v3632_v12 = vpop.f32.mrf.mxu2  ;;  %v4213_v54 = vadd.f32 -1.0, %v4591_v3  ;;  %v3015_v57 = vsel %vm2215_vm7, %v8458_v34, %v4211_v18 }
 0x3f3   : > { %3756 = vmatmul.f32.gmra.mxu3 %v3010_v19  ;;  %v3709_v46 = vpop.f32.mrf.mxu3  ;;  %v4214_v6 = vadd.f32 -1.0, %v4593_v13  ;;  %v3633_v45 = vadd.f32 %v3632_v12, %v3556_v26  ;;  %v3016_v10 = vsel %vm2216_vm8, %v8461_v9, %v4212_v15 }
 0x3f4   : > { %v3481_v48 = vpop.f32.mrf.mxu0  ;;  %v3558_v52 = vpop.f32.mrf.mxu1  ;;  %v3017_v42 = vsel %vm2217_vm9, %v8465_v28, %v4213_v54 }
 0x3f5   : > { %v3710_v7 = vadd.f32 %v3709_v46, %v3633_v45  ;;  %v3482_v21 = vadd.f32 %v3481_v48, %v7814_v61  ;;  %v3018_v27 = vsel %vm2218_vm10, %v8474_v62, %v4214_v6 }
 0x3f7   : > { %3765 = vst.msk [vmem:[%s8495_s8 + $0x10] sm:$0xff] %vm588_vm0, %v3710_v7  ;;  %v3559_v31 = vadd.f32 %v3558_v52, %v3482_v21 }
 0x3f8   : > { %3528 = vmatmul.f32.gmra.mxu0 %v3015_v57 }
 0x3f9   : > { %3605 = vmatmul.f32.gmra.mxu1 %v3016_v10 }
 0x3fa   : > { %3682 = vmatmul.f32.gmra.mxu2 %v3017_v42  ;;  %v3635_v41 = vpop.f32.mrf.mxu2 }
 0x3fb   : > { %3759 = vmatmul.f32.gmra.mxu3 %v3018_v27  ;;  %v3712_v37 = vpop.f32.mrf.mxu3  ;;  %v3636_v61 = vadd.f32 %v3635_v41, %v3559_v31 }
 0x3fc   : > { %v3484_v53 = vpop.f32.mrf.mxu0  ;;  %v3561_v34 = vpop.f32.mrf.mxu1 }
 0x3fd   : > { %v3713_v14 = vadd.f32 %v3712_v37, %v3636_v61  ;;  %v3485_v9 = vadd.f32 %v3484_v53, %v7854_v0 }
 0x3ff   : > { %3766 = vst.msk [vmem:[%s8495_s8 + $0x18] sm:$0xff] %vm588_vm0, %v3713_v14  ;;  %v3562_v2 = vadd.f32 %v3561_v34, %v3485_v9 }
 0x402   : > { %v3638_v28 = vpop.f32.mrf.mxu2 }
 0x403   : > { %v3715_v62 = vpop.f32.mrf.mxu3  ;;  %v3639_v56 = vadd.f32 %v3638_v28, %v3562_v2 }
 0x404   : > { %v3487_v23 = vpop.f32.mrf.mxu0  ;;  %v3564_v39 = vpop.f32.mrf.mxu1 }
 0x405   : > { %v3716_v30 = vadd.f32 %v3715_v62, %v3639_v56  ;;  %v3488_v40 = vadd.f32 %v3487_v23, %v7896_v50 }
 0x407   : > { %3767 = vst.msk [vmem:[%s8495_s8 + $0x20] sm:$0xff] %vm588_vm0, %v3716_v30  ;;  %v3565_v24 = vadd.f32 %v3564_v39, %v3488_v40 }
 0x40a   : > { %v3641_v5 = vpop.f32.mrf.mxu2 }
 0x40b   : > { %v3718_v51 = vpop.f32.mrf.mxu3  ;;  %v3642_v20 = vadd.f32 %v3641_v5, %v3565_v24 }
 0x40c   : > { %v3490_v0 = vpop.f32.mrf.mxu0  ;;  %v3567_v43 = vpop.f32.mrf.mxu1 }
 0x40d   : > { %v3719_v44 = vadd.f32 %v3718_v51, %v3642_v20  ;;  %v3491_v25 = vadd.f32 %v3490_v0, %v7936_v60 }
 0x40f   : > { %3768 = vst.msk [vmem:[%s8495_s8 + $0x28] sm:$0xff] %vm588_vm0, %v3719_v44  ;;  %v3568_v58 = vadd.f32 %v3567_v43, %v3491_v25 }
 0x412   : > { %v3644_v33 = vpop.f32.mrf.mxu2 }
 0x413   : > { %v3721_v38 = vpop.f32.mrf.mxu3  ;;  %v3645_v11 = vadd.f32 %v3644_v33, %v3568_v58 }
 0x414   : > { %v3493_v50 = vpop.f32.mrf.mxu0  ;;  %v3570_v32 = vpop.f32.mrf.mxu1 }
 0x415   : > { %v3722_v3 = vadd.f32 %v3721_v38, %v3645_v11  ;;  %v3494_v16 = vadd.f32 %v3493_v50, %v7980_v55 }
 0x417   : > { %3769 = vst.msk [vmem:[%s8495_s8 + $0x30] sm:$0xff] %vm588_vm0, %v3722_v3  ;;  %v3571_v19 = vadd.f32 %v3570_v32, %v3494_v16 }
 0x41a   : > { %v3647_v13 = vpop.f32.mrf.mxu2 }
 0x41b   : > { %v3724_v26 = vpop.f32.mrf.mxu3  ;;  %v3648_v18 = vadd.f32 %v3647_v13, %v3571_v19 }
 0x41c   : > { %v3496_v60 = vpop.f32.mrf.mxu0  ;;  %v3573_v15 = vpop.f32.mrf.mxu1 }
 0x41d   : > { %v3725_v12 = vadd.f32 %v3724_v26, %v3648_v18  ;;  %v3497_v46 = vadd.f32 %v3496_v60, %v8023_v36 }
 0x41f   : > { %3770 = vst.msk [vmem:[%s8495_s8 + $0x38] sm:$0xff] %vm588_vm0, %v3725_v12  ;;  %v3574_v54 = vadd.f32 %v3573_v15, %v3497_v46 }
 0x422   : > { %v3650_v6 = vpop.f32.mrf.mxu2 }
 0x423   : > { %v3727_v45 = vpop.f32.mrf.mxu3  ;;  %v3651_v48 = vadd.f32 %v3650_v6, %v3574_v54 }
 0x424   : > { %v3499_v55 = vpop.f32.mrf.mxu0  ;;  %v3576_v52 = vpop.f32.mrf.mxu1 }
 0x425   : > { %v3728_v7 = vadd.f32 %v3727_v45, %v3651_v48  ;;  %v3500_v21 = vadd.f32 %v3499_v55, %v8063_v59 }
 0x427   : > { %3771 = vst.msk [vmem:[%s8495_s8 + $0x40] sm:$0xff] %vm588_vm0, %v3728_v7  ;;  %v3577_v57 = vadd.f32 %v3576_v52, %v3500_v21 }
 0x42a   : > { %v3653_v10 = vpop.f32.mrf.mxu2 }
 0x42b   : > { %v3730_v42 = vpop.f32.mrf.mxu3  ;;  %v3654_v27 = vadd.f32 %v3653_v10, %v3577_v57 }
 0x42c   : > { %v3502_v36 = vpop.f32.mrf.mxu0  ;;  %v3579_v31 = vpop.f32.mrf.mxu1 }
 0x42d   : > { %v3731_v41 = vadd.f32 %v3730_v42, %v3654_v27  ;;  %v3503_v37 = vadd.f32 %v3502_v36, %v8105_v1 }
 0x42f   : > { %3772 = vst.msk [vmem:[%s8495_s8 + $0x48] sm:$0xff] %vm588_vm0, %v3731_v41  ;;  %v3580_v61 = vadd.f32 %v3579_v31, %v3503_v37 }
 0x432   : > { %v3656_v53 = vpop.f32.mrf.mxu2 }
 0x433   : > { %v3733_v34 = vpop.f32.mrf.mxu3  ;;  %v3657_v14 = vadd.f32 %v3656_v53, %v3580_v61 }
 0x434   : > { %v3505_v59 = vpop.f32.mrf.mxu0  ;;  %v3582_v9 = vpop.f32.mrf.mxu1 }
 0x435   : > { %v3734_v2 = vadd.f32 %v3733_v34, %v3657_v14  ;;  %v3506_v28 = vadd.f32 %v3505_v59, %v8148_v17 }
 0x437   : > { %3773 = vst.msk [vmem:[%s8495_s8 + $0x50] sm:$0xff] %vm588_vm0, %v3734_v2  ;;  %v3583_v62 = vadd.f32 %v3582_v9, %v3506_v28 }
 0x43b   : > { %v3659_v56 = vpop.f32.mrf.mxu2  ;;  %v3736_v23 = vpop.f32.mrf.mxu3 }
 0x43c   : > { %v3660_v39 = vadd.f32 %v3659_v56, %v3583_v62  ;;  %v3508_v1 = vpop.f32.mrf.mxu0  ;;  %v3585_v30 = vpop.f32.mrf.mxu1 }
 0x43d   : > { %v3509_v24 = vadd.f32 %v3508_v1, %v8187_v29 }
 0x43e   : > { %v3737_v40 = vadd.f32 %v3736_v23, %v3660_v39 }
 0x43f   : > { %v3586_v5 = vadd.f32 %v3585_v30, %v3509_v24 }
 0x440   : > { %3774 = vst.msk [vmem:[%s8495_s8 + $0x58] sm:$0xff] %vm588_vm0, %v3737_v40 }
 0x444   : > { %v3662_v51 = vpop.f32.mrf.mxu2  ;;  %v3739_v20 = vpop.f32.mrf.mxu3 }
 0x445   : > { %v3663_v0 = vadd.f32 %v3662_v51, %v3586_v5  ;;  %v3511_v17 = vpop.f32.mrf.mxu0  ;;  %v3588_v43 = vpop.f32.mrf.mxu1 }
 0x446   : > { %v3512_v25 = vadd.f32 %v3511_v17, %v8229_v4 }
 0x447   : > { %v3740_v44 = vadd.f32 %v3739_v20, %v3663_v0 }
 0x448   : > { %v3589_v58 = vadd.f32 %v3588_v43, %v3512_v25 }
 0x449   : > { %3775 = vst.msk [vmem:[%s8495_s8 + $0x60] sm:$0xff] %vm588_vm0, %v3740_v44 }
 0x44c   : > { %v3665_v33 = vpop.f32.mrf.mxu2  ;;  %v3742_v38 = vpop.f32.mrf.mxu3 }
 0x44d   : > { %v3666_v11 = vadd.f32 %v3665_v33, %v3589_v58  ;;  %v3514_v29 = vpop.f32.mrf.mxu0  ;;  %v3591_v50 = vpop.f32.mrf.mxu1 }
 0x44e   : > { %v3515_v3 = vadd.f32 %v3514_v29, %v8269_v49 }
 0x44f   : > { %v3743_v32 = vadd.f32 %v3742_v38, %v3666_v11 }
 0x450   : > { %v3592_v16 = vadd.f32 %v3591_v50, %v3515_v3 }
 0x451   : > { %3776 = vst.msk [vmem:[%s8495_s8 + $0x68] sm:$0xff] %vm588_vm0, %v3743_v32 }
 0x455   : > { %v3668_v19 = vpop.f32.mrf.mxu2  ;;  %v3745_v13 = vpop.f32.mrf.mxu3 }
 0x456   : > { %v3669_v26 = vadd.f32 %v3668_v19, %v3592_v16  ;;  %v3517_v4 = vpop.f32.mrf.mxu0  ;;  %v3594_v18 = vpop.f32.mrf.mxu1 }
 0x457   : > { %v3518_v15 = vadd.f32 %v3517_v4, %v8312_v47 }
 0x458   : > { %v3746_v60 = vadd.f32 %v3745_v13, %v3669_v26 }
 0x459   : > { %v3595_v12 = vadd.f32 %v3594_v18, %v3518_v15 }
 0x45a   : > { %3777 = vst.msk [vmem:[%s8495_s8 + $0x70] sm:$0xff] %vm588_vm0, %v3746_v60 }
 0x45d   : > { %v3671_v46 = vpop.f32.mrf.mxu2 }
 0x45e   : > { %v3748_v54 = vpop.f32.mrf.mxu3  ;;  %v3672_v6 = vadd.f32 %v3671_v46, %v3595_v12  ;;  %v3520_v49 = vpop.f32.mrf.mxu0 }
 0x45f   : > { %v3597_v45 = vpop.f32.mrf.mxu1  ;;  %v3521_v55 = vadd.f32 %v3520_v49, %v8353_v8 }
 0x460   : > { %v3749_v48 = vadd.f32 %v3748_v54, %v3672_v6 }
 0x461   : > { %v3598_v52 = vadd.f32 %v3597_v45, %v3521_v55 }
 0x462   : > { %3778 = vst.msk [vmem:[%s8495_s8 + $0x78] sm:$0xff] %vm588_vm0, %v3749_v48 }
 0x465   : > { %v3674_v7 = vpop.f32.mrf.mxu2 }
 0x466   : > { %v3751_v21 = vpop.f32.mrf.mxu3  ;;  %v3675_v57 = vadd.f32 %v3674_v7, %v3598_v52  ;;  %v3523_v47 = vpop.f32.mrf.mxu0 }
 0x467   : > { %v3600_v10 = vpop.f32.mrf.mxu1  ;;  %v3524_v27 = vadd.f32 %v3523_v47, %v8396_v63 }
 0x468   : > { %v3752_v42 = vadd.f32 %v3751_v21, %v3675_v57 }
 0x469   : > { %v3601_v36 = vadd.f32 %v3600_v10, %v3524_v27 }
 0x46a   : > { %3779 = vst.msk [vmem:[%s8495_s8 + $0x80] sm:$0xff] %vm588_vm0, %v3752_v42 }
 0x46d   : > { %v3677_v31 = vpop.f32.mrf.mxu2 }
 0x46e   : > { %v3754_v41 = vpop.f32.mrf.mxu3  ;;  %v3678_v37 = vadd.f32 %v3677_v31, %v3601_v36  ;;  %v3526_v8 = vpop.f32.mrf.mxu0 }
 0x46f   : > { %v3527_v53 = vadd.f32 %v3526_v8, %v8437_v35  ;;  %v3603_v34 = vpop.f32.mrf.mxu1 }
 0x470   : > { %v3755_v61 = vadd.f32 %v3754_v41, %v3678_v37 }
 0x471   : > { %v3604_v14 = vadd.f32 %v3603_v34, %v3527_v53 }
 0x472   : > { %3780 = vst.msk [vmem:[%s8495_s8 + $0x88] sm:$0xff] %vm588_vm0, %v3755_v61 }
 0x475   : > { %v3680_v59 = vpop.f32.mrf.mxu2 }
 0x476   : > { %v3757_v9 = vpop.f32.mrf.mxu3  ;;  %v3681_v2 = vadd.f32 %v3680_v59, %v3604_v14  ;;  %v3529_v63 = vpop.f32.mrf.mxu0 }
 0x477   : > { %v3530_v62 = vadd.f32 %v3529_v63, %v8476_v22  ;;  %v3606_v56 = vpop.f32.mrf.mxu1 }
 0x478   : > { %v3758_v28 = vadd.f32 %v3757_v9, %v3681_v2 }
 0x479   : > { %v3607_v23 = vadd.f32 %v3606_v56, %v3530_v62 }
 0x47a   : > { %3781 = vst.msk [vmem:[%s8495_s8 + $0x90] sm:$0xff] %vm588_vm0, %v3758_v28 }
 0x47d   : > { %v3683_v39 = vpop.f32.mrf.mxu2 }
 0x47e   : > { %v3684_v1 = vadd.f32 %v3683_v39, %v3607_v23  ;;  %v3760_v30 = vpop.f32.mrf.mxu3 }
 0x480   : > { %v3761_v35 = vadd.f32 %v3760_v30, %v3684_v1 }
 0x482   : > { %3782 = vst.msk [vmem:[%s8495_s8 + $0x98] sm:$0xff] %vm588_vm0, %v3761_v35 }
 0x483 PF: > { %p18_p1 = scmp.ge.s32.totalorder %s4786_s14, 4   ;;  %s9109_s24 = smov %s4685_s25 }
 0x484   : > { %s9110_s25 = smov %s4689_s26  ;;  %s9111_s26 = smov %s4796_s19 }
 0x485   : > { %s9112_s27 = smov %s4786_s14  ;;  %20 = sbr.rel (!%p18_p1) target bundleno = 4 (0x4), region = 98 }
 0x48a   :  { %3805 = vsyncpa [#allocation3], 1 }
 0x48b   :  { %3807 = vsyncpa [#allocation3 + $0x1], 1 }
 0x48c   :  { %3808 = vsyncpa [#allocation5], 1 }

</bundles_post_ra>
